<compile_context>
chip_gen: v7x
topology: tpu7x:2x2x1
jax: 0.10.0
libtpu: 0.0.40
codegen_flags: <defaults>
</compile_context>

<pallas_src>
import jax
import jax.numpy as jnp
from jax.experimental import pallas as pl
from jax.experimental.pallas import tpu as pltpu


# ----------------------------------------------------------------------------
# Helpers
# ----------------------------------------------------------------------------
def _round_up(x, m):
    return (x + m - 1) // m * m


def _pad_gate_cols(w, H, Hp):
    """(rows, 4H) gate matrix/bias -> (rows, 4Hp), each gate padded to Hp lanes."""
    rows = w.shape[0]
    w4 = w.reshape(rows, 4, H)
    out = jnp.zeros((rows, 4, Hp), w.dtype).at[:, :, :H].set(w4)
    return out.reshape(rows, 4 * Hp)


# ----------------------------------------------------------------------------
# Fused whole-model kernel (single grid step, everything resident in VMEM)
# ----------------------------------------------------------------------------
def make_fused_lstm_kernel(num_layers, S, Bp, Hp):
    def kernel(*refs):
        x_ref = refs[0]
        layer_refs = refs[1:1 + 3 * num_layers]
        wfc_ref, bfc_ref, out_ref, xg_scr, hseq_scr = refs[1 + 3 * num_layers:]

        h = None
        for l in range(num_layers):
            wih_ref = layer_refs[3 * l + 0]
            whh_ref = layer_refs[3 * l + 1]
            b_ref = layer_refs[3 * l + 2]
            last = (l == num_layers - 1)

            # Hoisted input projection for the whole (padded) sequence: one
            # (S*Bp, in) @ (in, 4Hp) MXU dot, staged in VMEM scratch so the
            # unrolled loop below only holds a (Bp, 4Hp) gate slice in vregs.
            # hseq_scr is fully consumed here before the recurrence rewrites it.
            src = x_ref[...] if l == 0 else hseq_scr[...]
            xg_scr[...] = (jnp.dot(src, wih_ref[...],
                                   preferred_element_type=jnp.float32)
                           + b_ref[...])

            h = jnp.zeros((Bp, Hp), jnp.float32)
            c = jnp.zeros((Bp, Hp), jnp.float32)
            for t in range(S):                    # statically unrolled recurrence
                row = t * Bp                      # static, sublane-aligned start
                # whh_ref[...] is read inside the dot (not hoisted to a Python
                # variable) so the 256 KiB weight is not pinned in vregs across
                # the whole unrolled loop.
                gates = xg_scr[pl.ds(row, Bp), :] + jnp.dot(
                    h, whh_ref[...], preferred_element_type=jnp.float32)
                # Gate order matches PyTorch: [i, f, g, o]; slices lane-aligned.
                i = jax.nn.sigmoid(gates[:, 0 * Hp:1 * Hp])
                f = jax.nn.sigmoid(gates[:, 1 * Hp:2 * Hp])
                g = jnp.tanh(gates[:, 2 * Hp:3 * Hp])
                o = jax.nn.sigmoid(gates[:, 3 * Hp:4 * Hp])
                c = f * c + i * g
                h = o * jnp.tanh(c)
                if not last:                      # last layer never stores hseq
                    hseq_scr[pl.ds(row, Bp), :] = h

        # Fused fc head: logits = hn[-1] @ W_fc^T + b_fc (hn never leaves VMEM).
        out_ref[...] = (jnp.dot(h, wfc_ref[...],
                                preferred_element_type=jnp.float32)
                        + bfc_ref[...])

    return kernel


# ----------------------------------------------------------------------------
# Parameters (PyTorch-equivalent), padding prep, and full model forward
# ----------------------------------------------------------------------------
def init_params(key, input_size, hidden_size, num_layers, output_size):
    k = 1.0 / jnp.sqrt(jnp.float32(hidden_size))
    params = {"layers": []}
    for layer in range(num_layers):
        in_sz = input_size if layer == 0 else hidden_size
        key, k1, k2, k3, k4 = jax.random.split(key, 5)
        w_ih = jax.random.uniform(k1, (4 * hidden_size, in_sz), jnp.float32, -k, k)
        w_hh = jax.random.uniform(k2, (4 * hidden_size, hidden_size), jnp.float32, -k, k)
        b_ih = jax.random.uniform(k3, (4 * hidden_size,), jnp.float32, -k, k)
        b_hh = jax.random.uniform(k4, (4 * hidden_size,), jnp.float32, -k, k)
        params["layers"].append({
            "w_ih_t": w_ih.T,                                # (in, 4H)
            "w_hh_t": w_hh.T,                                # (H, 4H)
            "b": (b_ih + b_hh).reshape(1, 4 * hidden_size),  # (1, 4H)
        })
    key, k5, k6 = jax.random.split(key, 3)
    w_fc = jax.random.uniform(k5, (output_size, hidden_size), jnp.float32, -k, k)
    b_fc = jax.random.uniform(k6, (output_size,), jnp.float32, -k, k)
    params["w_fc_t"] = w_fc.T                                # (H, O)
    params["b_fc"] = b_fc.reshape(1, output_size)            # (1, O)
    return params


def prepare_params(params, hidden_size):
    """Pad hidden dim to a multiple of 128 lanes (zero-padded gate blocks)."""
    H = hidden_size
    Hp = _round_up(H, 128)
    prepped = {"layers": []}
    for li, lp in enumerate(params["layers"]):
        w_ih_p = _pad_gate_cols(lp["w_ih_t"], H, Hp)         # (in, 4Hp)
        if li > 0:  # inner layers consume the padded (Hp) hidden state
            w_ih_p = jnp.zeros((Hp, 4 * Hp), w_ih_p.dtype).at[:H].set(w_ih_p)
        w_hh_p = jnp.zeros((Hp, 4 * Hp), jnp.float32).at[:H].set(
            _pad_gate_cols(lp["w_hh_t"], H, Hp))             # (Hp, 4Hp)
        b_p = _pad_gate_cols(lp["b"], H, Hp)                 # (1, 4Hp)
        prepped["layers"].append({"w_ih_p": w_ih_p, "w_hh_p": w_hh_p, "b_p": b_p})
    prepped["w_fc_p"] = jnp.zeros((Hp, params["w_fc_t"].shape[1]),
                                  jnp.float32).at[:H].set(params["w_fc_t"])
    prepped["b_fc"] = params["b_fc"]
    return prepped


@jax.jit
def lstm_model_forward(prepped, x):
    """x: (B, S, I) batch-first, like the PyTorch module.  Returns (B, O)."""
    B, S, I = x.shape
    Bp = _round_up(B, 8)                      # sublane-align the batch
    layers = prepped["layers"]
    num_layers = len(layers)
    Hp = layers[0]["w_hh_p"].shape[0]
    O = prepped["w_fc_p"].shape[1]

    x_tm = jnp.transpose(x, (1, 0, 2)).astype(jnp.float32)          # (S, B, I)
    x2 = jnp.pad(x_tm, ((0, 0), (0, Bp - B), (0, 0))).reshape(S * Bp, I)

    args = [x2]
    in_specs = [pl.BlockSpec((S * Bp, I), lambda i: (0, 0))]
    for lp in layers:
        in_dim = lp["w_ih_p"].shape[0]
        args += [lp["w_ih_p"], lp["w_hh_p"], lp["b_p"]]
        in_specs += [
            pl.BlockSpec((in_dim, 4 * Hp), lambda i: (0, 0)),
            pl.BlockSpec((Hp, 4 * Hp), lambda i: (0, 0)),
            pl.BlockSpec((1, 4 * Hp), lambda i: (0, 0)),
        ]
    args += [prepped["w_fc_p"], prepped["b_fc"]]
    in_specs += [pl.BlockSpec((Hp, O), lambda i: (0, 0)),
                 pl.BlockSpec((1, O), lambda i: (0, 0))]

    # VMEM budget: x + all weights + xg/hseq scratch ~= 2 MiB << 32 MiB scoped
    # default on every generation (incl. v7x), so no vmem_limit override needed.
    # TODO(synk): for large S*B*H that exceed VMEM, fall back to the
    # time-blocked per-layer pipeline instead of full fusion.
    out_p = pl.pallas_call(
        make_fused_lstm_kernel(num_layers, S, Bp, Hp),
        out_shape=jax.ShapeDtypeStruct((Bp, O), jnp.float32),
        grid_spec=pltpu.PrefetchScalarGridSpec(
            num_scalar_prefetch=0,
            grid=(1,),
            in_specs=in_specs,
            out_specs=pl.BlockSpec((Bp, O), lambda i: (0, 0)),
            scratch_shapes=[
                pltpu.VMEM((S * Bp, 4 * Hp), jnp.float32),   # staged xg
                pltpu.VMEM((S * Bp, Hp), jnp.float32),       # hseq (layer l -> l+1)
            ]),
        compiler_params=pltpu.CompilerParams(
            dimension_semantics=("arbitrary",)),
    )(*args)
    return out_p[:B]


# ----------------------------------------------------------------------------
# Pure-JAX reference (unpadded weights) for the correctness check
# ----------------------------------------------------------------------------
def lstm_model_ref(params, x):
    x_tm = jnp.transpose(x, (1, 0, 2)).astype(jnp.float32)
    hn = None
    for lp in params["layers"]:
        H = lp["w_hh_t"].shape[0]
        B = x_tm.shape[1]

        def step(carry, x_t, lp=lp, H=H):
            h, c = carry
            gates = x_t @ lp["w_ih_t"] + h @ lp["w_hh_t"] + lp["b"]
            i = jax.nn.sigmoid(gates[:, 0 * H:1 * H])
            f = jax.nn.sigmoid(gates[:, 1 * H:2 * H])
            g = jnp.tanh(gates[:, 2 * H:3 * H])
            o = jax.nn.sigmoid(gates[:, 3 * H:4 * H])
            c = f * c + i * g
            h = o * jnp.tanh(c)
            return (h, c), h

        (hn, _), hseq = jax.lax.scan(
            step,
            (jnp.zeros((B, H), jnp.float32), jnp.zeros((B, H), jnp.float32)),
            x_tm)
        x_tm = hseq
    return hn @ params["w_fc_t"] + params["b_fc"]


if __name__ == "__main__":
    batch, seq, input_size = 2, 8, 16
    hidden_size, num_layers, output_size = 32, 2, 4

    key = jax.random.PRNGKey(0)
    key, pkey, xkey = jax.random.split(key, 3)
    params = init_params(pkey, input_size, hidden_size, num_layers, output_size)
    x = jax.random.normal(xkey, (batch, seq, input_size), jnp.float32)

    prepped = prepare_params(params, hidden_size)
    out = lstm_model_forward(prepped, x)
    out = jax.block_until_ready(out)

    ref = lstm_model_ref(params, x)
    assert out.shape == (batch, output_size)
    assert jnp.allclose(out, ref, atol=1e-4, rtol=1e-4), "mismatch vs reference"

    print("KERNEL_OK")
</pallas_src>

<mosaic_0001>
module attributes {stable_mosaic.version = 11 : i64} {
  func.func @kernel(%arg0: i32, %arg1: memref<64x16xf32, #tpu.memory_space<vmem>>, %arg2: memref<16x512xf32, #tpu.memory_space<vmem>>, %arg3: memref<128x512xf32, #tpu.memory_space<vmem>>, %arg4: memref<1x512xf32, #tpu.memory_space<vmem>>, %arg5: memref<128x512xf32, #tpu.memory_space<vmem>>, %arg6: memref<128x512xf32, #tpu.memory_space<vmem>>, %arg7: memref<1x512xf32, #tpu.memory_space<vmem>>, %arg8: memref<128x4xf32, #tpu.memory_space<vmem>>, %arg9: memref<1x4xf32, #tpu.memory_space<vmem>>, %arg10: memref<8x4xf32, #tpu.memory_space<vmem>>, %arg11: memref<64x512xf32, #tpu.memory_space<vmem>>, %arg12: memref<64x128xf32, #tpu.memory_space<vmem>>) attributes {dimension_semantics = [#tpu.dimension_semantics<arbitrary>], iteration_bounds = array<i64: 1>, scalar_prefetch = 0 : i64, scratch_operands = 2 : i64, tpu.core_type = #tpu.core_type<tc>, window_params = [{pipeline_mode = #tpu.pipeline_mode<synchronous>, transform_indices = @transform_0, window_bounds = array<i64: 64, 16>}, {pipeline_mode = #tpu.pipeline_mode<synchronous>, transform_indices = @transform_1, window_bounds = array<i64: 16, 512>}, {pipeline_mode = #tpu.pipeline_mode<synchronous>, transform_indices = @transform_2, window_bounds = array<i64: 128, 512>}, {pipeline_mode = #tpu.pipeline_mode<synchronous>, transform_indices = @transform_3, window_bounds = array<i64: 1, 512>}, {pipeline_mode = #tpu.pipeline_mode<synchronous>, transform_indices = @transform_4, window_bounds = array<i64: 128, 512>}, {pipeline_mode = #tpu.pipeline_mode<synchronous>, transform_indices = @transform_5, window_bounds = array<i64: 128, 512>}, {pipeline_mode = #tpu.pipeline_mode<synchronous>, transform_indices = @transform_6, window_bounds = array<i64: 1, 512>}, {pipeline_mode = #tpu.pipeline_mode<synchronous>, transform_indices = @transform_7, window_bounds = array<i64: 128, 4>}, {pipeline_mode = #tpu.pipeline_mode<synchronous>, transform_indices = @transform_8, window_bounds = array<i64: 1, 4>}, {pipeline_mode = #tpu.pipeline_mode<synchronous>, transform_indices = @transform_9, window_bounds = array<i64: 8, 4>}]} {
    %c0 = arith.constant 0 : index
    %c0_0 = arith.constant 0 : index
    %0 = vector.load %arg1[%c0, %c0_0] : memref<64x16xf32, #tpu.memory_space<vmem>>, vector<64x16xf32>
    %c0_1 = arith.constant 0 : index
    %c0_2 = arith.constant 0 : index
    %1 = vector.load %arg2[%c0_1, %c0_2] : memref<16x512xf32, #tpu.memory_space<vmem>>, vector<16x512xf32>
    %cst = arith.constant dense<0.000000e+00> : vector<64x512xf32>
    %2 = tpu.matmul %0, %1, %cst {dimension_numbers = #tpu.dot_dimension_numbers<[1], [0], [0], [1], [0, 0, 1, 1], [], []>} : vector<64x16xf32>, vector<16x512xf32>, vector<64x512xf32> -> vector<64x512xf32>
    %c0_3 = arith.constant 0 : index
    %c0_4 = arith.constant 0 : index
    %3 = vector.load %arg4[%c0_3, %c0_4] : memref<1x512xf32, #tpu.memory_space<vmem>>, vector<1x512xf32>
    %4 = vector.broadcast %3 : vector<1x512xf32> to vector<64x512xf32>
    %5 = arith.addf %2, %4 : vector<64x512xf32>
    %c0_5 = arith.constant 0 : index
    %c0_6 = arith.constant 0 : index
    %6 = vector.load %arg11[%c0_5, %c0_6] : memref<64x512xf32, #tpu.memory_space<vmem>>, vector<64x512xf32>
    tpu.vector_store %arg11[%c0_5, %c0_6], %5 {strides = array<i32>} : memref<64x512xf32, #tpu.memory_space<vmem>>, vector<64x512xf32>,
    %cst_7 = arith.constant 0.000000e+00 : f32
    %7 = vector.broadcast %cst_7 : f32 to vector<8x128xf32>
    %cst_8 = arith.constant 0.000000e+00 : f32
    %8 = vector.broadcast %cst_8 : f32 to vector<8x128xf32>
    %c0_9 = arith.constant 0 : index
    %c0_10 = arith.constant 0 : index
    %9 = vector.load %arg11[%c0_9, %c0_10] : memref<64x512xf32, #tpu.memory_space<vmem>>, vector<8x512xf32>
    %c0_11 = arith.constant 0 : index
    %c0_12 = arith.constant 0 : index
    %10 = vector.load %arg3[%c0_11, %c0_12] : memref<128x512xf32, #tpu.memory_space<vmem>>, vector<128x512xf32>
    %cst_13 = arith.constant dense<0.000000e+00> : vector<8x512xf32>
    %11 = tpu.matmul %7, %10, %cst_13 {dimension_numbers = #tpu.dot_dimension_numbers<[1], [0], [0], [1], [0, 0, 1, 1], [], []>} : vector<8x128xf32>, vector<128x512xf32>, vector<8x512xf32> -> vector<8x512xf32>
    %12 = arith.addf %9, %11 : vector<8x512xf32>
    %13 = vector.extract_strided_slice %12 {offsets = [0, 0], sizes = [8, 128], strides = [1, 1]} : vector<8x512xf32> to vector<8x128xf32>
    %14 = arith.negf %13 : vector<8x128xf32>
    %15 = math.exp %14 : vector<8x128xf32>
    %cst_14 = arith.constant 1.000000e+00 : f32
    %16 = vector.broadcast %cst_14 : f32 to vector<8x128xf32>
    %17 = arith.addf %16, %15 : vector<8x128xf32>
    %18 = arith.divf %16, %17 : vector<8x128xf32>
    %19 = vector.extract_strided_slice %12 {offsets = [0, 128], sizes = [8, 128], strides = [1, 1]} : vector<8x512xf32> to vector<8x128xf32>
    %20 = arith.negf %19 : vector<8x128xf32>
    %21 = math.exp %20 : vector<8x128xf32>
    %cst_15 = arith.constant 1.000000e+00 : f32
    %22 = vector.broadcast %cst_15 : f32 to vector<8x128xf32>
    %23 = arith.addf %22, %21 : vector<8x128xf32>
    %24 = arith.divf %22, %23 : vector<8x128xf32>
    %25 = vector.extract_strided_slice %12 {offsets = [0, 256], sizes = [8, 128], strides = [1, 1]} : vector<8x512xf32> to vector<8x128xf32>
    %26 = math.tanh %25 : vector<8x128xf32>
    %27 = vector.extract_strided_slice %12 {offsets = [0, 384], sizes = [8, 128], strides = [1, 1]} : vector<8x512xf32> to vector<8x128xf32>
    %28 = arith.negf %27 : vector<8x128xf32>
    %29 = math.exp %28 : vector<8x128xf32>
    %cst_16 = arith.constant 1.000000e+00 : f32
    %30 = vector.broadcast %cst_16 : f32 to vector<8x128xf32>
    %31 = arith.addf %30, %29 : vector<8x128xf32>
    %32 = arith.divf %30, %31 : vector<8x128xf32>
    %33 = arith.mulf %24, %8 : vector<8x128xf32>
    %34 = arith.mulf %18, %26 : vector<8x128xf32>
    %35 = arith.addf %33, %34 : vector<8x128xf32>
    %36 = math.tanh %35 : vector<8x128xf32>
    %37 = arith.mulf %32, %36 : vector<8x128xf32>
    %c0_17 = arith.constant 0 : index
    %c0_18 = arith.constant 0 : index
    %38 = vector.load %arg12[%c0_17, %c0_18] : memref<64x128xf32, #tpu.memory_space<vmem>>, vector<8x128xf32>
    tpu.vector_store %arg12[%c0_17, %c0_18], %37 {strides = array<i32>} : memref<64x128xf32, #tpu.memory_space<vmem>>, vector<8x128xf32>,
    %c8 = arith.constant 8 : index
    %c0_19 = arith.constant 0 : index
    %39 = vector.load %arg11[%c8, %c0_19] : memref<64x512xf32, #tpu.memory_space<vmem>>, vector<8x512xf32>
    %c0_20 = arith.constant 0 : index
    %c0_21 = arith.constant 0 : index
    %40 = vector.load %arg3[%c0_20, %c0_21] : memref<128x512xf32, #tpu.memory_space<vmem>>, vector<128x512xf32>
    %cst_22 = arith.constant dense<0.000000e+00> : vector<8x512xf32>
    %41 = tpu.matmul %37, %40, %cst_22 {dimension_numbers = #tpu.dot_dimension_numbers<[1], [0], [0], [1], [0, 0, 1, 1], [], []>} : vector<8x128xf32>, vector<128x512xf32>, vector<8x512xf32> -> vector<8x512xf32>
    %42 = arith.addf %39, %41 : vector<8x512xf32>
    %43 = vector.extract_strided_slice %42 {offsets = [0, 0], sizes = [8, 128], strides = [1, 1]} : vector<8x512xf32> to vector<8x128xf32>
    %44 = arith.negf %43 : vector<8x128xf32>
    %45 = math.exp %44 : vector<8x128xf32>
    %cst_23 = arith.constant 1.000000e+00 : f32
    %46 = vector.broadcast %cst_23 : f32 to vector<8x128xf32>
    %47 = arith.addf %46, %45 : vector<8x128xf32>
    %48 = arith.divf %46, %47 : vector<8x128xf32>
    %49 = vector.extract_strided_slice %42 {offsets = [0, 128], sizes = [8, 128], strides = [1, 1]} : vector<8x512xf32> to vector<8x128xf32>
    %50 = arith.negf %49 : vector<8x128xf32>
    %51 = math.exp %50 : vector<8x128xf32>
    %cst_24 = arith.constant 1.000000e+00 : f32
    %52 = vector.broadcast %cst_24 : f32 to vector<8x128xf32>
    %53 = arith.addf %52, %51 : vector<8x128xf32>
    %54 = arith.divf %52, %53 : vector<8x128xf32>
    %55 = vector.extract_strided_slice %42 {offsets = [0, 256], sizes = [8, 128], strides = [1, 1]} : vector<8x512xf32> to vector<8x128xf32>
    %56 = math.tanh %55 : vector<8x128xf32>
    %57 = vector.extract_strided_slice %42 {offsets = [0, 384], sizes = [8, 128], strides = [1, 1]} : vector<8x512xf32> to vector<8x128xf32>
    %58 = arith.negf %57 : vector<8x128xf32>
    %59 = math.exp %58 : vector<8x128xf32>
    %cst_25 = arith.constant 1.000000e+00 : f32
    %60 = vector.broadcast %cst_25 : f32 to vector<8x128xf32>
    %61 = arith.addf %60, %59 : vector<8x128xf32>
    %62 = arith.divf %60, %61 : vector<8x128xf32>
    %63 = arith.mulf %54, %35 : vector<8x128xf32>
    %64 = arith.mulf %48, %56 : vector<8x128xf32>
    %65 = arith.addf %63, %64 : vector<8x128xf32>
    %66 = math.tanh %65 : vector<8x128xf32>
    %67 = arith.mulf %62, %66 : vector<8x128xf32>
    %c8_26 = arith.constant 8 : index
    %c0_27 = arith.constant 0 : index
    %68 = vector.load %arg12[%c8_26, %c0_27] : memref<64x128xf32, #tpu.memory_space<vmem>>, vector<8x128xf32>
    tpu.vector_store %arg12[%c8_26, %c0_27], %67 {strides = array<i32>} : memref<64x128xf32, #tpu.memory_space<vmem>>, vector<8x128xf32>,
    %c16 = arith.constant 16 : index
    %c0_28 = arith.constant 0 : index
    %69 = vector.load %arg11[%c16, %c0_28] : memref<64x512xf32, #tpu.memory_space<vmem>>, vector<8x512xf32>
    %c0_29 = arith.constant 0 : index
    %c0_30 = arith.constant 0 : index
    %70 = vector.load %arg3[%c0_29, %c0_30] : memref<128x512xf32, #tpu.memory_space<vmem>>, vector<128x512xf32>
    %cst_31 = arith.constant dense<0.000000e+00> : vector<8x512xf32>
    %71 = tpu.matmul %67, %70, %cst_31 {dimension_numbers = #tpu.dot_dimension_numbers<[1], [0], [0], [1], [0, 0, 1, 1], [], []>} : vector<8x128xf32>, vector<128x512xf32>, vector<8x512xf32> -> vector<8x512xf32>
    %72 = arith.addf %69, %71 : vector<8x512xf32>
    %73 = vector.extract_strided_slice %72 {offsets = [0, 0], sizes = [8, 128], strides = [1, 1]} : vector<8x512xf32> to vector<8x128xf32>
    %74 = arith.negf %73 : vector<8x128xf32>
    %75 = math.exp %74 : vector<8x128xf32>
    %cst_32 = arith.constant 1.000000e+00 : f32
    %76 = vector.broadcast %cst_32 : f32 to vector<8x128xf32>
    %77 = arith.addf %76, %75 : vector<8x128xf32>
    %78 = arith.divf %76, %77 : vector<8x128xf32>
    %79 = vector.extract_strided_slice %72 {offsets = [0, 128], sizes = [8, 128], strides = [1, 1]} : vector<8x512xf32> to vector<8x128xf32>
    %80 = arith.negf %79 : vector<8x128xf32>
    %81 = math.exp %80 : vector<8x128xf32>
    %cst_33 = arith.constant 1.000000e+00 : f32
    %82 = vector.broadcast %cst_33 : f32 to vector<8x128xf32>
    %83 = arith.addf %82, %81 : vector<8x128xf32>
    %84 = arith.divf %82, %83 : vector<8x128xf32>
    %85 = vector.extract_strided_slice %72 {offsets = [0, 256], sizes = [8, 128], strides = [1, 1]} : vector<8x512xf32> to vector<8x128xf32>
    %86 = math.tanh %85 : vector<8x128xf32>
    %87 = vector.extract_strided_slice %72 {offsets = [0, 384], sizes = [8, 128], strides = [1, 1]} : vector<8x512xf32> to vector<8x128xf32>
    %88 = arith.negf %87 : vector<8x128xf32>
    %89 = math.exp %88 : vector<8x128xf32>
    %cst_34 = arith.constant 1.000000e+00 : f32
    %90 = vector.broadcast %cst_34 : f32 to vector<8x128xf32>
    %91 = arith.addf %90, %89 : vector<8x128xf32>
    %92 = arith.divf %90, %91 : vector<8x128xf32>
    %93 = arith.mulf %84, %65 : vector<8x128xf32>
    %94 = arith.mulf %78, %86 : vector<8x128xf32>
    %95 = arith.addf %93, %94 : vector<8x128xf32>
    %96 = math.tanh %95 : vector<8x128xf32>
    %97 = arith.mulf %92, %96 : vector<8x128xf32>
    %c16_35 = arith.constant 16 : index
    %c0_36 = arith.constant 0 : index
    %98 = vector.load %arg12[%c16_35, %c0_36] : memref<64x128xf32, #tpu.memory_space<vmem>>, vector<8x128xf32>
    tpu.vector_store %arg12[%c16_35, %c0_36], %97 {strides = array<i32>} : memref<64x128xf32, #tpu.memory_space<vmem>>, vector<8x128xf32>,
    %c24 = arith.constant 24 : index
    %c0_37 = arith.constant 0 : index
    %99 = vector.load %arg11[%c24, %c0_37] : memref<64x512xf32, #tpu.memory_space<vmem>>, vector<8x512xf32>
    %c0_38 = arith.constant 0 : index
    %c0_39 = arith.constant 0 : index
    %100 = vector.load %arg3[%c0_38, %c0_39] : memref<128x512xf32, #tpu.memory_space<vmem>>, vector<128x512xf32>
    %cst_40 = arith.constant dense<0.000000e+00> : vector<8x512xf32>
    %101 = tpu.matmul %97, %100, %cst_40 {dimension_numbers = #tpu.dot_dimension_numbers<[1], [0], [0], [1], [0, 0, 1, 1], [], []>} : vector<8x128xf32>, vector<128x512xf32>, vector<8x512xf32> -> vector<8x512xf32>
    %102 = arith.addf %99, %101 : vector<8x512xf32>
    %103 = vector.extract_strided_slice %102 {offsets = [0, 0], sizes = [8, 128], strides = [1, 1]} : vector<8x512xf32> to vector<8x128xf32>
    %104 = arith.negf %103 : vector<8x128xf32>
    %105 = math.exp %104 : vector<8x128xf32>
    %cst_41 = arith.constant 1.000000e+00 : f32
    %106 = vector.broadcast %cst_41 : f32 to vector<8x128xf32>
    %107 = arith.addf %106, %105 : vector<8x128xf32>
    %108 = arith.divf %106, %107 : vector<8x128xf32>
    %109 = vector.extract_strided_slice %102 {offsets = [0, 128], sizes = [8, 128], strides = [1, 1]} : vector<8x512xf32> to vector<8x128xf32>
    %110 = arith.negf %109 : vector<8x128xf32>
    %111 = math.exp %110 : vector<8x128xf32>
    %cst_42 = arith.constant 1.000000e+00 : f32
    %112 = vector.broadcast %cst_42 : f32 to vector<8x128xf32>
    %113 = arith.addf %112, %111 : vector<8x128xf32>
    %114 = arith.divf %112, %113 : vector<8x128xf32>
    %115 = vector.extract_strided_slice %102 {offsets = [0, 256], sizes = [8, 128], strides = [1, 1]} : vector<8x512xf32> to vector<8x128xf32>
    %116 = math.tanh %115 : vector<8x128xf32>
    %117 = vector.extract_strided_slice %102 {offsets = [0, 384], sizes = [8, 128], strides = [1, 1]} : vector<8x512xf32> to vector<8x128xf32>
    %118 = arith.negf %117 : vector<8x128xf32>
    %119 = math.exp %118 : vector<8x128xf32>
    %cst_43 = arith.constant 1.000000e+00 : f32
    %120 = vector.broadcast %cst_43 : f32 to vector<8x128xf32>
    %121 = arith.addf %120, %119 : vector<8x128xf32>
    %122 = arith.divf %120, %121 : vector<8x128xf32>
    %123 = arith.mulf %114, %95 : vector<8x128xf32>
    %124 = arith.mulf %108, %116 : vector<8x128xf32>
    %125 = arith.addf %123, %124 : vector<8x128xf32>
    %126 = math.tanh %125 : vector<8x128xf32>
    %127 = arith.mulf %122, %126 : vector<8x128xf32>
    %c24_44 = arith.constant 24 : index
    %c0_45 = arith.constant 0 : index
    %128 = vector.load %arg12[%c24_44, %c0_45] : memref<64x128xf32, #tpu.memory_space<vmem>>, vector<8x128xf32>
    tpu.vector_store %arg12[%c24_44, %c0_45], %127 {strides = array<i32>} : memref<64x128xf32, #tpu.memory_space<vmem>>, vector<8x128xf32>,
    %c32 = arith.constant 32 : index
    %c0_46 = arith.constant 0 : index
    %129 = vector.load %arg11[%c32, %c0_46] : memref<64x512xf32, #tpu.memory_space<vmem>>, vector<8x512xf32>
    %c0_47 = arith.constant 0 : index
    %c0_48 = arith.constant 0 : index
    %130 = vector.load %arg3[%c0_47, %c0_48] : memref<128x512xf32, #tpu.memory_space<vmem>>, vector<128x512xf32>
    %cst_49 = arith.constant dense<0.000000e+00> : vector<8x512xf32>
    %131 = tpu.matmul %127, %130, %cst_49 {dimension_numbers = #tpu.dot_dimension_numbers<[1], [0], [0], [1], [0, 0, 1, 1], [], []>} : vector<8x128xf32>, vector<128x512xf32>, vector<8x512xf32> -> vector<8x512xf32>
    %132 = arith.addf %129, %131 : vector<8x512xf32>
    %133 = vector.extract_strided_slice %132 {offsets = [0, 0], sizes = [8, 128], strides = [1, 1]} : vector<8x512xf32> to vector<8x128xf32>
    %134 = arith.negf %133 : vector<8x128xf32>
    %135 = math.exp %134 : vector<8x128xf32>
    %cst_50 = arith.constant 1.000000e+00 : f32
    %136 = vector.broadcast %cst_50 : f32 to vector<8x128xf32>
    %137 = arith.addf %136, %135 : vector<8x128xf32>
    %138 = arith.divf %136, %137 : vector<8x128xf32>
    %139 = vector.extract_strided_slice %132 {offsets = [0, 128], sizes = [8, 128], strides = [1, 1]} : vector<8x512xf32> to vector<8x128xf32>
    %140 = arith.negf %139 : vector<8x128xf32>
    %141 = math.exp %140 : vector<8x128xf32>
    %cst_51 = arith.constant 1.000000e+00 : f32
    %142 = vector.broadcast %cst_51 : f32 to vector<8x128xf32>
    %143 = arith.addf %142, %141 : vector<8x128xf32>
    %144 = arith.divf %142, %143 : vector<8x128xf32>
    %145 = vector.extract_strided_slice %132 {offsets = [0, 256], sizes = [8, 128], strides = [1, 1]} : vector<8x512xf32> to vector<8x128xf32>
    %146 = math.tanh %145 : vector<8x128xf32>
    %147 = vector.extract_strided_slice %132 {offsets = [0, 384], sizes = [8, 128], strides = [1, 1]} : vector<8x512xf32> to vector<8x128xf32>
    %148 = arith.negf %147 : vector<8x128xf32>
    %149 = math.exp %148 : vector<8x128xf32>
    %cst_52 = arith.constant 1.000000e+00 : f32
    %150 = vector.broadcast %cst_52 : f32 to vector<8x128xf32>
    %151 = arith.addf %150, %149 : vector<8x128xf32>
    %152 = arith.divf %150, %151 : vector<8x128xf32>
    %153 = arith.mulf %144, %125 : vector<8x128xf32>
    %154 = arith.mulf %138, %146 : vector<8x128xf32>
    %155 = arith.addf %153, %154 : vector<8x128xf32>
    %156 = math.tanh %155 : vector<8x128xf32>
    %157 = arith.mulf %152, %156 : vector<8x128xf32>
    %c32_53 = arith.constant 32 : index
    %c0_54 = arith.constant 0 : index
    %158 = vector.load %arg12[%c32_53, %c0_54] : memref<64x128xf32, #tpu.memory_space<vmem>>, vector<8x128xf32>
    tpu.vector_store %arg12[%c32_53, %c0_54], %157 {strides = array<i32>} : memref<64x128xf32, #tpu.memory_space<vmem>>, vector<8x128xf32>,
    %c40 = arith.constant 40 : index
    %c0_55 = arith.constant 0 : index
    %159 = vector.load %arg11[%c40, %c0_55] : memref<64x512xf32, #tpu.memory_space<vmem>>, vector<8x512xf32>
    %c0_56 = arith.constant 0 : index
    %c0_57 = arith.constant 0 : index
    %160 = vector.load %arg3[%c0_56, %c0_57] : memref<128x512xf32, #tpu.memory_space<vmem>>, vector<128x512xf32>
    %cst_58 = arith.constant dense<0.000000e+00> : vector<8x512xf32>
    %161 = tpu.matmul %157, %160, %cst_58 {dimension_numbers = #tpu.dot_dimension_numbers<[1], [0], [0], [1], [0, 0, 1, 1], [], []>} : vector<8x128xf32>, vector<128x512xf32>, vector<8x512xf32> -> vector<8x512xf32>
    %162 = arith.addf %159, %161 : vector<8x512xf32>
    %163 = vector.extract_strided_slice %162 {offsets = [0, 0], sizes = [8, 128], strides = [1, 1]} : vector<8x512xf32> to vector<8x128xf32>
    %164 = arith.negf %163 : vector<8x128xf32>
    %165 = math.exp %164 : vector<8x128xf32>
    %cst_59 = arith.constant 1.000000e+00 : f32
    %166 = vector.broadcast %cst_59 : f32 to vector<8x128xf32>
    %167 = arith.addf %166, %165 : vector<8x128xf32>
    %168 = arith.divf %166, %167 : vector<8x128xf32>
    %169 = vector.extract_strided_slice %162 {offsets = [0, 128], sizes = [8, 128], strides = [1, 1]} : vector<8x512xf32> to vector<8x128xf32>
    %170 = arith.negf %169 : vector<8x128xf32>
    %171 = math.exp %170 : vector<8x128xf32>
    %cst_60 = arith.constant 1.000000e+00 : f32
    %172 = vector.broadcast %cst_60 : f32 to vector<8x128xf32>
    %173 = arith.addf %172, %171 : vector<8x128xf32>
    %174 = arith.divf %172, %173 : vector<8x128xf32>
    %175 = vector.extract_strided_slice %162 {offsets = [0, 256], sizes = [8, 128], strides = [1, 1]} : vector<8x512xf32> to vector<8x128xf32>
    %176 = math.tanh %175 : vector<8x128xf32>
    %177 = vector.extract_strided_slice %162 {offsets = [0, 384], sizes = [8, 128], strides = [1, 1]} : vector<8x512xf32> to vector<8x128xf32>
    %178 = arith.negf %177 : vector<8x128xf32>
    %179 = math.exp %178 : vector<8x128xf32>
    %cst_61 = arith.constant 1.000000e+00 : f32
    %180 = vector.broadcast %cst_61 : f32 to vector<8x128xf32>
    %181 = arith.addf %180, %179 : vector<8x128xf32>
    %182 = arith.divf %180, %181 : vector<8x128xf32>
    %183 = arith.mulf %174, %155 : vector<8x128xf32>
    %184 = arith.mulf %168, %176 : vector<8x128xf32>
    %185 = arith.addf %183, %184 : vector<8x128xf32>
    %186 = math.tanh %185 : vector<8x128xf32>
    %187 = arith.mulf %182, %186 : vector<8x128xf32>
    %c40_62 = arith.constant 40 : index
    %c0_63 = arith.constant 0 : index
    %188 = vector.load %arg12[%c40_62, %c0_63] : memref<64x128xf32, #tpu.memory_space<vmem>>, vector<8x128xf32>
    tpu.vector_store %arg12[%c40_62, %c0_63], %187 {strides = array<i32>} : memref<64x128xf32, #tpu.memory_space<vmem>>, vector<8x128xf32>,
    %c48 = arith.constant 48 : index
    %c0_64 = arith.constant 0 : index
    %189 = vector.load %arg11[%c48, %c0_64] : memref<64x512xf32, #tpu.memory_space<vmem>>, vector<8x512xf32>
    %c0_65 = arith.constant 0 : index
    %c0_66 = arith.constant 0 : index
    %190 = vector.load %arg3[%c0_65, %c0_66] : memref<128x512xf32, #tpu.memory_space<vmem>>, vector<128x512xf32>
    %cst_67 = arith.constant dense<0.000000e+00> : vector<8x512xf32>
    %191 = tpu.matmul %187, %190, %cst_67 {dimension_numbers = #tpu.dot_dimension_numbers<[1], [0], [0], [1], [0, 0, 1, 1], [], []>} : vector<8x128xf32>, vector<128x512xf32>, vector<8x512xf32> -> vector<8x512xf32>
    %192 = arith.addf %189, %191 : vector<8x512xf32>
    %193 = vector.extract_strided_slice %192 {offsets = [0, 0], sizes = [8, 128], strides = [1, 1]} : vector<8x512xf32> to vector<8x128xf32>
    %194 = arith.negf %193 : vector<8x128xf32>
    %195 = math.exp %194 : vector<8x128xf32>
    %cst_68 = arith.constant 1.000000e+00 : f32
    %196 = vector.broadcast %cst_68 : f32 to vector<8x128xf32>
    %197 = arith.addf %196, %195 : vector<8x128xf32>
    %198 = arith.divf %196, %197 : vector<8x128xf32>
    %199 = vector.extract_strided_slice %192 {offsets = [0, 128], sizes = [8, 128], strides = [1, 1]} : vector<8x512xf32> to vector<8x128xf32>
    %200 = arith.negf %199 : vector<8x128xf32>
    %201 = math.exp %200 : vector<8x128xf32>
    %cst_69 = arith.constant 1.000000e+00 : f32
    %202 = vector.broadcast %cst_69 : f32 to vector<8x128xf32>
    %203 = arith.addf %202, %201 : vector<8x128xf32>
    %204 = arith.divf %202, %203 : vector<8x128xf32>
    %205 = vector.extract_strided_slice %192 {offsets = [0, 256], sizes = [8, 128], strides = [1, 1]} : vector<8x512xf32> to vector<8x128xf32>
    %206 = math.tanh %205 : vector<8x128xf32>
    %207 = vector.extract_strided_slice %192 {offsets = [0, 384], sizes = [8, 128], strides = [1, 1]} : vector<8x512xf32> to vector<8x128xf32>
    %208 = arith.negf %207 : vector<8x128xf32>
    %209 = math.exp %208 : vector<8x128xf32>
    %cst_70 = arith.constant 1.000000e+00 : f32
    %210 = vector.broadcast %cst_70 : f32 to vector<8x128xf32>
    %211 = arith.addf %210, %209 : vector<8x128xf32>
    %212 = arith.divf %210, %211 : vector<8x128xf32>
    %213 = arith.mulf %204, %185 : vector<8x128xf32>
    %214 = arith.mulf %198, %206 : vector<8x128xf32>
    %215 = arith.addf %213, %214 : vector<8x128xf32>
    %216 = math.tanh %215 : vector<8x128xf32>
    %217 = arith.mulf %212, %216 : vector<8x128xf32>
    %c48_71 = arith.constant 48 : index
    %c0_72 = arith.constant 0 : index
    %218 = vector.load %arg12[%c48_71, %c0_72] : memref<64x128xf32, #tpu.memory_space<vmem>>, vector<8x128xf32>
    tpu.vector_store %arg12[%c48_71, %c0_72], %217 {strides = array<i32>} : memref<64x128xf32, #tpu.memory_space<vmem>>, vector<8x128xf32>,
    %c56 = arith.constant 56 : index
    %c0_73 = arith.constant 0 : index
    %219 = vector.load %arg11[%c56, %c0_73] : memref<64x512xf32, #tpu.memory_space<vmem>>, vector<8x512xf32>
    %c0_74 = arith.constant 0 : index
    %c0_75 = arith.constant 0 : index
    %220 = vector.load %arg3[%c0_74, %c0_75] : memref<128x512xf32, #tpu.memory_space<vmem>>, vector<128x512xf32>
    %cst_76 = arith.constant dense<0.000000e+00> : vector<8x512xf32>
    %221 = tpu.matmul %217, %220, %cst_76 {dimension_numbers = #tpu.dot_dimension_numbers<[1], [0], [0], [1], [0, 0, 1, 1], [], []>} : vector<8x128xf32>, vector<128x512xf32>, vector<8x512xf32> -> vector<8x512xf32>
    %222 = arith.addf %219, %221 : vector<8x512xf32>
    %223 = vector.extract_strided_slice %222 {offsets = [0, 0], sizes = [8, 128], strides = [1, 1]} : vector<8x512xf32> to vector<8x128xf32>
    %224 = arith.negf %223 : vector<8x128xf32>
    %225 = math.exp %224 : vector<8x128xf32>
    %cst_77 = arith.constant 1.000000e+00 : f32
    %226 = vector.broadcast %cst_77 : f32 to vector<8x128xf32>
    %227 = arith.addf %226, %225 : vector<8x128xf32>
    %228 = arith.divf %226, %227 : vector<8x128xf32>
    %229 = vector.extract_strided_slice %222 {offsets = [0, 128], sizes = [8, 128], strides = [1, 1]} : vector<8x512xf32> to vector<8x128xf32>
    %230 = arith.negf %229 : vector<8x128xf32>
    %231 = math.exp %230 : vector<8x128xf32>
    %cst_78 = arith.constant 1.000000e+00 : f32
    %232 = vector.broadcast %cst_78 : f32 to vector<8x128xf32>
    %233 = arith.addf %232, %231 : vector<8x128xf32>
    %234 = arith.divf %232, %233 : vector<8x128xf32>
    %235 = vector.extract_strided_slice %222 {offsets = [0, 256], sizes = [8, 128], strides = [1, 1]} : vector<8x512xf32> to vector<8x128xf32>
    %236 = math.tanh %235 : vector<8x128xf32>
    %237 = vector.extract_strided_slice %222 {offsets = [0, 384], sizes = [8, 128], strides = [1, 1]} : vector<8x512xf32> to vector<8x128xf32>
    %238 = arith.negf %237 : vector<8x128xf32>
    %239 = math.exp %238 : vector<8x128xf32>
    %cst_79 = arith.constant 1.000000e+00 : f32
    %240 = vector.broadcast %cst_79 : f32 to vector<8x128xf32>
    %241 = arith.addf %240, %239 : vector<8x128xf32>
    %242 = arith.divf %240, %241 : vector<8x128xf32>
    %243 = arith.mulf %234, %215 : vector<8x128xf32>
    %244 = arith.mulf %228, %236 : vector<8x128xf32>
    %245 = arith.addf %243, %244 : vector<8x128xf32>
    %246 = math.tanh %245 : vector<8x128xf32>
    %247 = arith.mulf %242, %246 : vector<8x128xf32>
    %c56_80 = arith.constant 56 : index
    %c0_81 = arith.constant 0 : index
    %248 = vector.load %arg12[%c56_80, %c0_81] : memref<64x128xf32, #tpu.memory_space<vmem>>, vector<8x128xf32>
    tpu.vector_store %arg12[%c56_80, %c0_81], %247 {strides = array<i32>} : memref<64x128xf32, #tpu.memory_space<vmem>>, vector<8x128xf32>,
    %c0_82 = arith.constant 0 : index
    %c0_83 = arith.constant 0 : index
    %249 = vector.load %arg12[%c0_82, %c0_83] : memref<64x128xf32, #tpu.memory_space<vmem>>, vector<64x128xf32>
    %c0_84 = arith.constant 0 : index
    %c0_85 = arith.constant 0 : index
    %250 = vector.load %arg5[%c0_84, %c0_85] : memref<128x512xf32, #tpu.memory_space<vmem>>, vector<128x512xf32>
    %cst_86 = arith.constant dense<0.000000e+00> : vector<64x512xf32>
    %251 = tpu.matmul %249, %250, %cst_86 {dimension_numbers = #tpu.dot_dimension_numbers<[1], [0], [0], [1], [0, 0, 1, 1], [], []>} : vector<64x128xf32>, vector<128x512xf32>, vector<64x512xf32> -> vector<64x512xf32>
    %c0_87 = arith.constant 0 : index
    %c0_88 = arith.constant 0 : index
    %252 = vector.load %arg7[%c0_87, %c0_88] : memref<1x512xf32, #tpu.memory_space<vmem>>, vector<1x512xf32>
    %253 = vector.broadcast %252 : vector<1x512xf32> to vector<64x512xf32>
    %254 = arith.addf %251, %253 : vector<64x512xf32>
    %c0_89 = arith.constant 0 : index
    %c0_90 = arith.constant 0 : index
    %255 = vector.load %arg11[%c0_89, %c0_90] : memref<64x512xf32, #tpu.memory_space<vmem>>, vector<64x512xf32>
    tpu.vector_store %arg11[%c0_89, %c0_90], %254 {strides = array<i32>} : memref<64x512xf32, #tpu.memory_space<vmem>>, vector<64x512xf32>,
    %cst_91 = arith.constant 0.000000e+00 : f32
    %256 = vector.broadcast %cst_91 : f32 to vector<8x128xf32>
    %cst_92 = arith.constant 0.000000e+00 : f32
    %257 = vector.broadcast %cst_92 : f32 to vector<8x128xf32>
    %c0_93 = arith.constant 0 : index
    %c0_94 = arith.constant 0 : index
    %258 = vector.load %arg11[%c0_93, %c0_94] : memref<64x512xf32, #tpu.memory_space<vmem>>, vector<8x512xf32>
    %c0_95 = arith.constant 0 : index
    %c0_96 = arith.constant 0 : index
    %259 = vector.load %arg6[%c0_95, %c0_96] : memref<128x512xf32, #tpu.memory_space<vmem>>, vector<128x512xf32>
    %cst_97 = arith.constant dense<0.000000e+00> : vector<8x512xf32>
    %260 = tpu.matmul %256, %259, %cst_97 {dimension_numbers = #tpu.dot_dimension_numbers<[1], [0], [0], [1], [0, 0, 1, 1], [], []>} : vector<8x128xf32>, vector<128x512xf32>, vector<8x512xf32> -> vector<8x512xf32>
    %261 = arith.addf %258, %260 : vector<8x512xf32>
    %262 = vector.extract_strided_slice %261 {offsets = [0, 0], sizes = [8, 128], strides = [1, 1]} : vector<8x512xf32> to vector<8x128xf32>
    %263 = arith.negf %262 : vector<8x128xf32>
    %264 = math.exp %263 : vector<8x128xf32>
    %cst_98 = arith.constant 1.000000e+00 : f32
    %265 = vector.broadcast %cst_98 : f32 to vector<8x128xf32>
    %266 = arith.addf %265, %264 : vector<8x128xf32>
    %267 = arith.divf %265, %266 : vector<8x128xf32>
    %268 = vector.extract_strided_slice %261 {offsets = [0, 128], sizes = [8, 128], strides = [1, 1]} : vector<8x512xf32> to vector<8x128xf32>
    %269 = arith.negf %268 : vector<8x128xf32>
    %270 = math.exp %269 : vector<8x128xf32>
    %cst_99 = arith.constant 1.000000e+00 : f32
    %271 = vector.broadcast %cst_99 : f32 to vector<8x128xf32>
    %272 = arith.addf %271, %270 : vector<8x128xf32>
    %273 = arith.divf %271, %272 : vector<8x128xf32>
    %274 = vector.extract_strided_slice %261 {offsets = [0, 256], sizes = [8, 128], strides = [1, 1]} : vector<8x512xf32> to vector<8x128xf32>
    %275 = math.tanh %274 : vector<8x128xf32>
    %276 = vector.extract_strided_slice %261 {offsets = [0, 384], sizes = [8, 128], strides = [1, 1]} : vector<8x512xf32> to vector<8x128xf32>
    %277 = arith.negf %276 : vector<8x128xf32>
    %278 = math.exp %277 : vector<8x128xf32>
    %cst_100 = arith.constant 1.000000e+00 : f32
    %279 = vector.broadcast %cst_100 : f32 to vector<8x128xf32>
    %280 = arith.addf %279, %278 : vector<8x128xf32>
    %281 = arith.divf %279, %280 : vector<8x128xf32>
    %282 = arith.mulf %273, %257 : vector<8x128xf32>
    %283 = arith.mulf %267, %275 : vector<8x128xf32>
    %284 = arith.addf %282, %283 : vector<8x128xf32>
    %285 = math.tanh %284 : vector<8x128xf32>
    %286 = arith.mulf %281, %285 : vector<8x128xf32>
    %c8_101 = arith.constant 8 : index
    %c0_102 = arith.constant 0 : index
    %287 = vector.load %arg11[%c8_101, %c0_102] : memref<64x512xf32, #tpu.memory_space<vmem>>, vector<8x512xf32>
    %c0_103 = arith.constant 0 : index
    %c0_104 = arith.constant 0 : index
    %288 = vector.load %arg6[%c0_103, %c0_104] : memref<128x512xf32, #tpu.memory_space<vmem>>, vector<128x512xf32>
    %cst_105 = arith.constant dense<0.000000e+00> : vector<8x512xf32>
    %289 = tpu.matmul %286, %288, %cst_105 {dimension_numbers = #tpu.dot_dimension_numbers<[1], [0], [0], [1], [0, 0, 1, 1], [], []>} : vector<8x128xf32>, vector<128x512xf32>, vector<8x512xf32> -> vector<8x512xf32>
    %290 = arith.addf %287, %289 : vector<8x512xf32>
    %291 = vector.extract_strided_slice %290 {offsets = [0, 0], sizes = [8, 128], strides = [1, 1]} : vector<8x512xf32> to vector<8x128xf32>
    %292 = arith.negf %291 : vector<8x128xf32>
    %293 = math.exp %292 : vector<8x128xf32>
    %cst_106 = arith.constant 1.000000e+00 : f32
    %294 = vector.broadcast %cst_106 : f32 to vector<8x128xf32>
    %295 = arith.addf %294, %293 : vector<8x128xf32>
    %296 = arith.divf %294, %295 : vector<8x128xf32>
    %297 = vector.extract_strided_slice %290 {offsets = [0, 128], sizes = [8, 128], strides = [1, 1]} : vector<8x512xf32> to vector<8x128xf32>
    %298 = arith.negf %297 : vector<8x128xf32>
    %299 = math.exp %298 : vector<8x128xf32>
    %cst_107 = arith.constant 1.000000e+00 : f32
    %300 = vector.broadcast %cst_107 : f32 to vector<8x128xf32>
    %301 = arith.addf %300, %299 : vector<8x128xf32>
    %302 = arith.divf %300, %301 : vector<8x128xf32>
    %303 = vector.extract_strided_slice %290 {offsets = [0, 256], sizes = [8, 128], strides = [1, 1]} : vector<8x512xf32> to vector<8x128xf32>
    %304 = math.tanh %303 : vector<8x128xf32>
    %305 = vector.extract_strided_slice %290 {offsets = [0, 384], sizes = [8, 128], strides = [1, 1]} : vector<8x512xf32> to vector<8x128xf32>
    %306 = arith.negf %305 : vector<8x128xf32>
    %307 = math.exp %306 : vector<8x128xf32>
    %cst_108 = arith.constant 1.000000e+00 : f32
    %308 = vector.broadcast %cst_108 : f32 to vector<8x128xf32>
    %309 = arith.addf %308, %307 : vector<8x128xf32>
    %310 = arith.divf %308, %309 : vector<8x128xf32>
    %311 = arith.mulf %302, %284 : vector<8x128xf32>
    %312 = arith.mulf %296, %304 : vector<8x128xf32>
    %313 = arith.addf %311, %312 : vector<8x128xf32>
    %314 = math.tanh %313 : vector<8x128xf32>
    %315 = arith.mulf %310, %314 : vector<8x128xf32>
    %c16_109 = arith.constant 16 : index
    %c0_110 = arith.constant 0 : index
    %316 = vector.load %arg11[%c16_109, %c0_110] : memref<64x512xf32, #tpu.memory_space<vmem>>, vector<8x512xf32>
    %c0_111 = arith.constant 0 : index
    %c0_112 = arith.constant 0 : index
    %317 = vector.load %arg6[%c0_111, %c0_112] : memref<128x512xf32, #tpu.memory_space<vmem>>, vector<128x512xf32>
    %cst_113 = arith.constant dense<0.000000e+00> : vector<8x512xf32>
    %318 = tpu.matmul %315, %317, %cst_113 {dimension_numbers = #tpu.dot_dimension_numbers<[1], [0], [0], [1], [0, 0, 1, 1], [], []>} : vector<8x128xf32>, vector<128x512xf32>, vector<8x512xf32> -> vector<8x512xf32>
    %319 = arith.addf %316, %318 : vector<8x512xf32>
    %320 = vector.extract_strided_slice %319 {offsets = [0, 0], sizes = [8, 128], strides = [1, 1]} : vector<8x512xf32> to vector<8x128xf32>
    %321 = arith.negf %320 : vector<8x128xf32>
    %322 = math.exp %321 : vector<8x128xf32>
    %cst_114 = arith.constant 1.000000e+00 : f32
    %323 = vector.broadcast %cst_114 : f32 to vector<8x128xf32>
    %324 = arith.addf %323, %322 : vector<8x128xf32>
    %325 = arith.divf %323, %324 : vector<8x128xf32>
    %326 = vector.extract_strided_slice %319 {offsets = [0, 128], sizes = [8, 128], strides = [1, 1]} : vector<8x512xf32> to vector<8x128xf32>
    %327 = arith.negf %326 : vector<8x128xf32>
    %328 = math.exp %327 : vector<8x128xf32>
    %cst_115 = arith.constant 1.000000e+00 : f32
    %329 = vector.broadcast %cst_115 : f32 to vector<8x128xf32>
    %330 = arith.addf %329, %328 : vector<8x128xf32>
    %331 = arith.divf %329, %330 : vector<8x128xf32>
    %332 = vector.extract_strided_slice %319 {offsets = [0, 256], sizes = [8, 128], strides = [1, 1]} : vector<8x512xf32> to vector<8x128xf32>
    %333 = math.tanh %332 : vector<8x128xf32>
    %334 = vector.extract_strided_slice %319 {offsets = [0, 384], sizes = [8, 128], strides = [1, 1]} : vector<8x512xf32> to vector<8x128xf32>
    %335 = arith.negf %334 : vector<8x128xf32>
    %336 = math.exp %335 : vector<8x128xf32>
    %cst_116 = arith.constant 1.000000e+00 : f32
    %337 = vector.broadcast %cst_116 : f32 to vector<8x128xf32>
    %338 = arith.addf %337, %336 : vector<8x128xf32>
    %339 = arith.divf %337, %338 : vector<8x128xf32>
    %340 = arith.mulf %331, %313 : vector<8x128xf32>
    %341 = arith.mulf %325, %333 : vector<8x128xf32>
    %342 = arith.addf %340, %341 : vector<8x128xf32>
    %343 = math.tanh %342 : vector<8x128xf32>
    %344 = arith.mulf %339, %343 : vector<8x128xf32>
    %c24_117 = arith.constant 24 : index
    %c0_118 = arith.constant 0 : index
    %345 = vector.load %arg11[%c24_117, %c0_118] : memref<64x512xf32, #tpu.memory_space<vmem>>, vector<8x512xf32>
    %c0_119 = arith.constant 0 : index
    %c0_120 = arith.constant 0 : index
    %346 = vector.load %arg6[%c0_119, %c0_120] : memref<128x512xf32, #tpu.memory_space<vmem>>, vector<128x512xf32>
    %cst_121 = arith.constant dense<0.000000e+00> : vector<8x512xf32>
    %347 = tpu.matmul %344, %346, %cst_121 {dimension_numbers = #tpu.dot_dimension_numbers<[1], [0], [0], [1], [0, 0, 1, 1], [], []>} : vector<8x128xf32>, vector<128x512xf32>, vector<8x512xf32> -> vector<8x512xf32>
    %348 = arith.addf %345, %347 : vector<8x512xf32>
    %349 = vector.extract_strided_slice %348 {offsets = [0, 0], sizes = [8, 128], strides = [1, 1]} : vector<8x512xf32> to vector<8x128xf32>
    %350 = arith.negf %349 : vector<8x128xf32>
    %351 = math.exp %350 : vector<8x128xf32>
    %cst_122 = arith.constant 1.000000e+00 : f32
    %352 = vector.broadcast %cst_122 : f32 to vector<8x128xf32>
    %353 = arith.addf %352, %351 : vector<8x128xf32>
    %354 = arith.divf %352, %353 : vector<8x128xf32>
    %355 = vector.extract_strided_slice %348 {offsets = [0, 128], sizes = [8, 128], strides = [1, 1]} : vector<8x512xf32> to vector<8x128xf32>
    %356 = arith.negf %355 : vector<8x128xf32>
    %357 = math.exp %356 : vector<8x128xf32>
    %cst_123 = arith.constant 1.000000e+00 : f32
    %358 = vector.broadcast %cst_123 : f32 to vector<8x128xf32>
    %359 = arith.addf %358, %357 : vector<8x128xf32>
    %360 = arith.divf %358, %359 : vector<8x128xf32>
    %361 = vector.extract_strided_slice %348 {offsets = [0, 256], sizes = [8, 128], strides = [1, 1]} : vector<8x512xf32> to vector<8x128xf32>
    %362 = math.tanh %361 : vector<8x128xf32>
    %363 = vector.extract_strided_slice %348 {offsets = [0, 384], sizes = [8, 128], strides = [1, 1]} : vector<8x512xf32> to vector<8x128xf32>
    %364 = arith.negf %363 : vector<8x128xf32>
    %365 = math.exp %364 : vector<8x128xf32>
    %cst_124 = arith.constant 1.000000e+00 : f32
    %366 = vector.broadcast %cst_124 : f32 to vector<8x128xf32>
    %367 = arith.addf %366, %365 : vector<8x128xf32>
    %368 = arith.divf %366, %367 : vector<8x128xf32>
    %369 = arith.mulf %360, %342 : vector<8x128xf32>
    %370 = arith.mulf %354, %362 : vector<8x128xf32>
    %371 = arith.addf %369, %370 : vector<8x128xf32>
    %372 = math.tanh %371 : vector<8x128xf32>
    %373 = arith.mulf %368, %372 : vector<8x128xf32>
    %c32_125 = arith.constant 32 : index
    %c0_126 = arith.constant 0 : index
    %374 = vector.load %arg11[%c32_125, %c0_126] : memref<64x512xf32, #tpu.memory_space<vmem>>, vector<8x512xf32>
    %c0_127 = arith.constant 0 : index
    %c0_128 = arith.constant 0 : index
    %375 = vector.load %arg6[%c0_127, %c0_128] : memref<128x512xf32, #tpu.memory_space<vmem>>, vector<128x512xf32>
    %cst_129 = arith.constant dense<0.000000e+00> : vector<8x512xf32>
    %376 = tpu.matmul %373, %375, %cst_129 {dimension_numbers = #tpu.dot_dimension_numbers<[1], [0], [0], [1], [0, 0, 1, 1], [], []>} : vector<8x128xf32>, vector<128x512xf32>, vector<8x512xf32> -> vector<8x512xf32>
    %377 = arith.addf %374, %376 : vector<8x512xf32>
    %378 = vector.extract_strided_slice %377 {offsets = [0, 0], sizes = [8, 128], strides = [1, 1]} : vector<8x512xf32> to vector<8x128xf32>
    %379 = arith.negf %378 : vector<8x128xf32>
    %380 = math.exp %379 : vector<8x128xf32>
    %cst_130 = arith.constant 1.000000e+00 : f32
    %381 = vector.broadcast %cst_130 : f32 to vector<8x128xf32>
    %382 = arith.addf %381, %380 : vector<8x128xf32>
    %383 = arith.divf %381, %382 : vector<8x128xf32>
    %384 = vector.extract_strided_slice %377 {offsets = [0, 128], sizes = [8, 128], strides = [1, 1]} : vector<8x512xf32> to vector<8x128xf32>
    %385 = arith.negf %384 : vector<8x128xf32>
    %386 = math.exp %385 : vector<8x128xf32>
    %cst_131 = arith.constant 1.000000e+00 : f32
    %387 = vector.broadcast %cst_131 : f32 to vector<8x128xf32>
    %388 = arith.addf %387, %386 : vector<8x128xf32>
    %389 = arith.divf %387, %388 : vector<8x128xf32>
    %390 = vector.extract_strided_slice %377 {offsets = [0, 256], sizes = [8, 128], strides = [1, 1]} : vector<8x512xf32> to vector<8x128xf32>
    %391 = math.tanh %390 : vector<8x128xf32>
    %392 = vector.extract_strided_slice %377 {offsets = [0, 384], sizes = [8, 128], strides = [1, 1]} : vector<8x512xf32> to vector<8x128xf32>
    %393 = arith.negf %392 : vector<8x128xf32>
    %394 = math.exp %393 : vector<8x128xf32>
    %cst_132 = arith.constant 1.000000e+00 : f32
    %395 = vector.broadcast %cst_132 : f32 to vector<8x128xf32>
    %396 = arith.addf %395, %394 : vector<8x128xf32>
    %397 = arith.divf %395, %396 : vector<8x128xf32>
    %398 = arith.mulf %389, %371 : vector<8x128xf32>
    %399 = arith.mulf %383, %391 : vector<8x128xf32>
    %400 = arith.addf %398, %399 : vector<8x128xf32>
    %401 = math.tanh %400 : vector<8x128xf32>
    %402 = arith.mulf %397, %401 : vector<8x128xf32>
    %c40_133 = arith.constant 40 : index
    %c0_134 = arith.constant 0 : index
    %403 = vector.load %arg11[%c40_133, %c0_134] : memref<64x512xf32, #tpu.memory_space<vmem>>, vector<8x512xf32>
    %c0_135 = arith.constant 0 : index
    %c0_136 = arith.constant 0 : index
    %404 = vector.load %arg6[%c0_135, %c0_136] : memref<128x512xf32, #tpu.memory_space<vmem>>, vector<128x512xf32>
    %cst_137 = arith.constant dense<0.000000e+00> : vector<8x512xf32>
    %405 = tpu.matmul %402, %404, %cst_137 {dimension_numbers = #tpu.dot_dimension_numbers<[1], [0], [0], [1], [0, 0, 1, 1], [], []>} : vector<8x128xf32>, vector<128x512xf32>, vector<8x512xf32> -> vector<8x512xf32>
    %406 = arith.addf %403, %405 : vector<8x512xf32>
    %407 = vector.extract_strided_slice %406 {offsets = [0, 0], sizes = [8, 128], strides = [1, 1]} : vector<8x512xf32> to vector<8x128xf32>
    %408 = arith.negf %407 : vector<8x128xf32>
    %409 = math.exp %408 : vector<8x128xf32>
    %cst_138 = arith.constant 1.000000e+00 : f32
    %410 = vector.broadcast %cst_138 : f32 to vector<8x128xf32>
    %411 = arith.addf %410, %409 : vector<8x128xf32>
    %412 = arith.divf %410, %411 : vector<8x128xf32>
    %413 = vector.extract_strided_slice %406 {offsets = [0, 128], sizes = [8, 128], strides = [1, 1]} : vector<8x512xf32> to vector<8x128xf32>
    %414 = arith.negf %413 : vector<8x128xf32>
    %415 = math.exp %414 : vector<8x128xf32>
    %cst_139 = arith.constant 1.000000e+00 : f32
    %416 = vector.broadcast %cst_139 : f32 to vector<8x128xf32>
    %417 = arith.addf %416, %415 : vector<8x128xf32>
    %418 = arith.divf %416, %417 : vector<8x128xf32>
    %419 = vector.extract_strided_slice %406 {offsets = [0, 256], sizes = [8, 128], strides = [1, 1]} : vector<8x512xf32> to vector<8x128xf32>
    %420 = math.tanh %419 : vector<8x128xf32>
    %421 = vector.extract_strided_slice %406 {offsets = [0, 384], sizes = [8, 128], strides = [1, 1]} : vector<8x512xf32> to vector<8x128xf32>
    %422 = arith.negf %421 : vector<8x128xf32>
    %423 = math.exp %422 : vector<8x128xf32>
    %cst_140 = arith.constant 1.000000e+00 : f32
    %424 = vector.broadcast %cst_140 : f32 to vector<8x128xf32>
    %425 = arith.addf %424, %423 : vector<8x128xf32>
    %426 = arith.divf %424, %425 : vector<8x128xf32>
    %427 = arith.mulf %418, %400 : vector<8x128xf32>
    %428 = arith.mulf %412, %420 : vector<8x128xf32>
    %429 = arith.addf %427, %428 : vector<8x128xf32>
    %430 = math.tanh %429 : vector<8x128xf32>
    %431 = arith.mulf %426, %430 : vector<8x128xf32>
    %c48_141 = arith.constant 48 : index
    %c0_142 = arith.constant 0 : index
    %432 = vector.load %arg11[%c48_141, %c0_142] : memref<64x512xf32, #tpu.memory_space<vmem>>, vector<8x512xf32>
    %c0_143 = arith.constant 0 : index
    %c0_144 = arith.constant 0 : index
    %433 = vector.load %arg6[%c0_143, %c0_144] : memref<128x512xf32, #tpu.memory_space<vmem>>, vector<128x512xf32>
    %cst_145 = arith.constant dense<0.000000e+00> : vector<8x512xf32>
    %434 = tpu.matmul %431, %433, %cst_145 {dimension_numbers = #tpu.dot_dimension_numbers<[1], [0], [0], [1], [0, 0, 1, 1], [], []>} : vector<8x128xf32>, vector<128x512xf32>, vector<8x512xf32> -> vector<8x512xf32>
    %435 = arith.addf %432, %434 : vector<8x512xf32>
    %436 = vector.extract_strided_slice %435 {offsets = [0, 0], sizes = [8, 128], strides = [1, 1]} : vector<8x512xf32> to vector<8x128xf32>
    %437 = arith.negf %436 : vector<8x128xf32>
    %438 = math.exp %437 : vector<8x128xf32>
    %cst_146 = arith.constant 1.000000e+00 : f32
    %439 = vector.broadcast %cst_146 : f32 to vector<8x128xf32>
    %440 = arith.addf %439, %438 : vector<8x128xf32>
    %441 = arith.divf %439, %440 : vector<8x128xf32>
    %442 = vector.extract_strided_slice %435 {offsets = [0, 128], sizes = [8, 128], strides = [1, 1]} : vector<8x512xf32> to vector<8x128xf32>
    %443 = arith.negf %442 : vector<8x128xf32>
    %444 = math.exp %443 : vector<8x128xf32>
    %cst_147 = arith.constant 1.000000e+00 : f32
    %445 = vector.broadcast %cst_147 : f32 to vector<8x128xf32>
    %446 = arith.addf %445, %444 : vector<8x128xf32>
    %447 = arith.divf %445, %446 : vector<8x128xf32>
    %448 = vector.extract_strided_slice %435 {offsets = [0, 256], sizes = [8, 128], strides = [1, 1]} : vector<8x512xf32> to vector<8x128xf32>
    %449 = math.tanh %448 : vector<8x128xf32>
    %450 = vector.extract_strided_slice %435 {offsets = [0, 384], sizes = [8, 128], strides = [1, 1]} : vector<8x512xf32> to vector<8x128xf32>
    %451 = arith.negf %450 : vector<8x128xf32>
    %452 = math.exp %451 : vector<8x128xf32>
    %cst_148 = arith.constant 1.000000e+00 : f32
    %453 = vector.broadcast %cst_148 : f32 to vector<8x128xf32>
    %454 = arith.addf %453, %452 : vector<8x128xf32>
    %455 = arith.divf %453, %454 : vector<8x128xf32>
    %456 = arith.mulf %447, %429 : vector<8x128xf32>
    %457 = arith.mulf %441, %449 : vector<8x128xf32>
    %458 = arith.addf %456, %457 : vector<8x128xf32>
    %459 = math.tanh %458 : vector<8x128xf32>
    %460 = arith.mulf %455, %459 : vector<8x128xf32>
    %c56_149 = arith.constant 56 : index
    %c0_150 = arith.constant 0 : index
    %461 = vector.load %arg11[%c56_149, %c0_150] : memref<64x512xf32, #tpu.memory_space<vmem>>, vector<8x512xf32>
    %c0_151 = arith.constant 0 : index
    %c0_152 = arith.constant 0 : index
    %462 = vector.load %arg6[%c0_151, %c0_152] : memref<128x512xf32, #tpu.memory_space<vmem>>, vector<128x512xf32>
    %cst_153 = arith.constant dense<0.000000e+00> : vector<8x512xf32>
    %463 = tpu.matmul %460, %462, %cst_153 {dimension_numbers = #tpu.dot_dimension_numbers<[1], [0], [0], [1], [0, 0, 1, 1], [], []>} : vector<8x128xf32>, vector<128x512xf32>, vector<8x512xf32> -> vector<8x512xf32>
    %464 = arith.addf %461, %463 : vector<8x512xf32>
    %465 = vector.extract_strided_slice %464 {offsets = [0, 0], sizes = [8, 128], strides = [1, 1]} : vector<8x512xf32> to vector<8x128xf32>
    %466 = arith.negf %465 : vector<8x128xf32>
    %467 = math.exp %466 : vector<8x128xf32>
    %cst_154 = arith.constant 1.000000e+00 : f32
    %468 = vector.broadcast %cst_154 : f32 to vector<8x128xf32>
    %469 = arith.addf %468, %467 : vector<8x128xf32>
    %470 = arith.divf %468, %469 : vector<8x128xf32>
    %471 = vector.extract_strided_slice %464 {offsets = [0, 128], sizes = [8, 128], strides = [1, 1]} : vector<8x512xf32> to vector<8x128xf32>
    %472 = arith.negf %471 : vector<8x128xf32>
    %473 = math.exp %472 : vector<8x128xf32>
    %cst_155 = arith.constant 1.000000e+00 : f32
    %474 = vector.broadcast %cst_155 : f32 to vector<8x128xf32>
    %475 = arith.addf %474, %473 : vector<8x128xf32>
    %476 = arith.divf %474, %475 : vector<8x128xf32>
    %477 = vector.extract_strided_slice %464 {offsets = [0, 256], sizes = [8, 128], strides = [1, 1]} : vector<8x512xf32> to vector<8x128xf32>
    %478 = math.tanh %477 : vector<8x128xf32>
    %479 = vector.extract_strided_slice %464 {offsets = [0, 384], sizes = [8, 128], strides = [1, 1]} : vector<8x512xf32> to vector<8x128xf32>
    %480 = arith.negf %479 : vector<8x128xf32>
    %481 = math.exp %480 : vector<8x128xf32>
    %cst_156 = arith.constant 1.000000e+00 : f32
    %482 = vector.broadcast %cst_156 : f32 to vector<8x128xf32>
    %483 = arith.addf %482, %481 : vector<8x128xf32>
    %484 = arith.divf %482, %483 : vector<8x128xf32>
    %485 = arith.mulf %476, %458 : vector<8x128xf32>
    %486 = arith.mulf %470, %478 : vector<8x128xf32>
    %487 = arith.addf %485, %486 : vector<8x128xf32>
    %488 = math.tanh %487 : vector<8x128xf32>
    %489 = arith.mulf %484, %488 : vector<8x128xf32>
    %c0_157 = arith.constant 0 : index
    %c0_158 = arith.constant 0 : index
    %490 = vector.load %arg8[%c0_157, %c0_158] : memref<128x4xf32, #tpu.memory_space<vmem>>, vector<128x4xf32>
    %cst_159 = arith.constant dense<0.000000e+00> : vector<8x4xf32>
    %491 = tpu.matmul %489, %490, %cst_159 {dimension_numbers = #tpu.dot_dimension_numbers<[1], [0], [0], [1], [0, 0, 1, 1], [], []>} : vector<8x128xf32>, vector<128x4xf32>, vector<8x4xf32> -> vector<8x4xf32>
    %c0_160 = arith.constant 0 : index
    %c0_161 = arith.constant 0 : index
    %492 = vector.load %arg9[%c0_160, %c0_161] : memref<1x4xf32, #tpu.memory_space<vmem>>, vector<1x4xf32>
    %493 = vector.broadcast %492 : vector<1x4xf32> to vector<8x4xf32>
    %494 = arith.addf %491, %493 : vector<8x4xf32>
    %c0_162 = arith.constant 0 : index
    %c0_163 = arith.constant 0 : index
    %495 = vector.load %arg10[%c0_162, %c0_163] : memref<8x4xf32, #tpu.memory_space<vmem>>, vector<8x4xf32>
    tpu.vector_store %arg10[%c0_162, %c0_163], %494 {strides = array<i32>} : memref<8x4xf32, #tpu.memory_space<vmem>>, vector<8x4xf32>,
    return
  }
  func.func @transform_0(%arg0: i32) -> (i32, i32) {
    %c0_i32 = arith.constant 0 : i32
    %c0_i32_0 = arith.constant 0 : i32
    %c0_i32_1 = arith.constant 0 : i32
    return %c0_i32, %c0_i32_0 : i32, i32
  }
  func.func @transform_1(%arg0: i32) -> (i32, i32) {
    %c0_i32 = arith.constant 0 : i32
    %c0_i32_0 = arith.constant 0 : i32
    %c0_i32_1 = arith.constant 0 : i32
    return %c0_i32, %c0_i32_0 : i32, i32
  }
  func.func @transform_2(%arg0: i32) -> (i32, i32) {
    %c0_i32 = arith.constant 0 : i32
    %c0_i32_0 = arith.constant 0 : i32
    %c0_i32_1 = arith.constant 0 : i32
    return %c0_i32, %c0_i32_0 : i32, i32
  }
  func.func @transform_3(%arg0: i32) -> (i32, i32) {
    %c0_i32 = arith.constant 0 : i32
    %c0_i32_0 = arith.constant 0 : i32
    %c0_i32_1 = arith.constant 0 : i32
    return %c0_i32, %c0_i32_0 : i32, i32
  }
  func.func @transform_4(%arg0: i32) -> (i32, i32) {
    %c0_i32 = arith.constant 0 : i32
    %c0_i32_0 = arith.constant 0 : i32
    %c0_i32_1 = arith.constant 0 : i32
    return %c0_i32, %c0_i32_0 : i32, i32
  }
  func.func @transform_5(%arg0: i32) -> (i32, i32) {
    %c0_i32 = arith.constant 0 : i32
    %c0_i32_0 = arith.constant 0 : i32
    %c0_i32_1 = arith.constant 0 : i32
    return %c0_i32, %c0_i32_0 : i32, i32
  }
  func.func @transform_6(%arg0: i32) -> (i32, i32) {
    %c0_i32 = arith.constant 0 : i32
    %c0_i32_0 = arith.constant 0 : i32
    %c0_i32_1 = arith.constant 0 : i32
    return %c0_i32, %c0_i32_0 : i32, i32
  }
  func.func @transform_7(%arg0: i32) -> (i32, i32) {
    %c0_i32 = arith.constant 0 : i32
    %c0_i32_0 = arith.constant 0 : i32
    %c0_i32_1 = arith.constant 0 : i32
    return %c0_i32, %c0_i32_0 : i32, i32
  }
  func.func @transform_8(%arg0: i32) -> (i32, i32) {
    %c0_i32 = arith.constant 0 : i32
    %c0_i32_0 = arith.constant 0 : i32
    %c0_i32_1 = arith.constant 0 : i32
    return %c0_i32, %c0_i32_0 : i32, i32
  }
  func.func @transform_9(%arg0: i32) -> (i32, i32) {
    %c0_i32 = arith.constant 0 : i32
    %c0_i32_0 = arith.constant 0 : i32
    %c0_i32_1 = arith.constant 0 : i32
    return %c0_i32, %c0_i32_0 : i32, i32
  }
}

</mosaic_0001>

<bundles_post_ra>
// kernel: lstm_model_forward.1
= control target key start
LH: loop header
LB: loop body
LE: loop exit
PB: predicated region body
PF: predicated region fallthrough
CT: control target
= control target key end

     0   :  { %14 = vsyncpa [#allocation5], 0  ;;  %s7113_s0 = inlined_call_operand.vmem [shape: f32[64,16], index: 0, kind: input, shape index: {}]   ;;  %s7114_s1 = inlined_call_operand.vmem [shape: f32[16,512], index: 1, kind: input, shape index: {}]   ;;  %s7115_s2 = inlined_call_operand.hbm [shape: f32[128,512], index: 2, kind: input, shape index: {}]   ;;  %s7116_s3 = inlined_call_operand.vmem [shape: f32[1,512], index: 3, kind: input, shape index: {}]   ;;  %s7117_s4 = inlined_call_operand.hbm [shape: f32[128,512], index: 4, kind: input, shape index: {}]   ;;  %s7118_s5 = inlined_call_operand.hbm [shape: f32[128,512], index: 5, kind: input, shape index: {}]   ;;  %s7119_s6 = inlined_call_operand.vmem [shape: f32[1,512], index: 6, kind: input, shape index: {}]   ;;  %s7120_s7 = inlined_call_operand.vmem [shape: f32[128,4], index: 7, kind: input, shape index: {}]   ;;  %s7121_s8 = inlined_call_operand.vmem [shape: f32[1,4], index: 8, kind: input, shape index: {}]   ;;  %s7122_s9 = inlined_call_operand.vmem [shape: f32[8,4], index: 9, kind: output, shape index: {}]  }
   0x1   :  { %15 = vsyncpa [#allocation7], 0  ;;  %s5914_s30 = smov [#allocation6]   ;;  %s5915_s11 = smov [#allocation4]  }
   0x2   :  { %s39_s10 = sshll.u32 %s5914_s30, 4  ;;  %s25_s12 = sshll.u32 %s5915_s11, 4  ;;  %s40_s10 = int_to_ptr.vmem [resolvable:$true] %s39_s10  ;;  %s5972_s12 = int_to_ptr.vmem [resolvable:$true] %s25_s12 }
   0x3   :  { %s5844_s15 = scalar_lea.hbm %s7117_s4, 8192 }
   0x4   :  { %p5845_p0 = scmp.ne.s32.totalorder %s7117_s4, %s5844_s15  ;;  %p5848_p1 = scmp.lt.u32.totalorder %s5844_s15, %s7117_s4 }
   0x6   :  { %p5850_p2 = pnand %p5848_p1, %p5845_p0 }
   0x8   :  { %5853 = shalt.err (!%p5850_p2)
}
   0x9   :  { %s5854_s20 = scalar_lea.vmem %s40_s10, 8192  ;;  %p5859_p4 = scmp.lt.s32.totalorder %s40_s10, %s40_s10 }
   0xa   :  { %p5855_p3 = scmp.ne.s32.totalorder %s40_s10, %s5854_s20  ;;  %p5860_p5 = scmp.lt.s32.totalorder %s5854_s20, %s5854_s20 }
   0xc   :  { %p5861_p6 = por %p5860_p5, %p5859_p4 }
   0xe   :  { %p5862_p7 = pnand %p5861_p6, %p5855_p3 }
  0x10   :  { %5865 = shalt.err (!%p5862_p7)
}
  0x11   :  { %s5916_s21 = smov 512   ;;  %s5917_s22 = smov 32  }
  0x12   :  { %45 = dma.hbm_to_vmem [thread:$0]  %s7117_s4, 8192, %s40_s10, [#allocation7], %s5916_s21, %s5916_s21, %s5917_s22  }
  0x13   :  { %s5866_s27 = scalar_lea.hbm %s7115_s2, 8192 }
  0x14   :  { %p5867_p8 = scmp.ne.s32.totalorder %s7115_s2, %s5866_s27  ;;  %p5870_p9 = scmp.lt.u32.totalorder %s5866_s27, %s7115_s2 }
  0x16   :  { %p5872_p10 = pnand %p5870_p9, %p5867_p8 }
  0x18   :  { %5875 = shalt.err (!%p5872_p10)
}
  0x19   :  { %s5876_s13 = scalar_lea.vmem %s5972_s12, 8192  ;;  %p5881_p12 = scmp.lt.s32.totalorder %s5972_s12, %s5972_s12 }
  0x1a   :  { %p5877_p11 = scmp.ne.s32.totalorder %s5972_s12, %s5876_s13  ;;  %p5882_p13 = scmp.lt.s32.totalorder %s5876_s13, %s5876_s13 }
  0x1c   :  { %p5883_p0 = por %p5882_p13, %p5881_p12 }
  0x1e   :  { %p5884_p1 = pnand %p5883_p0, %p5877_p11 }
  0x20   :  { %5887 = shalt.err (!%p5884_p1)
}
  0x21   :  { %31 = dma.hbm_to_vmem [thread:$0]  %s7115_s2, 8192, %s5972_s12, [#allocation5], %s5916_s21, %s5916_s21, %s5917_s22  }
  0x22   :  { %s5918_s14 = smov [#allocation8]   ;;  %s5888_s18 = scalar_lea.hbm %s7118_s5, 8192 }
  0x23   :  { %s51_s15 = sshll.u32 %s5918_s14, 4  ;;  %p5889_p2 = scmp.ne.s32.totalorder %s7118_s5, %s5888_s18  ;;  %s52_s15 = int_to_ptr.vmem [resolvable:$true] %s51_s15 }
  0x24   :  { %p5892_p3 = scmp.lt.u32.totalorder %s5888_s18, %s7118_s5 }
  0x26   :  { %p5894_p4 = pnand %p5892_p3, %p5889_p2 }
  0x28   :  { %5897 = shalt.err (!%p5894_p4)
}
  0x29   :  { %s5898_s25 = scalar_lea.vmem %s52_s15, 8192  ;;  %p5903_p6 = scmp.lt.s32.totalorder %s52_s15, %s52_s15 }
  0x2a   :  { %p5899_p5 = scmp.ne.s32.totalorder %s52_s15, %s5898_s25  ;;  %p5904_p7 = scmp.lt.s32.totalorder %s5898_s25, %s5898_s25 }
  0x2c   :  { %p5905_p8 = por %p5904_p7, %p5903_p6 }
  0x2e   :  { %p5906_p9 = pnand %p5905_p8, %p5899_p5 }
  0x30   :  { %5909 = shalt.err (!%p5906_p9)
}
  0x31   :  { %57 = dma.hbm_to_vmem [thread:$0]  %s7118_s5, 8192, %s52_s15, [#allocation7], %s5916_s21, %s5916_s21, %s5917_s22  }
  0x32   :  { %5910 = dma.done.wait [#allocation5], 8192  }
  0x33   :  { %5911 = vsyncadd [#allocation5], 4294959104 }
  0x34   :  { %5912 = dma.done.wait [#allocation7], 16384  }
  0x35   :  { %5913 = vsyncadd [#allocation7], 4294950912  ;;  %v5919_v0 = vmov 0.0   ;;  %v82_v1 = vld [vmem:[%s7114_s1 + $0x8] sm:$0xff]  ;;  %v84_v3 = vld [vmem:[%s7114_s1 + $0x18] sm:$0xff]  ;;  %vm111_vm0 = vcmask 130048  }
  0x36   :  { %200 = vmatprep.mubr.f32.mxu0 %v5919_v0  ;;  %313 = vmatprep.mubr.f32.mxu1 %v5919_v0  ;;  %v86_v2 = vld [vmem:[%s7114_s1 + $0x28] sm:$0xff]  ;;  %v88_v5 = vld [vmem:[%s7114_s1 + $0x38] sm:$0xff]  ;;  %v81_v6 = vld [vmem:[%s7114_s1] sm:$0xff]  ;;  %vm5921_vm1 = vmmov 0   ;;  %vm4207_vm2 = vcmask 31744  }
  0x37   :  { %v4332_v4 = vpack.c.bf16 %v86_v2, %v82_v1  ;;  %v85_v7 = vld [vmem:[%s7114_s1 + $0x20] sm:$0xff]  ;;  %v4336_v8 = vpack.c.bf16 %v88_v5, %v84_v3  ;;  %v83_v10 = vld [vmem:[%s7114_s1 + $0x10] sm:$0xff]  ;;  %v399_v14 = vld [vmem:[#allocation4 + $0x8] sm:$0xff] }
  0x38   :  { %v4334_v9 = vpack.c.bf16 %v85_v7, %v81_v6  ;;  %v87_v11 = vld [vmem:[%s7114_s1 + $0x30] sm:$0xff]  ;;  %v73_v12 = vld [vmem:[%s7113_s0] sm:$0xff]  ;;  %v403_v15 = vld [vmem:[#allocation4 + $0x28] sm:$0xff] }
  0x39   :  { %4333 = vmatprep.subr.bf16.mxu0 %v4332_v4  ;;  %v4338_v13 = vpack.c.bf16 %v87_v11, %v83_v10  ;;  %v401_v16 = vld [vmem:[#allocation4 + $0x18] sm:$0xff]  ;;  %4337 = vmatprep.subr.bf16.mxu1 %v4336_v8  ;;  %v6053_v17 = vpack.c.bf16 %v403_v15, %v399_v14  ;;  %v398_v19 = vld [vmem:[#allocation4] sm:$0xff]  ;;  %v400_v23 = vld [vmem:[#allocation4 + $0x10] sm:$0xff] }
  0x3a   :  { %4335 = vmatpush1.bf16.msra.mxu0 %v4334_v9  ;;  %v405_v18 = vld [vmem:[#allocation4 + $0x38] sm:$0xff]  ;;  %v402_v20 = vld [vmem:[#allocation4 + $0x20] sm:$0xff]  ;;  %v404_v24 = vld [vmem:[#allocation4 + $0x30] sm:$0xff] }
  0x3b   :  { %4339 = vmatpush1.bf16.msra.mxu1 %v4338_v13  ;;  %v6055_v21 = vpack.c.bf16 %v405_v18, %v401_v16  ;;  %v6057_v22 = vpack.c.bf16 %v402_v20, %v398_v19  ;;  %4341 = vmatprep.subr.bf16.mxu0 %v6053_v17  ;;  %v6060_v25 = vpack.c.bf16 %v404_v24, %v400_v23  ;;  %v407_v26 = vld [vmem:[#allocation4 + $0x48] sm:$0xff]  ;;  %v409_v28 = vld [vmem:[#allocation4 + $0x58] sm:$0xff]  ;;  %v406_v31 = vld [vmem:[#allocation4 + $0x40] sm:$0xff] }
  0x3c   :  { %v411_v27 = vld [vmem:[#allocation4 + $0x68] sm:$0xff]  ;;  %v413_v30 = vld [vmem:[#allocation4 + $0x78] sm:$0xff]  ;;  %v410_v32 = vld [vmem:[#allocation4 + $0x60] sm:$0xff] }
  0x3d   :  { %4215 = vmatmul.mubr.msk.f32.vlgmr.msra.gmra.mrb[0].mxu0 %vm111_vm0, %v73_v12  ;;  %4373 = vmatprep.subr.bf16.mxu1 %v6055_v21  ;;  %v6064_v29 = vpack.c.bf16 %v411_v27, %v407_v26  ;;  %v74_v33 = vld [vmem:[%s7113_s0 + $0x8] sm:$0xff]  ;;  %v6071_v34 = vpack.c.bf16 %v413_v30, %v409_v28  ;;  %v6073_v35 = vpack.c.bf16 %v410_v32, %v406_v31  ;;  %v408_v36 = vld [vmem:[#allocation4 + $0x50] sm:$0xff]  ;;  %v417_v41 = vld [vmem:[#allocation4 + $0x98] sm:$0xff] }
  0x3e   :  { %4223 = vmatmul.mubr.msk.f32.vlgmr.msra.gmra.mrb[0].mxu1 %vm111_vm0, %v73_v12  ;;  %4343 = vmatpush1.bf16.msra.mxu0 %v6057_v22  ;;  %v412_v37 = vld [vmem:[#allocation4 + $0x70] sm:$0xff]  ;;  %v415_v39 = vld [vmem:[#allocation4 + $0x88] sm:$0xff]  ;;  %v421_v43 = vld [vmem:[#allocation4 + $0xb8] sm:$0xff] }
  0x3f   :  { %4375 = vmatpush1.bf16.msra.mxu1 %v6060_v25  ;;  %206 = vmatprep.mubr.f32.mxu0 %v5919_v0  ;;  %v6077_v38 = vpack.c.bf16 %v412_v37, %v408_v36  ;;  %v419_v40 = vld [vmem:[#allocation4 + $0xa8] sm:$0xff]  ;;  %v414_v44 = vld [vmem:[#allocation4 + $0x80] sm:$0xff]  ;;  %v75_v46 = vld [vmem:[%s7113_s0 + $0x10] sm:$0xff]  ;;  %v6088_v47 = vpack.c.bf16 %v421_v43, %v417_v41 }
  0x40   :  { %319 = vmatprep.mubr.f32.mxu1 %v5919_v0  ;;  %4345 = vmatprep.subr.bf16.mxu0 %v6064_v29  ;;  %v6081_v42 = vpack.c.bf16 %v419_v40, %v415_v39  ;;  %v418_v45 = vld [vmem:[#allocation4 + $0xa0] sm:$0xff]  ;;  %v416_v48 = vld [vmem:[#allocation4 + $0x90] sm:$0xff]  ;;  %v423_v51 = vld [vmem:[#allocation4 + $0xc8] sm:$0xff] }
  0x41   :  { %4216 = vmatmul.mubr.msk.f32.gmra.mrb[2].mxu0 %vm111_vm0, %v74_v33  ;;  %4377 = vmatprep.subr.bf16.mxu1 %v6071_v34  ;;  %v420_v49 = vld [vmem:[#allocation4 + $0xb0] sm:$0xff]  ;;  %v6092_v50 = vpack.c.bf16 %v418_v45, %v414_v44  ;;  %v427_v52 = vld [vmem:[#allocation4 + $0xe8] sm:$0xff]  ;;  %v425_v53 = vld [vmem:[#allocation4 + $0xd8] sm:$0xff] }
  0x42   :  { %4224 = vmatmul.mubr.msk.f32.gmra.mrb[2].mxu1 %vm111_vm0, %v74_v33  ;;  %4347 = vmatpush1.bf16.msra.mxu0 %v6073_v35  ;;  %v6096_v54 = vpack.c.bf16 %v420_v49, %v416_v48  ;;  %v429_v55 = vld [vmem:[#allocation4 + $0xf8] sm:$0xff]  ;;  %v422_v56 = vld [vmem:[#allocation4 + $0xc0] sm:$0xff]  ;;  %v6100_v58 = vpack.c.bf16 %v427_v52, %v423_v51  ;;  %v424_v59 = vld [vmem:[#allocation4 + $0xd0] sm:$0xff] }
  0x43   :  { %4379 = vmatpush1.bf16.msra.mxu1 %v6077_v38  ;;  %212 = vmatprep.mubr.f32.mxu0 %v5919_v0  ;;  %v426_v57 = vld [vmem:[#allocation4 + $0xe0] sm:$0xff]  ;;  %v428_v60 = vld [vmem:[#allocation4 + $0xf0] sm:$0xff]  ;;  %v6104_v61 = vpack.c.bf16 %v429_v55, %v425_v53  ;;  %v431_v62 = vld [vmem:[#allocation4 + $0x108] sm:$0xff] }
  0x44   :  { %325 = vmatprep.mubr.f32.mxu1 %v5919_v0  ;;  %4349 = vmatprep.subr.bf16.mxu0 %v6081_v42  ;;  %v435_v63 = vld [vmem:[#allocation4 + $0x128] sm:$0xff]  ;;  %v76_v1 = vld [vmem:[%s7113_s0 + $0x18] sm:$0xff]  ;;  %v6111_v2 = vpack.c.bf16 %v426_v57, %v422_v56  ;;  %v6115_v5 = vpack.c.bf16 %v428_v60, %v424_v59  ;;  %v430_v6 = vld [vmem:[#allocation4 + $0x100] sm:$0xff] }
  0x45   :  { %4217 = vmatmul.mubr.msk.f32.gmra.mrb[4].mxu0 %vm111_vm0, %v75_v46  ;;  %4381 = vmatprep.subr.bf16.mxu1 %v6088_v47  ;;  %v433_v3 = vld [vmem:[#allocation4 + $0x118] sm:$0xff]  ;;  %v434_v7 = vld [vmem:[#allocation4 + $0x120] sm:$0xff]  ;;  %v6119_v8 = vpack.c.bf16 %v435_v63, %v431_v62  ;;  %v432_v9 = vld [vmem:[#allocation4 + $0x110] sm:$0xff] }
  0x46   :  { %4225 = vmatmul.mubr.msk.f32.gmra.mrb[4].mxu1 %vm111_vm0, %v75_v46  ;;  %4351 = vmatpush1.bf16.msra.mxu0 %v6092_v50  ;;  %v437_v4 = vld [vmem:[#allocation4 + $0x138] sm:$0xff]  ;;  %v436_v10 = vld [vmem:[#allocation4 + $0x130] sm:$0xff]  ;;  %v439_v12 = vld [vmem:[#allocation4 + $0x148] sm:$0xff]  ;;  %v6130_v15 = vpack.c.bf16 %v434_v7, %v430_v6  ;;  %v91_v7 = vlaneseq }
  0x47   :  { %4383 = vmatpush1.bf16.msra.mxu1 %v6096_v54  ;;  %218 = vmatprep.mubr.f32.mxu0 %v5919_v0  ;;  %v6123_v11 = vpack.c.bf16 %v437_v4, %v433_v3  ;;  %v443_v13 = vld [vmem:[#allocation4 + $0x168] sm:$0xff]  ;;  %v77_v14 = vld [vmem:[%s7113_s0 + $0x20] sm:$0xff]  ;;  %v441_v16 = vld [vmem:[#allocation4 + $0x158] sm:$0xff]  ;;  %v6134_v19 = vpack.c.bf16 %v436_v10, %v432_v9 }
  0x48   :  { %331 = vmatprep.mubr.f32.mxu1 %v5919_v0  ;;  %4353 = vmatprep.subr.bf16.mxu0 %v6100_v58  ;;  %v445_v18 = vld [vmem:[#allocation4 + $0x178] sm:$0xff]  ;;  %v438_v20 = vld [vmem:[#allocation4 + $0x140] sm:$0xff]  ;;  %v6138_v24 = vpack.c.bf16 %v443_v13, %v439_v12  ;;  %v440_v26 = vld [vmem:[#allocation4 + $0x150] sm:$0xff]  ;;  %v6240_v9 = vshrl.u32 %v91_v7, 7 }
  0x49   :  { %4218 = vmatmul.mubr.msk.f32.gmra.mrb[6].mxu0 %vm111_vm0, %v76_v1  ;;  %4385 = vmatprep.subr.bf16.mxu1 %v6104_v61  ;;  %v442_v23 = vld [vmem:[#allocation4 + $0x160] sm:$0xff]  ;;  %v444_v27 = vld [vmem:[#allocation4 + $0x170] sm:$0xff]  ;;  %v6142_v28 = vpack.c.bf16 %v445_v18, %v441_v16  ;;  %v447_v30 = vld [vmem:[#allocation4 + $0x188] sm:$0xff] }
  0x4a   :  { %4226 = vmatmul.mubr.msk.f32.gmra.mrb[6].mxu1 %vm111_vm0, %v76_v1  ;;  %4355 = vmatpush1.bf16.msra.mxu0 %v6111_v2  ;;  %v451_v31 = vld [vmem:[#allocation4 + $0x1a8] sm:$0xff]  ;;  %v6149_v33 = vpack.c.bf16 %v442_v23, %v438_v20  ;;  %v449_v36 = vld [vmem:[#allocation4 + $0x198] sm:$0xff]  ;;  %v6153_v39 = vpack.c.bf16 %v444_v27, %v440_v26  ;;  %v446_v40 = vld [vmem:[#allocation4 + $0x180] sm:$0xff]  ;;  %v93_v10 = vsub.s32 0, %v6240_v9  ;;  %v97_v13 = vsub.s32 1, %v6240_v9 }
  0x4b   :  { %4387 = vmatpush1.bf16.msra.mxu1 %v6115_v5  ;;  %224 = vmatprep.mubr.f32.mxu0 %v5919_v0  ;;  %v78_v32 = vld [vmem:[%s7113_s0 + $0x28] sm:$0xff]  ;;  %v453_v37 = vld [vmem:[#allocation4 + $0x1b8] sm:$0xff]  ;;  %v450_v41 = vld [vmem:[#allocation4 + $0x1a0] sm:$0xff]  ;;  %v6157_v43 = vpack.c.bf16 %v451_v31, %v447_v30  ;;  %v105_v16 = vsub.s32 3, %v6240_v9 }
  0x4c   :  { %337 = vmatprep.mubr.f32.mxu1 %v5919_v0  ;;  %4357 = vmatprep.subr.bf16.mxu0 %v6119_v8  ;;  %v448_v44 = vld [vmem:[#allocation4 + $0x190] sm:$0xff]  ;;  %v6161_v46 = vpack.c.bf16 %v453_v37, %v449_v36  ;;  %v455_v48 = vld [vmem:[#allocation4 + $0x1c8] sm:$0xff]  ;;  %v6168_v52 = vpack.c.bf16 %v450_v41, %v446_v40  ;;  %v457_v53 = vld [vmem:[#allocation4 + $0x1d8] sm:$0xff]  ;;  %v101_v36 = vsub.s32 2, %v6240_v9 }
  0x4d   :  { %4219 = vmatmul.mubr.msk.f32.gmra.mrb[8].mxu0 %vm111_vm0, %v77_v14  ;;  %4389 = vmatprep.subr.bf16.mxu1 %v6123_v11  ;;  %v452_v45 = vld [vmem:[#allocation4 + $0x1b0] sm:$0xff]  ;;  %v459_v49 = vld [vmem:[#allocation4 + $0x1e8] sm:$0xff]  ;;  %v461_v55 = vld [vmem:[#allocation4 + $0x1f8] sm:$0xff] }
  0x4e   :  { %4227 = vmatmul.mubr.msk.f32.gmra.mrb[8].mxu1 %vm111_vm0, %v77_v14  ;;  %4359 = vmatpush1.bf16.msra.mxu0 %v6130_v15  ;;  %v79_v51 = vld [vmem:[%s7113_s0 + $0x30] sm:$0xff]  ;;  %v6172_v56 = vpack.c.bf16 %v452_v45, %v448_v44  ;;  %v454_v57 = vld [vmem:[#allocation4 + $0x1c0] sm:$0xff]  ;;  %v6176_v60 = vpack.c.bf16 %v459_v49, %v455_v48  ;;  %v6180_v1 = vpack.c.bf16 %v461_v55, %v457_v53  ;;  %v80_v3 = vld [vmem:[%s7113_s0 + $0x38] sm:$0xff] }
  0x4f   :  { %4391 = vmatpush1.bf16.msra.mxu1 %v6134_v19  ;;  %230 = vmatprep.mubr.f32.mxu0 %v5919_v0  ;;  %v458_v59 = vld [vmem:[#allocation4 + $0x1e0] sm:$0xff]  ;;  %v456_v62 = vld [vmem:[#allocation4 + $0x1d0] sm:$0xff] }
  0x50   :  { %343 = vmatprep.mubr.f32.mxu1 %v5919_v0  ;;  %4361 = vmatprep.subr.bf16.mxu0 %v6138_v24  ;;  %v460_v63 = vld [vmem:[#allocation4 + $0x1f0] sm:$0xff]  ;;  %v6187_v4 = vpack.c.bf16 %v458_v59, %v454_v57  ;;  %v89_v12 = vld [vmem:[%s7116_s3] sm:$0xf] }
  0x51   :  { %4220 = vmatmul.mubr.msk.f32.gmra.mrb[10].mxu0 %vm111_vm0, %v78_v32  ;;  %4393 = vmatprep.subr.bf16.mxu1 %v6142_v28  ;;  %v6191_v6 = vpack.c.bf16 %v460_v63, %v456_v62  ;;  %v6249_v14 = vrot.slane %v89_v12, %v93_v10  ;;  %v6266_v40 = vrot.slane %v89_v12, %v101_v36 }
  0x52   :  { %4228 = vmatmul.mubr.msk.f32.gmra.mrb[10].mxu1 %vm111_vm0, %v78_v32  ;;  %4363 = vmatpush1.bf16.msra.mxu0 %v6149_v33  ;;  %v6260_v32 = vrot.slane %v89_v12, %v105_v16 }
  0x53   :  { %4395 = vmatpush1.bf16.msra.mxu1 %v6153_v39  ;;  %236 = vmatprep.mubr.f32.mxu0 %v5919_v0 }
  0x54   :  { %349 = vmatprep.mubr.f32.mxu1 %v5919_v0  ;;  %4365 = vmatprep.subr.bf16.mxu0 %v6157_v43 }
  0x55   :  { %4221 = vmatmul.mubr.msk.f32.gmra.mrb[12].mxu0 %vm111_vm0, %v79_v51  ;;  %4397 = vmatprep.subr.bf16.mxu1 %v6161_v46 }
  0x56   :  { %4229 = vmatmul.mubr.msk.f32.gmra.mrb[12].mxu1 %vm111_vm0, %v79_v51  ;;  %4367 = vmatpush1.bf16.msra.mxu0 %v6168_v52 }
  0x57   :  { %4399 = vmatpush1.bf16.msra.mxu1 %v6172_v56  ;;  %242 = vmatprep.mubr.f32.mxu0 %v5919_v0 }
  0x58   :  { %355 = vmatprep.mubr.f32.mxu1 %v5919_v0  ;;  %4369 = vmatprep.subr.bf16.mxu0 %v6176_v60 }
  0x59   :  { %4222 = vmatmul.mubr.msk.f32.gmra.mrb[14].mxu0 %vm111_vm0, %v80_v3  ;;  %4401 = vmatprep.subr.bf16.mxu1 %v6180_v1 }
  0x5a   :  { %4230 = vmatmul.mubr.msk.f32.gmra.mrb[14].mxu1 %vm111_vm0, %v80_v3  ;;  %4371 = vmatpush1.bf16.msra.mxu0 %v6187_v4 }
  0x5b   :  { %4403 = vmatpush1.bf16.msra.mxu1 %v6191_v6  ;;  %526 = vmatprep.mubr.f32.mxu0 %v5919_v0 }
  0x5c   :  { %597 = vmatprep.mubr.f32.mxu1 %v5919_v0  ;;  %4405 = vmatprep.subr.bf16.mxu0 %v6053_v17 }
  0x5d   :  { %527 = vmatmul.mubr.f32.vlgmr.msra.gmra.mrb[0].mxu0 %v5919_v0  ;;  %4437 = vmatprep.subr.bf16.mxu1 %v6055_v21 }
  0x5e   :  { %598 = vmatmul.mubr.f32.vlgmr.msra.gmra.mrb[0].mxu1 %v5919_v0  ;;  %4407 = vmatpush1.bf16.msra.mxu0 %v6057_v22 }
  0x5f   :  { %4439 = vmatpush1.bf16.msra.mxu1 %v6060_v25  ;;  %4409 = vmatprep.subr.bf16.mxu0 %v6064_v29 }
  0x60   :  { %4441 = vmatprep.subr.bf16.mxu1 %v6071_v34  ;;  %765 = vmatprep.mubr.f32.mxu0 %v5919_v0 }
  0x61   :  { %836 = vmatprep.mubr.f32.mxu1 %v5919_v0 }
  0x62   :  { %4411 = vmatpush1.bf16.msra.mxu0 %v6073_v35 }
  0x63   :  { %4443 = vmatpush1.bf16.msra.mxu1 %v6077_v38  ;;  %4413 = vmatprep.subr.bf16.mxu0 %v6081_v42 }
  0x64   :  { %4445 = vmatprep.subr.bf16.mxu1 %v6088_v47 }
  0x66   :  { %4415 = vmatpush1.bf16.msra.mxu0 %v6092_v50 }
  0x67   :  { %4447 = vmatpush1.bf16.msra.mxu1 %v6096_v54  ;;  %4417 = vmatprep.subr.bf16.mxu0 %v6100_v58 }
  0x68   :  { %4449 = vmatprep.subr.bf16.mxu1 %v6104_v61 }
  0x6a   :  { %4419 = vmatpush1.bf16.msra.mxu0 %v6111_v2 }
  0x6b   :  { %4451 = vmatpush1.bf16.msra.mxu1 %v6115_v5  ;;  %4421 = vmatprep.subr.bf16.mxu0 %v6119_v8 }
  0x6c   :  { %4453 = vmatprep.subr.bf16.mxu1 %v6123_v11 }
  0x6e   :  { %4423 = vmatpush1.bf16.msra.mxu0 %v6130_v15 }
  0x6f   :  { %4455 = vmatpush1.bf16.msra.mxu1 %v6134_v19  ;;  %4425 = vmatprep.subr.bf16.mxu0 %v6138_v24 }
  0x70   :  { %4457 = vmatprep.subr.bf16.mxu1 %v6142_v28 }
  0x72   :  { %4427 = vmatpush1.bf16.msra.mxu0 %v6149_v33 }
  0x73   :  { %4459 = vmatpush1.bf16.msra.mxu1 %v6153_v39  ;;  %4429 = vmatprep.subr.bf16.mxu0 %v6157_v43 }
  0x74   :  { %4461 = vmatprep.subr.bf16.mxu1 %v6161_v46 }
  0x76   :  { %4431 = vmatpush1.bf16.msra.mxu0 %v6168_v52 }
  0x77   :  { %4463 = vmatpush1.bf16.msra.mxu1 %v6172_v56  ;;  %4433 = vmatprep.subr.bf16.mxu0 %v6176_v60 }
  0x78   :  { %4465 = vmatprep.subr.bf16.mxu1 %v6180_v1 }
  0x7a   :  { %4435 = vmatpush1.bf16.msra.mxu0 %v6187_v4 }
  0x7b   :  { %4467 = vmatpush1.bf16.msra.mxu1 %v6191_v6  ;;  %4469 = vmatprep.subr.bf16.mxu0 %v6053_v17  ;;  %v6253_v17 = vrot.slane %v89_v12, %v97_v13 }
  0x7c   :  { %4501 = vmatprep.subr.bf16.mxu1 %v6055_v21 }
 0x130   :  { %v528_v21 = vpop.f32.mrb[0].mxu0 }
 0x131   :  { %v5452_v18 = vadd.f32 %v528_v21, %v6249_v14  ;;  %v599_v20 = vpop.f32.mrb[0].mxu1  ;;  %v530_v23 = vpop.f32.mrb[1].mxu0 }
 0x132   :  { %v5453_v26 = vadd.f32 %v530_v23, %v6253_v17  ;;  %v601_v27 = vpop.f32.mrb[1].mxu1  ;;  %v5468_v44 = vadd.f32 %v599_v20, %v6266_v40 }
 0x133   :  { %v4231_v30 = vmul.f32 -1.442695, %v5452_v18  ;;  %v5469_v37 = vadd.f32 %v601_v27, %v6260_v32 }
 0x134   :  { %v4232_v31 = vmul.f32 -1.442695, %v5453_v26 }
 0x135   :  { %5588 = vpow2.f32 %v4231_v30  ;;  %v4233_v41 = vmul.f32 -1.442695, %v5469_v37 }
 0x136   :  { %5590 = vpow2.f32 %v4232_v31 }
 0x137   :  { %5592 = vpow2.f32 %v4233_v41 }
 0x138   :  { %5594 = vtanh.f32 %v5468_v44 }
 0x13f   :  { %v5589_v45 = vpop.eup %5588 }
 0x140   :  { %v5591_v48 = vpop.eup %5590  ;;  %v611_v49 = vadd.f32 1.0, %v5589_v45 }
 0x141   :  { %v617_v51 = vadd.f32 1.0, %v5591_v48  ;;  %v5593_v53 = vpop.eup %5592 }
 0x142   :  { %5596 = vrcp.f32 %v611_v49  ;;  %v5595_v55 = vpop.eup %5594  ;;  %v624_v63 = vadd.f32 1.0, %v5593_v53 }
 0x143   :  { %5598 = vrcp.f32 %v617_v51 }
 0x144   :  { %5600 = vrcp.f32 %v624_v63 }
 0x14c   :  { %v5597_v57 = vpop.eup %5596 }
 0x14d   :  { %v5599_v59 = vpop.eup %5598  ;;  %v628_v62 = vmul.f32 %v5597_v57, %v5595_v55 }
 0x14e   :  { %v627_v3 = vmul.f32 0.0, %v5599_v59  ;;  %v5601_v12 = vpop.eup %5600 }
 0x150   :  { %v6269_v7 = vadd.f32 %v628_v62, %v627_v3 }
 0x152   :  { %5602 = vtanh.f32 %v6269_v7 }
 0x15c   :  { %v5603_v21 = vpop.eup %5602 }
 0x15d   :  { %v6272_v18 = vmul.f32 %v5603_v21, %v5601_v12  ;;  %v1116_v12 = vld [vmem:[#allocation4 + $0x8] sm:$0xff] }
 0x15e   :  { %v1120_v21 = vld [vmem:[#allocation4 + $0x28] sm:$0xff] }
 0x15f   :  { %766 = vmatmul.mubr.f32.vlgmr.msra.gmra.mrb[2].mxu0 %v6272_v18  ;;  %837 = vmatmul.mubr.f32.vlgmr.msra.gmra.mrb[2].mxu1 %v6272_v18 }
 0x160   :  { %4471 = vmatpush1.bf16.msra.mxu0 %v6057_v22  ;;  %4503 = vmatpush1.bf16.msra.mxu1 %v6060_v25 }
 0x161   :  { %4473 = vmatprep.subr.bf16.mxu0 %v6064_v29  ;;  %4505 = vmatprep.subr.bf16.mxu1 %v6071_v34 }
 0x162   :  { %1004 = vmatprep.mubr.f32.mxu0 %v5919_v0  ;;  %1075 = vmatprep.mubr.f32.mxu1 %v5919_v0 }
 0x164   :  { %4475 = vmatpush1.bf16.msra.mxu0 %v6073_v35  ;;  %4507 = vmatpush1.bf16.msra.mxu1 %v6077_v38 }
 0x165   :  { %4477 = vmatprep.subr.bf16.mxu0 %v6081_v42  ;;  %4509 = vmatprep.subr.bf16.mxu1 %v6088_v47 }
 0x168   :  { %4479 = vmatpush1.bf16.msra.mxu0 %v6092_v50  ;;  %4511 = vmatpush1.bf16.msra.mxu1 %v6096_v54 }
 0x169   :  { %4481 = vmatprep.subr.bf16.mxu0 %v6100_v58  ;;  %4513 = vmatprep.subr.bf16.mxu1 %v6104_v61 }
 0x16c   :  { %4483 = vmatpush1.bf16.msra.mxu0 %v6111_v2  ;;  %4515 = vmatpush1.bf16.msra.mxu1 %v6115_v5 }
 0x16d   :  { %4485 = vmatprep.subr.bf16.mxu0 %v6119_v8  ;;  %4517 = vmatprep.subr.bf16.mxu1 %v6123_v11 }
 0x170   :  { %4487 = vmatpush1.bf16.msra.mxu0 %v6130_v15  ;;  %4519 = vmatpush1.bf16.msra.mxu1 %v6134_v19 }
 0x171   :  { %4489 = vmatprep.subr.bf16.mxu0 %v6138_v24  ;;  %4521 = vmatprep.subr.bf16.mxu1 %v6142_v28 }
 0x174   :  { %4491 = vmatpush1.bf16.msra.mxu0 %v6149_v33  ;;  %4523 = vmatpush1.bf16.msra.mxu1 %v6153_v39 }
 0x175   :  { %4493 = vmatprep.subr.bf16.mxu0 %v6157_v43  ;;  %4525 = vmatprep.subr.bf16.mxu1 %v6161_v46 }
 0x178   :  { %4495 = vmatpush1.bf16.msra.mxu0 %v6168_v52  ;;  %4527 = vmatpush1.bf16.msra.mxu1 %v6172_v56 }
 0x179   :  { %4497 = vmatprep.subr.bf16.mxu0 %v6176_v60  ;;  %4529 = vmatprep.subr.bf16.mxu1 %v6180_v1 }
 0x17c   :  { %4499 = vmatpush1.bf16.msra.mxu0 %v6187_v4  ;;  %4531 = vmatpush1.bf16.msra.mxu1 %v6191_v6 }
 0x232   :  { %v767_v22 = vpop.f32.mrb[2].mxu0  ;;  %v838_v25 = vpop.f32.mrb[2].mxu1 }
 0x233   :  { %v5454_v29 = vadd.f32 %v767_v22, %v6249_v14  ;;  %v769_v34 = vpop.f32.mrb[3].mxu0  ;;  %v840_v35 = vpop.f32.mrb[3].mxu1  ;;  %v5470_v30 = vadd.f32 %v838_v25, %v6266_v40  ;;  %v6322_v22 = vpack.c.bf16 %v1120_v21, %v1116_v12  ;;  %v1122_v25 = vld [vmem:[#allocation4 + $0x38] sm:$0xff] }
 0x234   :  { %v5455_v38 = vadd.f32 %v769_v34, %v6253_v17  ;;  %v5471_v26 = vadd.f32 %v840_v35, %v6260_v32  ;;  %v1119_v34 = vld [vmem:[#allocation4 + $0x20] sm:$0xff]  ;;  %v1373_v12 = vld [vmem:[#allocation4 + $0x98] sm:$0xff] }
 0x235   :  { %v4234_v20 = vmul.f32 -1.442695, %v5454_v29  ;;  %v1115_v29 = vld [vmem:[#allocation4] sm:$0xff]  ;;  %4533 = vmatprep.subr.bf16.mxu0 %v6322_v22 }
 0x236   :  { %v4235_v23 = vmul.f32 -1.442695, %v5455_v38  ;;  %v4236_v27 = vmul.f32 -1.442695, %v5471_v26  ;;  %v6326_v38 = vpack.c.bf16 %v1119_v34, %v1115_v29  ;;  %v1374_v29 = vld [vmem:[#allocation4 + $0xa0] sm:$0xff] }
 0x237   :  { %5604 = vpow2.f32 %v4234_v20  ;;  %v1117_v20 = vld [vmem:[#allocation4 + $0x10] sm:$0xff] }
 0x238   :  { %5606 = vpow2.f32 %v4235_v23  ;;  %v1121_v23 = vld [vmem:[#allocation4 + $0x30] sm:$0xff] }
 0x239   :  { %5608 = vpow2.f32 %v4236_v27  ;;  %v6329_v26 = vpack.c.bf16 %v1121_v23, %v1117_v20  ;;  %v1124_v27 = vld [vmem:[#allocation4 + $0x48] sm:$0xff]  ;;  %v1372_v23 = vld [vmem:[#allocation4 + $0x90] sm:$0xff] }
 0x23a   :  { %5610 = vtanh.f32 %v5470_v30  ;;  %v1128_v30 = vld [vmem:[#allocation4 + $0x68] sm:$0xff] }
 0x241   :  { %v5605_v31 = vpop.eup %5604 }
 0x242   :  { %v5607_v37 = vpop.eup %5606  ;;  %v850_v41 = vadd.f32 1.0, %v5605_v31  ;;  %v1126_v31 = vld [vmem:[#allocation4 + $0x58] sm:$0xff] }
 0x243   :  { %v856_v44 = vadd.f32 1.0, %v5607_v37  ;;  %v5609_v45 = vpop.eup %5608  ;;  %v6334_v37 = vpack.c.bf16 %v1128_v30, %v1124_v27  ;;  %v1376_v27 = vld [vmem:[#allocation4 + $0xb0] sm:$0xff] }
 0x244   :  { %5612 = vrcp.f32 %v850_v41  ;;  %v5611_v48 = vpop.eup %5610  ;;  %v863_v55 = vadd.f32 1.0, %v5609_v45  ;;  %v1130_v41 = vld [vmem:[#allocation4 + $0x78] sm:$0xff]  ;;  %v1127_v45 = vld [vmem:[#allocation4 + $0x60] sm:$0xff]  ;;  %v6399_v30 = vpack.c.bf16 %v1376_v27, %v1372_v23  ;;  %v1407_v27 = vld [vmem:[#allocation4 + $0x1a8] sm:$0xff] }
 0x245   :  { %5614 = vrcp.f32 %v856_v44  ;;  %v1123_v44 = vld [vmem:[#allocation4 + $0x40] sm:$0xff] }
 0x246   :  { %5616 = vrcp.f32 %v863_v55 }
 0x24e   :  { %v5613_v49 = vpop.eup %5612 }
 0x24f   :  { %v5615_v51 = vpop.eup %5614  ;;  %v867_v53 = vmul.f32 %v5613_v49, %v5611_v48  ;;  %v6336_v48 = vpack.c.bf16 %v1130_v41, %v1126_v31  ;;  %v6338_v49 = vpack.c.bf16 %v1127_v45, %v1123_v44  ;;  %v1379_v31 = vld [vmem:[#allocation4 + $0xc8] sm:$0xff]  ;;  %v1381_v44 = vld [vmem:[#allocation4 + $0xd8] sm:$0xff] }
 0x250   :  { %v866_v57 = vmul.f32 %v5615_v51, %v6269_v7  ;;  %v5617_v62 = vpop.eup %5616  ;;  %v1118_v7 = vld [vmem:[#allocation4 + $0x18] sm:$0xff]  ;;  %v1125_v51 = vld [vmem:[#allocation4 + $0x50] sm:$0xff]  ;;  %v1383_v41 = vld [vmem:[#allocation4 + $0xe8] sm:$0xff] }
 0x251   :  { %v6324_v35 = vpack.c.bf16 %v1122_v25, %v1118_v7  ;;  %v1377_v7 = vld [vmem:[#allocation4 + $0xb8] sm:$0xff]  ;;  %v1370_v25 = vld [vmem:[#allocation4 + $0x80] sm:$0xff]  ;;  %v6404_v45 = vpack.c.bf16 %v1383_v41, %v1379_v31 }
 0x252   :  { %v6313_v59 = vadd.f32 %v867_v53, %v866_v57  ;;  %v1129_v53 = vld [vmem:[#allocation4 + $0x70] sm:$0xff]  ;;  %v6394_v34 = vpack.c.bf16 %v1377_v7, %v1373_v12  ;;  %v6396_v20 = vpack.c.bf16 %v1374_v29, %v1370_v25  ;;  %v1403_v29 = vld [vmem:[#allocation4 + $0x188] sm:$0xff]  ;;  %v1405_v31 = vld [vmem:[#allocation4 + $0x198] sm:$0xff] }
 0x253   :  { %4565 = vmatprep.subr.bf16.mxu1 %v6324_v35  ;;  %v6341_v55 = vpack.c.bf16 %v1129_v53, %v1125_v51  ;;  %v1385_v51 = vld [vmem:[#allocation4 + $0xf8] sm:$0xff]  ;;  %v1378_v53 = vld [vmem:[#allocation4 + $0xc0] sm:$0xff]  ;;  %v1396_v7 = vld [vmem:[#allocation4 + $0x150] sm:$0xff] }
 0x254   :  { %5618 = vtanh.f32 %v6313_v59  ;;  %v1400_v25 = vld [vmem:[#allocation4 + $0x170] sm:$0xff]  ;;  %v1409_v41 = vld [vmem:[#allocation4 + $0x1b8] sm:$0xff] }
 0x255   :  { %v6435_v23 = vpack.c.bf16 %v1400_v25, %v1396_v7 }
 0x25e   :  { %v5619_v63 = vpop.eup %5618 }
 0x25f   :  { %v6316_v3 = vmul.f32 %v5619_v63, %v5617_v62  ;;  %v1375_v63 = vld [vmem:[#allocation4 + $0xa8] sm:$0xff] }
 0x261   :  { %1005 = vmatmul.mubr.f32.vlgmr.msra.gmra.mrb[4].mxu0 %v6316_v3  ;;  %1076 = vmatmul.mubr.f32.vlgmr.msra.gmra.mrb[4].mxu1 %v6316_v3 }
 0x262   :  { %1243 = vmatprep.mubr.f32.mxu0 %v5919_v0  ;;  %1314 = vmatprep.mubr.f32.mxu1 %v5919_v0 }
 0x263   :  { %4535 = vmatpush1.bf16.msra.mxu0 %v6326_v38  ;;  %4567 = vmatpush1.bf16.msra.mxu1 %v6329_v26 }
 0x264   :  { %4537 = vmatprep.subr.bf16.mxu0 %v6334_v37  ;;  %4569 = vmatprep.subr.bf16.mxu1 %v6336_v48 }
 0x267   :  { %4539 = vmatpush1.bf16.msra.mxu0 %v6338_v49  ;;  %4571 = vmatpush1.bf16.msra.mxu1 %v6341_v55 }
 0x268   :  { %4541 = vmatprep.subr.bf16.mxu0 %v6081_v42  ;;  %4573 = vmatprep.subr.bf16.mxu1 %v6088_v47 }
 0x26b   :  { %4543 = vmatpush1.bf16.msra.mxu0 %v6092_v50  ;;  %4575 = vmatpush1.bf16.msra.mxu1 %v6096_v54 }
 0x26c   :  { %4545 = vmatprep.subr.bf16.mxu0 %v6100_v58  ;;  %4577 = vmatprep.subr.bf16.mxu1 %v6104_v61 }
 0x26f   :  { %4547 = vmatpush1.bf16.msra.mxu0 %v6111_v2  ;;  %4579 = vmatpush1.bf16.msra.mxu1 %v6115_v5 }
 0x270   :  { %4549 = vmatprep.subr.bf16.mxu0 %v6119_v8  ;;  %4581 = vmatprep.subr.bf16.mxu1 %v6123_v11 }
 0x273   :  { %4551 = vmatpush1.bf16.msra.mxu0 %v6130_v15  ;;  %4583 = vmatpush1.bf16.msra.mxu1 %v6134_v19 }
 0x274   :  { %4553 = vmatprep.subr.bf16.mxu0 %v6138_v24  ;;  %4585 = vmatprep.subr.bf16.mxu1 %v6142_v28 }
 0x277   :  { %4555 = vmatpush1.bf16.msra.mxu0 %v6149_v33  ;;  %4587 = vmatpush1.bf16.msra.mxu1 %v6153_v39 }
 0x278   :  { %4557 = vmatprep.subr.bf16.mxu0 %v6157_v43  ;;  %4589 = vmatprep.subr.bf16.mxu1 %v6161_v46 }
 0x27b   :  { %4559 = vmatpush1.bf16.msra.mxu0 %v6168_v52  ;;  %4591 = vmatpush1.bf16.msra.mxu1 %v6172_v56 }
 0x27c   :  { %4561 = vmatprep.subr.bf16.mxu0 %v6176_v60  ;;  %4593 = vmatprep.subr.bf16.mxu1 %v6180_v1 }
 0x27f   :  { %4563 = vmatpush1.bf16.msra.mxu0 %v6187_v4  ;;  %4595 = vmatpush1.bf16.msra.mxu1 %v6191_v6 }
 0x280   :  { %4597 = vmatprep.subr.bf16.mxu0 %v6322_v22  ;;  %4629 = vmatprep.subr.bf16.mxu1 %v6324_v35 }
 0x334   :  { %v1006_v42 = vpop.f32.mrb[4].mxu0  ;;  %v1077_v47 = vpop.f32.mrb[4].mxu1 }
 0x335   :  { %v5456_v50 = vadd.f32 %v1006_v42, %v6249_v14  ;;  %v1008_v54 = vpop.f32.mrb[5].mxu0  ;;  %v1079_v58 = vpop.f32.mrb[5].mxu1  ;;  %v5472_v15 = vadd.f32 %v1077_v47, %v6266_v40  ;;  %v1382_v42 = vld [vmem:[#allocation4 + $0xe0] sm:$0xff]  ;;  %v6406_v47 = vpack.c.bf16 %v1385_v51, %v1381_v44  ;;  %v6438_v44 = vpack.c.bf16 %v1407_v27, %v1403_v29 }
 0x336   :  { %v5457_v61 = vadd.f32 %v1008_v54, %v6253_v17  ;;  %v5473_v8 = vadd.f32 %v1079_v58, %v6260_v32  ;;  %v1380_v54 = vld [vmem:[#allocation4 + $0xd0] sm:$0xff]  ;;  %v6440_v51 = vpack.c.bf16 %v1409_v41, %v1405_v31 }
 0x337   :  { %v4237_v2 = vmul.f32 -1.442695, %v5456_v50  ;;  %v6408_v50 = vpack.c.bf16 %v1382_v42, %v1378_v53  ;;  %v1384_v58 = vld [vmem:[#allocation4 + $0xf0] sm:$0xff]  ;;  %v1402_v53 = vld [vmem:[#allocation4 + $0x180] sm:$0xff] }
 0x338   :  { %v4238_v5 = vmul.f32 -1.442695, %v5457_v61  ;;  %v4239_v11 = vmul.f32 -1.442695, %v5473_v8  ;;  %v6411_v61 = vpack.c.bf16 %v1384_v58, %v1380_v54  ;;  %v1389_v8 = vld [vmem:[#allocation4 + $0x118] sm:$0xff]  ;;  %v1406_v42 = vld [vmem:[#allocation4 + $0x1a0] sm:$0xff] }
 0x339   :  { %5620 = vpow2.f32 %v4237_v2  ;;  %v1387_v2 = vld [vmem:[#allocation4 + $0x108] sm:$0xff]  ;;  %v1404_v54 = vld [vmem:[#allocation4 + $0x190] sm:$0xff]  ;;  %v6443_v58 = vpack.c.bf16 %v1406_v42, %v1402_v53 }
 0x33a   :  { %5622 = vpow2.f32 %v4238_v5  ;;  %v1391_v5 = vld [vmem:[#allocation4 + $0x128] sm:$0xff] }
 0x33b   :  { %5624 = vpow2.f32 %v4239_v11  ;;  %v6416_v11 = vpack.c.bf16 %v1391_v5, %v1387_v2  ;;  %v1408_v2 = vld [vmem:[#allocation4 + $0x1b0] sm:$0xff]  ;;  %v1411_v5 = vld [vmem:[#allocation4 + $0x1c8] sm:$0xff] }
 0x33c   :  { %5626 = vtanh.f32 %v5472_v15  ;;  %v1393_v15 = vld [vmem:[#allocation4 + $0x138] sm:$0xff] }
 0x343   :  { %v5621_v19 = vpop.eup %5620 }
 0x344   :  { %v5623_v24 = vpop.eup %5622  ;;  %v1089_v28 = vadd.f32 1.0, %v5621_v19  ;;  %v1386_v19 = vld [vmem:[#allocation4 + $0x100] sm:$0xff] }
 0x345   :  { %v1095_v33 = vadd.f32 1.0, %v5623_v24  ;;  %v5625_v39 = vpop.eup %5624  ;;  %v1390_v24 = vld [vmem:[#allocation4 + $0x120] sm:$0xff] }
 0x346   :  { %5628 = vrcp.f32 %v1089_v28  ;;  %v5627_v43 = vpop.eup %5626  ;;  %v1102_v60 = vadd.f32 1.0, %v5625_v39  ;;  %v6418_v28 = vpack.c.bf16 %v1393_v15, %v1389_v8  ;;  %v1388_v39 = vld [vmem:[#allocation4 + $0x110] sm:$0xff]  ;;  %v1415_v8 = vld [vmem:[#allocation4 + $0x1e8] sm:$0xff]  ;;  %v6447_v15 = vpack.c.bf16 %v1408_v2, %v1404_v54 }
 0x347   :  { %5630 = vrcp.f32 %v1095_v33  ;;  %v6420_v33 = vpack.c.bf16 %v1390_v24, %v1386_v19  ;;  %v6449_v19 = vpack.c.bf16 %v1415_v8, %v1411_v5  ;;  %v1413_v24 = vld [vmem:[#allocation4 + $0x1d8] sm:$0xff] }
 0x348   :  { %5632 = vrcp.f32 %v1102_v60  ;;  %v1397_v60 = vld [vmem:[#allocation4 + $0x158] sm:$0xff] }
 0x350   :  { %v5629_v46 = vpop.eup %5628 }
 0x351   :  { %v5631_v52 = vpop.eup %5630  ;;  %v1106_v56 = vmul.f32 %v5629_v46, %v5627_v43  ;;  %v1392_v43 = vld [vmem:[#allocation4 + $0x130] sm:$0xff] }
 0x352   :  { %v1105_v1 = vmul.f32 %v5631_v52, %v6313_v59  ;;  %v5633_v6 = vpop.eup %5632  ;;  %v1371_v59 = vld [vmem:[#allocation4 + $0x88] sm:$0xff]  ;;  %v6423_v46 = vpack.c.bf16 %v1392_v43, %v1388_v39  ;;  %v1417_v39 = vld [vmem:[#allocation4 + $0x1f8] sm:$0xff]  ;;  %v1410_v43 = vld [vmem:[#allocation4 + $0x1c0] sm:$0xff] }
 0x353   :  { %v6392_v21 = vpack.c.bf16 %v1375_v63, %v1371_v59  ;;  %v1395_v52 = vld [vmem:[#allocation4 + $0x148] sm:$0xff]  ;;  %v1398_v59 = vld [vmem:[#allocation4 + $0x160] sm:$0xff] }
 0x354   :  { %v6377_v4 = vadd.f32 %v1106_v56, %v1105_v1  ;;  %v1399_v56 = vld [vmem:[#allocation4 + $0x168] sm:$0xff] }
 0x355   :  { %v6427_v1 = vpack.c.bf16 %v1399_v56, %v1395_v52  ;;  %v6452_v52 = vpack.c.bf16 %v1417_v39, %v1413_v24  ;;  %v1414_v56 = vld [vmem:[#allocation4 + $0x1e0] sm:$0xff] }
 0x356   :  { %5634 = vtanh.f32 %v6377_v4 }
 0x360   :  { %v5635_v57 = vpop.eup %5634 }
 0x361   :  { %v6380_v62 = vmul.f32 %v5635_v57, %v5633_v6  ;;  %v1401_v6 = vld [vmem:[#allocation4 + $0x178] sm:$0xff]  ;;  %v1394_v57 = vld [vmem:[#allocation4 + $0x140] sm:$0xff] }
 0x362   :  { %v6430_v63 = vpack.c.bf16 %v1401_v6, %v1397_v60  ;;  %v6432_v12 = vpack.c.bf16 %v1398_v59, %v1394_v57  ;;  %v1412_v60 = vld [vmem:[#allocation4 + $0x1d0] sm:$0xff]  ;;  %v6455_v57 = vpack.c.bf16 %v1414_v56, %v1410_v43 }
 0x363   :  { %1244 = vmatmul.mubr.f32.vlgmr.msra.gmra.mrb[6].mxu0 %v6380_v62  ;;  %1315 = vmatmul.mubr.f32.vlgmr.msra.gmra.mrb[6].mxu1 %v6380_v62  ;;  %v1416_v6 = vld [vmem:[#allocation4 + $0x1f0] sm:$0xff] }
 0x364   :  { %4599 = vmatpush1.bf16.msra.mxu0 %v6326_v38  ;;  %4631 = vmatpush1.bf16.msra.mxu1 %v6329_v26  ;;  %v6459_v59 = vpack.c.bf16 %v1416_v6, %v1412_v60 }
 0x365   :  { %4601 = vmatprep.subr.bf16.mxu0 %v6334_v37  ;;  %4633 = vmatprep.subr.bf16.mxu1 %v6336_v48 }
 0x366   :  { %1482 = vmatprep.mubr.f32.mxu0 %v5919_v0  ;;  %1553 = vmatprep.mubr.f32.mxu1 %v5919_v0 }
 0x368   :  { %4603 = vmatpush1.bf16.msra.mxu0 %v6338_v49  ;;  %4635 = vmatpush1.bf16.msra.mxu1 %v6341_v55 }
 0x369   :  { %4605 = vmatprep.subr.bf16.mxu0 %v6392_v21  ;;  %4637 = vmatprep.subr.bf16.mxu1 %v6394_v34 }
 0x36c   :  { %4607 = vmatpush1.bf16.msra.mxu0 %v6396_v20  ;;  %4639 = vmatpush1.bf16.msra.mxu1 %v6399_v30 }
 0x36d   :  { %4609 = vmatprep.subr.bf16.mxu0 %v6404_v45  ;;  %4641 = vmatprep.subr.bf16.mxu1 %v6406_v47 }
 0x370   :  { %4611 = vmatpush1.bf16.msra.mxu0 %v6408_v50  ;;  %4643 = vmatpush1.bf16.msra.mxu1 %v6411_v61 }
 0x371   :  { %4613 = vmatprep.subr.bf16.mxu0 %v6416_v11  ;;  %4645 = vmatprep.subr.bf16.mxu1 %v6418_v28 }
 0x374   :  { %4615 = vmatpush1.bf16.msra.mxu0 %v6420_v33  ;;  %4647 = vmatpush1.bf16.msra.mxu1 %v6423_v46 }
 0x375   :  { %4617 = vmatprep.subr.bf16.mxu0 %v6427_v1  ;;  %4649 = vmatprep.subr.bf16.mxu1 %v6430_v63 }
 0x378   :  { %4619 = vmatpush1.bf16.msra.mxu0 %v6432_v12  ;;  %4651 = vmatpush1.bf16.msra.mxu1 %v6435_v23 }
 0x379   :  { %4621 = vmatprep.subr.bf16.mxu0 %v6438_v44  ;;  %4653 = vmatprep.subr.bf16.mxu1 %v6440_v51 }
 0x37c   :  { %4623 = vmatpush1.bf16.msra.mxu0 %v6443_v58  ;;  %4655 = vmatpush1.bf16.msra.mxu1 %v6447_v15 }
 0x37d   :  { %4625 = vmatprep.subr.bf16.mxu0 %v6449_v19  ;;  %4657 = vmatprep.subr.bf16.mxu1 %v6452_v52 }
 0x380   :  { %4627 = vmatpush1.bf16.msra.mxu0 %v6455_v57  ;;  %4659 = vmatpush1.bf16.msra.mxu1 %v6459_v59 }
 0x381   :  { %4661 = vmatprep.subr.bf16.mxu0 %v6322_v22  ;;  %4693 = vmatprep.subr.bf16.mxu1 %v6324_v35 }
 0x436   :  { %v1245_v7 = vpop.f32.mrb[6].mxu0  ;;  %v1316_v25 = vpop.f32.mrb[6].mxu1 }
 0x437   :  { %v5458_v29 = vadd.f32 %v1245_v7, %v6249_v14  ;;  %v1247_v27 = vpop.f32.mrb[7].mxu0  ;;  %v1318_v31 = vpop.f32.mrb[7].mxu1  ;;  %v5474_v5 = vadd.f32 %v1316_v25, %v6266_v40 }
 0x438   :  { %v5459_v41 = vadd.f32 %v1247_v27, %v6253_v17  ;;  %v5475_v54 = vadd.f32 %v1318_v31, %v6260_v32 }
 0x439   :  { %v4240_v53 = vmul.f32 -1.442695, %v5458_v29 }
 0x43a   :  { %v4241_v42 = vmul.f32 -1.442695, %v5459_v41  ;;  %v4242_v2 = vmul.f32 -1.442695, %v5475_v54 }
 0x43b   :  { %5636 = vpow2.f32 %v4240_v53 }
 0x43c   :  { %5638 = vpow2.f32 %v4241_v42 }
 0x43d   :  { %5640 = vpow2.f32 %v4242_v2 }
 0x43e   :  { %5642 = vtanh.f32 %v5474_v5 }
 0x445   :  { %v5637_v8 = vpop.eup %5636 }
 0x446   :  { %v5639_v24 = vpop.eup %5638  ;;  %v1328_v39 = vadd.f32 1.0, %v5637_v8 }
 0x447   :  { %v1334_v43 = vadd.f32 1.0, %v5639_v24  ;;  %v5641_v56 = vpop.eup %5640 }
 0x448   :  { %5644 = vrcp.f32 %v1328_v39  ;;  %v5643_v60 = vpop.eup %5642  ;;  %v1341_v27 = vadd.f32 1.0, %v5641_v56 }
 0x449   :  { %5646 = vrcp.f32 %v1334_v43 }
 0x44a   :  { %5648 = vrcp.f32 %v1341_v27 }
 0x452   :  { %v5645_v6 = vpop.eup %5644 }
 0x453   :  { %v5647_v7 = vpop.eup %5646  ;;  %v1345_v29 = vmul.f32 %v5645_v6, %v5643_v60 }
 0x454   :  { %v1344_v41 = vmul.f32 %v5647_v7, %v6377_v4  ;;  %v5649_v25 = vpop.eup %5648 }
 0x456   :  { %v6471_v31 = vadd.f32 %v1345_v29, %v1344_v41 }
 0x458   :  { %5650 = vtanh.f32 %v6471_v31 }
 0x462   :  { %v5651_v53 = vpop.eup %5650 }
 0x463   :  { %v6474_v42 = vmul.f32 %v5651_v53, %v5649_v25 }
 0x465   :  { %1483 = vmatmul.mubr.f32.vlgmr.msra.gmra.mrb[8].mxu0 %v6474_v42  ;;  %1554 = vmatmul.mubr.f32.vlgmr.msra.gmra.mrb[8].mxu1 %v6474_v42 }
 0x466   :  { %4663 = vmatpush1.bf16.msra.mxu0 %v6326_v38  ;;  %4695 = vmatpush1.bf16.msra.mxu1 %v6329_v26 }
 0x467   :  { %4665 = vmatprep.subr.bf16.mxu0 %v6334_v37  ;;  %4697 = vmatprep.subr.bf16.mxu1 %v6336_v48 }
 0x468   :  { %1721 = vmatprep.mubr.f32.mxu0 %v5919_v0  ;;  %1792 = vmatprep.mubr.f32.mxu1 %v5919_v0 }
 0x46a   :  { %4667 = vmatpush1.bf16.msra.mxu0 %v6338_v49  ;;  %4699 = vmatpush1.bf16.msra.mxu1 %v6341_v55 }
 0x46b   :  { %4669 = vmatprep.subr.bf16.mxu0 %v6392_v21  ;;  %4701 = vmatprep.subr.bf16.mxu1 %v6394_v34 }
 0x46e   :  { %4671 = vmatpush1.bf16.msra.mxu0 %v6396_v20  ;;  %4703 = vmatpush1.bf16.msra.mxu1 %v6399_v30 }
 0x46f   :  { %4673 = vmatprep.subr.bf16.mxu0 %v6404_v45  ;;  %4705 = vmatprep.subr.bf16.mxu1 %v6406_v47 }
 0x472   :  { %4675 = vmatpush1.bf16.msra.mxu0 %v6408_v50  ;;  %4707 = vmatpush1.bf16.msra.mxu1 %v6411_v61 }
 0x473   :  { %4677 = vmatprep.subr.bf16.mxu0 %v6416_v11  ;;  %4709 = vmatprep.subr.bf16.mxu1 %v6418_v28 }
 0x476   :  { %4679 = vmatpush1.bf16.msra.mxu0 %v6420_v33  ;;  %4711 = vmatpush1.bf16.msra.mxu1 %v6423_v46 }
 0x477   :  { %4681 = vmatprep.subr.bf16.mxu0 %v6427_v1  ;;  %4713 = vmatprep.subr.bf16.mxu1 %v6430_v63 }
 0x47a   :  { %4683 = vmatpush1.bf16.msra.mxu0 %v6432_v12  ;;  %4715 = vmatpush1.bf16.msra.mxu1 %v6435_v23 }
 0x47b   :  { %4685 = vmatprep.subr.bf16.mxu0 %v6438_v44  ;;  %4717 = vmatprep.subr.bf16.mxu1 %v6440_v51 }
 0x47e   :  { %4687 = vmatpush1.bf16.msra.mxu0 %v6443_v58  ;;  %4719 = vmatpush1.bf16.msra.mxu1 %v6447_v15 }
 0x47f   :  { %4689 = vmatprep.subr.bf16.mxu0 %v6449_v19  ;;  %4721 = vmatprep.subr.bf16.mxu1 %v6452_v52 }
 0x482   :  { %4691 = vmatpush1.bf16.msra.mxu0 %v6455_v57  ;;  %4723 = vmatpush1.bf16.msra.mxu1 %v6459_v59 }
 0x483   :  { %4725 = vmatprep.subr.bf16.mxu0 %v6322_v22  ;;  %4757 = vmatprep.subr.bf16.mxu1 %v6324_v35 }
 0x538   :  { %v1484_v4 = vpop.f32.mrb[8].mxu0  ;;  %v1555_v54 = vpop.f32.mrb[8].mxu1 }
 0x539   :  { %v5460_v2 = vadd.f32 %v1484_v4, %v6249_v14  ;;  %v1486_v5 = vpop.f32.mrb[9].mxu0  ;;  %v1557_v8 = vpop.f32.mrb[9].mxu1  ;;  %v5476_v6 = vadd.f32 %v1555_v54, %v6266_v40 }
 0x53a   :  { %v5461_v24 = vadd.f32 %v1486_v5, %v6253_v17  ;;  %v5477_v56 = vadd.f32 %v1557_v8, %v6260_v32 }
 0x53b   :  { %v4243_v39 = vmul.f32 -1.442695, %v5460_v2 }
 0x53c   :  { %v4244_v43 = vmul.f32 -1.442695, %v5461_v24  ;;  %v4245_v60 = vmul.f32 -1.442695, %v5477_v56 }
 0x53d   :  { %5652 = vpow2.f32 %v4243_v39 }
 0x53e   :  { %5654 = vpow2.f32 %v4244_v43 }
 0x53f   :  { %5656 = vpow2.f32 %v4245_v60 }
 0x540   :  { %5658 = vtanh.f32 %v5476_v6 }
 0x547   :  { %v5653_v22 = vpop.eup %5652 }
 0x548   :  { %v5655_v7 = vpop.eup %5654  ;;  %v1567_v35 = vadd.f32 1.0, %v5653_v22 }
 0x549   :  { %v1573_v29 = vadd.f32 1.0, %v5655_v7  ;;  %v5657_v27 = vpop.eup %5656 }
 0x54a   :  { %5660 = vrcp.f32 %v1567_v35  ;;  %v5659_v41 = vpop.eup %5658  ;;  %v1580_v2 = vadd.f32 1.0, %v5657_v27 }
 0x54b   :  { %5662 = vrcp.f32 %v1573_v29 }
 0x54c   :  { %5664 = vrcp.f32 %v1580_v2 }
 0x554   :  { %v5661_v25 = vpop.eup %5660 }
 0x555   :  { %v5663_v53 = vpop.eup %5662  ;;  %v1584_v4 = vmul.f32 %v5661_v25, %v5659_v41 }
 0x556   :  { %v1583_v5 = vmul.f32 %v5663_v53, %v6471_v31  ;;  %v5665_v54 = vpop.eup %5664 }
 0x558   :  { %v6517_v8 = vadd.f32 %v1584_v4, %v1583_v5 }
 0x55a   :  { %5666 = vtanh.f32 %v6517_v8 }
 0x564   :  { %v5667_v24 = vpop.eup %5666 }
 0x565   :  { %v6520_v39 = vmul.f32 %v5667_v24, %v5665_v54 }
 0x567   :  { %1722 = vmatmul.mubr.f32.vlgmr.msra.gmra.mrb[10].mxu0 %v6520_v39  ;;  %1793 = vmatmul.mubr.f32.vlgmr.msra.gmra.mrb[10].mxu1 %v6520_v39 }
 0x568   :  { %4727 = vmatpush1.bf16.msra.mxu0 %v6326_v38  ;;  %4759 = vmatpush1.bf16.msra.mxu1 %v6329_v26 }
 0x569   :  { %4729 = vmatprep.subr.bf16.mxu0 %v6334_v37  ;;  %4761 = vmatprep.subr.bf16.mxu1 %v6336_v48 }
 0x56a   :  { %1960 = vmatprep.mubr.f32.mxu0 %v5919_v0  ;;  %2031 = vmatprep.mubr.f32.mxu1 %v5919_v0 }
 0x56c   :  { %4731 = vmatpush1.bf16.msra.mxu0 %v6338_v49  ;;  %4763 = vmatpush1.bf16.msra.mxu1 %v6341_v55 }
 0x56d   :  { %4733 = vmatprep.subr.bf16.mxu0 %v6392_v21  ;;  %4765 = vmatprep.subr.bf16.mxu1 %v6394_v34 }
 0x570   :  { %4735 = vmatpush1.bf16.msra.mxu0 %v6396_v20  ;;  %4767 = vmatpush1.bf16.msra.mxu1 %v6399_v30 }
 0x571   :  { %4737 = vmatprep.subr.bf16.mxu0 %v6404_v45  ;;  %4769 = vmatprep.subr.bf16.mxu1 %v6406_v47 }
 0x574   :  { %4739 = vmatpush1.bf16.msra.mxu0 %v6408_v50  ;;  %4771 = vmatpush1.bf16.msra.mxu1 %v6411_v61 }
 0x575   :  { %4741 = vmatprep.subr.bf16.mxu0 %v6416_v11  ;;  %4773 = vmatprep.subr.bf16.mxu1 %v6418_v28 }
 0x578   :  { %4743 = vmatpush1.bf16.msra.mxu0 %v6420_v33  ;;  %4775 = vmatpush1.bf16.msra.mxu1 %v6423_v46 }
 0x579   :  { %4745 = vmatprep.subr.bf16.mxu0 %v6427_v1  ;;  %4777 = vmatprep.subr.bf16.mxu1 %v6430_v63 }
 0x57c   :  { %4747 = vmatpush1.bf16.msra.mxu0 %v6432_v12  ;;  %4779 = vmatpush1.bf16.msra.mxu1 %v6435_v23 }
 0x57d   :  { %4749 = vmatprep.subr.bf16.mxu0 %v6438_v44  ;;  %4781 = vmatprep.subr.bf16.mxu1 %v6440_v51 }
 0x580   :  { %4751 = vmatpush1.bf16.msra.mxu0 %v6443_v58  ;;  %4783 = vmatpush1.bf16.msra.mxu1 %v6447_v15 }
 0x581   :  { %4753 = vmatprep.subr.bf16.mxu0 %v6449_v19  ;;  %4785 = vmatprep.subr.bf16.mxu1 %v6452_v52 }
 0x584   :  { %4755 = vmatpush1.bf16.msra.mxu0 %v6455_v57  ;;  %4787 = vmatpush1.bf16.msra.mxu1 %v6459_v59 }
 0x63a   :  { %v1723_v38 = vpop.f32.mrb[10].mxu0  ;;  %v1794_v26 = vpop.f32.mrb[10].mxu1 }
 0x63b   :  { %v5462_v37 = vadd.f32 %v1723_v38, %v6249_v14  ;;  %v1725_v48 = vpop.f32.mrb[11].mxu0  ;;  %v1796_v49 = vpop.f32.mrb[11].mxu1  ;;  %v5478_v6 = vadd.f32 %v1794_v26, %v6266_v40 }
 0x63c   :  { %v5463_v55 = vadd.f32 %v1725_v48, %v6253_v17  ;;  %v5479_v56 = vadd.f32 %v1796_v49, %v6260_v32  ;;  %v2076_v48 = vld [vmem:[#allocation4 + $0x28] sm:$0xff] }
 0x63d   :  { %v4246_v31 = vmul.f32 -1.442695, %v5462_v37  ;;  %v2072_v37 = vld [vmem:[#allocation4 + $0x8] sm:$0xff] }
 0x63e   :  { %v4247_v43 = vmul.f32 -1.442695, %v5463_v55  ;;  %v4248_v60 = vmul.f32 -1.442695, %v5479_v56  ;;  %v4788_v49 = vpack.c.bf16 %v2076_v48, %v2072_v37  ;;  %v2078_v55 = vld [vmem:[#allocation4 + $0x38] sm:$0xff] }
 0x63f   :  { %5668 = vpow2.f32 %v4246_v31  ;;  %v2071_v31 = vld [vmem:[#allocation4] sm:$0xff] }
 0x640   :  { %5670 = vpow2.f32 %v4247_v43  ;;  %v2075_v43 = vld [vmem:[#allocation4 + $0x20] sm:$0xff]  ;;  %4789 = vmatprep.subr.bf16.mxu0 %v4788_v49 }
 0x641   :  { %5672 = vpow2.f32 %v4248_v60  ;;  %v4790_v60 = vpack.c.bf16 %v2075_v43, %v2071_v31  ;;  %v2314_v43 = vld [vmem:[#allocation6] sm:$0xff] }
 0x642   :  { %5674 = vtanh.f32 %v5478_v6  ;;  %v2073_v6 = vld [vmem:[#allocation4 + $0x10] sm:$0xff] }
 0x649   :  { %v5669_v22 = vpop.eup %5668 }
 0x64a   :  { %v5671_v7 = vpop.eup %5670  ;;  %v1806_v35 = vadd.f32 1.0, %v5669_v22  ;;  %v2077_v22 = vld [vmem:[#allocation4 + $0x30] sm:$0xff] }
 0x64b   :  { %v1812_v29 = vadd.f32 1.0, %v5671_v7  ;;  %v5673_v27 = vpop.eup %5672  ;;  %v4822_v7 = vpack.c.bf16 %v2077_v22, %v2073_v6  ;;  %v2320_v6 = vld [vmem:[#allocation6 + $0x30] sm:$0xff]  ;;  %v2323_v22 = vld [vmem:[#allocation6 + $0x48] sm:$0xff] }
 0x64c   :  { %5676 = vrcp.f32 %v1806_v35  ;;  %v5675_v41 = vpop.eup %5674  ;;  %v1819_v2 = vadd.f32 1.0, %v5673_v27  ;;  %v2080_v35 = vld [vmem:[#allocation4 + $0x48] sm:$0xff]  ;;  %v2082_v27 = vld [vmem:[#allocation4 + $0x58] sm:$0xff] }
 0x64d   :  { %5678 = vrcp.f32 %v1812_v29  ;;  %v2084_v29 = vld [vmem:[#allocation4 + $0x68] sm:$0xff] }
 0x64e   :  { %5680 = vrcp.f32 %v1819_v2 }
 0x656   :  { %v5677_v25 = vpop.eup %5676 }
 0x657   :  { %v5679_v53 = vpop.eup %5678  ;;  %v1823_v4 = vmul.f32 %v5677_v25, %v5675_v41  ;;  %v4792_v41 = vpack.c.bf16 %v2084_v29, %v2080_v35  ;;  %v2086_v25 = vld [vmem:[#allocation4 + $0x78] sm:$0xff] }
 0x658   :  { %v1822_v5 = vmul.f32 %v5679_v53, %v6517_v8  ;;  %v5681_v24 = vpop.eup %5680  ;;  %v2074_v8 = vld [vmem:[#allocation4 + $0x18] sm:$0xff]  ;;  %v2079_v53 = vld [vmem:[#allocation4 + $0x40] sm:$0xff]  ;;  %v4824_v2 = vpack.c.bf16 %v2086_v25, %v2082_v27 }
 0x659   :  { %v4820_v56 = vpack.c.bf16 %v2078_v55, %v2074_v8  ;;  %v2325_v35 = vld [vmem:[#allocation6 + $0x58] sm:$0xff] }
 0x65a   :  { %v6561_v54 = vadd.f32 %v1823_v4, %v1822_v5  ;;  %v2083_v4 = vld [vmem:[#allocation4 + $0x60] sm:$0xff]  ;;  %v2329_v29 = vld [vmem:[#allocation6 + $0x78] sm:$0xff] }
 0x65b   :  { %4821 = vmatprep.subr.bf16.mxu1 %v4820_v56  ;;  %v4794_v5 = vpack.c.bf16 %v2083_v4, %v2079_v53  ;;  %v2318_v56 = vld [vmem:[#allocation6 + $0x20] sm:$0xff] }
 0x65c   :  { %5682 = vtanh.f32 %v6561_v54  ;;  %v4854_v25 = vpack.c.bf16 %v2318_v56, %v2314_v43  ;;  %v2322_v4 = vld [vmem:[#allocation6 + $0x40] sm:$0xff] }
 0x666   :  { %v5683_v38 = vpop.eup %5682 }
 0x667   :  { %v6564_v26 = vmul.f32 %v5683_v38, %v5681_v24  ;;  %v2081_v24 = vld [vmem:[#allocation4 + $0x50] sm:$0xff] }
 0x668   :  { %v2085_v38 = vld [vmem:[#allocation4 + $0x70] sm:$0xff] }
 0x669   :  { %1961 = vmatmul.mubr.f32.vlgmr.msra.gmra.mrb[12].mxu0 %v6564_v26  ;;  %2032 = vmatmul.mubr.f32.vlgmr.msra.gmra.mrb[12].mxu1 %v6564_v26  ;;  %v4826_v37 = vpack.c.bf16 %v2085_v38, %v2081_v24  ;;  %v4888_v24 = vpack.c.bf16 %v2329_v29, %v2325_v35  ;;  %v2324_v38 = vld [vmem:[#allocation6 + $0x50] sm:$0xff] }
 0x66a   :  { %2199 = vmatprep.mubr.f32.mxu0 %v5919_v0  ;;  %2270 = vmatprep.mubr.f32.mxu1 %v5919_v0  ;;  %v2348_v35 = vld [vmem:[#allocation6 + $0x110] sm:$0xff] }
 0x66b   :  { %4791 = vmatpush1.bf16.msra.mxu0 %v4790_v60  ;;  %4823 = vmatpush1.bf16.msra.mxu1 %v4822_v7  ;;  %v2316_v60 = vld [vmem:[#allocation6 + $0x10] sm:$0xff]  ;;  %v2327_v7 = vld [vmem:[#allocation6 + $0x68] sm:$0xff] }
 0x66c   :  { %4793 = vmatprep.subr.bf16.mxu0 %v4792_v41  ;;  %4825 = vmatprep.subr.bf16.mxu1 %v4824_v2  ;;  %v4886_v53 = vpack.c.bf16 %v2320_v6, %v2316_v60  ;;  %v2326_v2 = vld [vmem:[#allocation6 + $0x60] sm:$0xff]  ;;  %v2352_v29 = vld [vmem:[#allocation6 + $0x130] sm:$0xff] }
 0x66d   :  { %v2346_v60 = vld [vmem:[#allocation6 + $0x100] sm:$0xff] }
 0x66e   :  { %v2350_v6 = vld [vmem:[#allocation6 + $0x120] sm:$0xff] }
 0x66f   :  { %4795 = vmatpush1.bf16.msra.mxu0 %v4794_v5  ;;  %4827 = vmatpush1.bf16.msra.mxu1 %v4826_v37  ;;  %v4856_v5 = vpack.c.bf16 %v2327_v7, %v2323_v22  ;;  %v2328_v37 = vld [vmem:[#allocation6 + $0x70] sm:$0xff] }
 0x670   :  { %4797 = vmatprep.subr.bf16.mxu0 %v6392_v21  ;;  %4829 = vmatprep.subr.bf16.mxu1 %v6394_v34  ;;  %v2315_v21 = vld [vmem:[#allocation6 + $0x8] sm:$0xff] }
 0x671   :  { %v2319_v34 = vld [vmem:[#allocation6 + $0x28] sm:$0xff] }
 0x673   :  { %4799 = vmatpush1.bf16.msra.mxu0 %v6396_v20  ;;  %4831 = vmatpush1.bf16.msra.mxu1 %v6399_v30  ;;  %v2317_v20 = vld [vmem:[#allocation6 + $0x18] sm:$0xff] }
 0x674   :  { %4801 = vmatprep.subr.bf16.mxu0 %v6404_v45  ;;  %4833 = vmatprep.subr.bf16.mxu1 %v6406_v47  ;;  %v2321_v30 = vld [vmem:[#allocation6 + $0x38] sm:$0xff]  ;;  %v4852_v45 = vpack.c.bf16 %v2319_v34, %v2315_v21  ;;  %v2331_v21 = vld [vmem:[#allocation6 + $0x88] sm:$0xff] }
 0x675   :  { %v4884_v47 = vpack.c.bf16 %v2321_v30, %v2317_v20  ;;  %v2335_v34 = vld [vmem:[#allocation6 + $0xa8] sm:$0xff]  ;;  %v2333_v20 = vld [vmem:[#allocation6 + $0x98] sm:$0xff] }
 0x676   :  { %v2337_v30 = vld [vmem:[#allocation6 + $0xb8] sm:$0xff] }
 0x677   :  { %4803 = vmatpush1.bf16.msra.mxu0 %v6408_v50  ;;  %4835 = vmatpush1.bf16.msra.mxu1 %v6411_v61 }
 0x678   :  { %4805 = vmatprep.subr.bf16.mxu0 %v6416_v11  ;;  %4837 = vmatprep.subr.bf16.mxu1 %v6418_v28 }
 0x67b   :  { %4807 = vmatpush1.bf16.msra.mxu0 %v6420_v33  ;;  %4839 = vmatpush1.bf16.msra.mxu1 %v6423_v46 }
 0x67c   :  { %4809 = vmatprep.subr.bf16.mxu0 %v6427_v1  ;;  %4841 = vmatprep.subr.bf16.mxu1 %v6430_v63 }
 0x67f   :  { %4811 = vmatpush1.bf16.msra.mxu0 %v6432_v12  ;;  %4843 = vmatpush1.bf16.msra.mxu1 %v6435_v23 }
 0x680   :  { %4813 = vmatprep.subr.bf16.mxu0 %v6438_v44  ;;  %4845 = vmatprep.subr.bf16.mxu1 %v6440_v51 }
 0x683   :  { %4815 = vmatpush1.bf16.msra.mxu0 %v6443_v58  ;;  %4847 = vmatpush1.bf16.msra.mxu1 %v6447_v15 }
 0x684   :  { %4817 = vmatprep.subr.bf16.mxu0 %v6449_v19  ;;  %4849 = vmatprep.subr.bf16.mxu1 %v6452_v52 }
 0x687   :  { %4819 = vmatpush1.bf16.msra.mxu0 %v6455_v57  ;;  %4851 = vmatpush1.bf16.msra.mxu1 %v6459_v59 }
 0x688   :  { %4853 = vmatprep.subr.bf16.mxu0 %v4852_v45  ;;  %4885 = vmatprep.subr.bf16.mxu1 %v4884_v47  ;;  %v4858_v45 = vpack.c.bf16 %v2326_v2, %v2322_v4  ;;  %v4890_v47 = vpack.c.bf16 %v2328_v37, %v2324_v38  ;;  %v4870_v4 = vpack.c.bf16 %v2350_v6, %v2346_v60  ;;  %v2664_v6 = vld [vmem:[#allocation8 + $0x10] sm:$0xff] }
 0x689   :  { %v4902_v2 = vpack.c.bf16 %v2352_v29, %v2348_v35  ;;  %v2675_v35 = vld [vmem:[#allocation8 + $0x68] sm:$0xff]  ;;  %v2673_v29 = vld [vmem:[#allocation8 + $0x58] sm:$0xff] }
 0x73c   :  { %v1962_v50 = vpop.f32.mrb[12].mxu0  ;;  %v2033_v61 = vpop.f32.mrb[12].mxu1 }
 0x73d   :  { %v5464_v11 = vadd.f32 %v1962_v50, %v6249_v14  ;;  %v1964_v28 = vpop.f32.mrb[13].mxu0  ;;  %v2035_v33 = vpop.f32.mrb[13].mxu1  ;;  %v5480_v44 = vadd.f32 %v2033_v61, %v6266_v40  ;;  %v2330_v50 = vld [vmem:[#allocation6 + $0x80] sm:$0xff] }
 0x73e   :  { %v5465_v46 = vadd.f32 %v1964_v28, %v6253_v17  ;;  %v5481_v12 = vadd.f32 %v2035_v33, %v6260_v32  ;;  %v2334_v61 = vld [vmem:[#allocation6 + $0xa0] sm:$0xff]  ;;  %v4892_v28 = vpack.c.bf16 %v2337_v30, %v2333_v20  ;;  %v2332_v33 = vld [vmem:[#allocation6 + $0x90] sm:$0xff]  ;;  %v2363_v20 = vld [vmem:[#allocation6 + $0x188] sm:$0xff] }
 0x73f   :  { %v4249_v1 = vmul.f32 -1.442695, %v5464_v11  ;;  %v4860_v11 = vpack.c.bf16 %v2335_v34, %v2331_v21  ;;  %v2356_v21 = vld [vmem:[#allocation6 + $0x150] sm:$0xff]  ;;  %v2367_v30 = vld [vmem:[#allocation6 + $0x1a8] sm:$0xff] }
 0x740   :  { %v4250_v63 = vmul.f32 -1.442695, %v5465_v46  ;;  %v4251_v23 = vmul.f32 -1.442695, %v5481_v12  ;;  %v2336_v46 = vld [vmem:[#allocation6 + $0xb0] sm:$0xff]  ;;  %v2341_v12 = vld [vmem:[#allocation6 + $0xd8] sm:$0xff] }
 0x741   :  { %5684 = vpow2.f32 %v4249_v1  ;;  %v2339_v1 = vld [vmem:[#allocation6 + $0xc8] sm:$0xff]  ;;  %v2360_v34 = vld [vmem:[#allocation6 + $0x170] sm:$0xff] }
 0x742   :  { %5686 = vpow2.f32 %v4250_v63  ;;  %v2343_v63 = vld [vmem:[#allocation6 + $0xe8] sm:$0xff] }
 0x743   :  { %5688 = vpow2.f32 %v4251_v23  ;;  %v2345_v23 = vld [vmem:[#allocation6 + $0xf8] sm:$0xff] }
 0x744   :  { %5690 = vtanh.f32 %v5480_v44  ;;  %v4862_v44 = vpack.c.bf16 %v2334_v61, %v2330_v50  ;;  %v4906_v61 = vpack.c.bf16 %v2360_v34, %v2356_v21  ;;  %v2683_v21 = vld [vmem:[#allocation8 + $0xa8] sm:$0xff]  ;;  %v2681_v34 = vld [vmem:[#allocation8 + $0x98] sm:$0xff] }
 0x74b   :  { %v5685_v51 = vpop.eup %5684 }
 0x74c   :  { %v5687_v58 = vpop.eup %5686  ;;  %v2045_v15 = vadd.f32 1.0, %v5685_v51  ;;  %v4894_v51 = vpack.c.bf16 %v2336_v46, %v2332_v33  ;;  %v4876_v33 = vpack.c.bf16 %v2367_v30, %v2363_v20  ;;  %v2685_v30 = vld [vmem:[#allocation8 + $0xb8] sm:$0xff] }
 0x74d   :  { %v2051_v19 = vadd.f32 1.0, %v5687_v58  ;;  %v5689_v52 = vpop.eup %5688  ;;  %v2338_v58 = vld [vmem:[#allocation6 + $0xc0] sm:$0xff] }
 0x74e   :  { %5692 = vrcp.f32 %v2045_v15  ;;  %v5691_v57 = vpop.eup %5690  ;;  %v2058_v49 = vadd.f32 1.0, %v5689_v52  ;;  %v2342_v15 = vld [vmem:[#allocation6 + $0xe0] sm:$0xff]  ;;  %v4896_v52 = vpack.c.bf16 %v2345_v23, %v2341_v12  ;;  %v2371_v12 = vld [vmem:[#allocation6 + $0x1c8] sm:$0xff] }
 0x74f   :  { %5694 = vrcp.f32 %v2051_v19  ;;  %v4864_v19 = vpack.c.bf16 %v2343_v63, %v2339_v1  ;;  %v4866_v43 = vpack.c.bf16 %v2342_v15, %v2338_v58  ;;  %v2364_v1 = vld [vmem:[#allocation6 + $0x190] sm:$0xff]  ;;  %v2375_v23 = vld [vmem:[#allocation6 + $0x1e8] sm:$0xff] }
 0x750   :  { %5696 = vrcp.f32 %v2058_v49  ;;  %v2349_v49 = vld [vmem:[#allocation6 + $0x118] sm:$0xff]  ;;  %v2368_v63 = vld [vmem:[#allocation6 + $0x1b0] sm:$0xff] }
 0x751   :  { %v4910_v15 = vpack.c.bf16 %v2368_v63, %v2364_v1  ;;  %v2691_v1 = vld [vmem:[#allocation8 + $0xe8] sm:$0xff]  ;;  %v2689_v63 = vld [vmem:[#allocation8 + $0xd8] sm:$0xff] }
 0x758   :  { %v5693_v59 = vpop.eup %5692 }
 0x759   :  { %v5695_v48 = vpop.eup %5694  ;;  %v2062_v8 = vmul.f32 %v5693_v59, %v5691_v57  ;;  %v2340_v57 = vld [vmem:[#allocation6 + $0xd0] sm:$0xff] }
 0x75a   :  { %v2061_v55 = vmul.f32 %v5695_v48, %v6561_v54  ;;  %v5697_v27 = vpop.eup %5696  ;;  %v2344_v59 = vld [vmem:[#allocation6 + $0xf0] sm:$0xff]  ;;  %v2347_v48 = vld [vmem:[#allocation6 + $0x108] sm:$0xff] }
 0x75b   :  { %v4898_v56 = vpack.c.bf16 %v2344_v59, %v2340_v57  ;;  %v2374_v59 = vld [vmem:[#allocation6 + $0x1e0] sm:$0xff] }
 0x75c   :  { %v6599_v31 = vadd.f32 %v2062_v8, %v2061_v55  ;;  %v2351_v8 = vld [vmem:[#allocation6 + $0x128] sm:$0xff]  ;;  %v2353_v55 = vld [vmem:[#allocation6 + $0x138] sm:$0xff] }
 0x75d   :  { %v4868_v22 = vpack.c.bf16 %v2351_v8, %v2347_v48  ;;  %v4900_v7 = vpack.c.bf16 %v2353_v55, %v2349_v49  ;;  %v2372_v48 = vld [vmem:[#allocation6 + $0x1d0] sm:$0xff] }
 0x75e   :  { %5698 = vtanh.f32 %v6599_v31  ;;  %v2376_v8 = vld [vmem:[#allocation6 + $0x1f0] sm:$0xff] }
 0x75f   :  { %v4914_v55 = vpack.c.bf16 %v2376_v8, %v2372_v48  ;;  %v2699_v48 = vld [vmem:[#allocation8 + $0x128] sm:$0xff]  ;;  %v2697_v8 = vld [vmem:[#allocation8 + $0x118] sm:$0xff] }
 0x768   :  { %v5699_v41 = vpop.eup %5698 }
 0x769   :  { %v6602_v54 = vmul.f32 %v5699_v41, %v5697_v27  ;;  %v2355_v27 = vld [vmem:[#allocation6 + $0x148] sm:$0xff] }
 0x76a   :  { %v2359_v41 = vld [vmem:[#allocation6 + $0x168] sm:$0xff] }
 0x76b   :  { %2200 = vmatmul.mubr.f32.vlgmr.msra.gmra.mrb[14].mxu0 %v6602_v54  ;;  %2271 = vmatmul.mubr.f32.vlgmr.msra.gmra.mrb[14].mxu1 %v6602_v54  ;;  %v4872_v38 = vpack.c.bf16 %v2359_v41, %v2355_v27  ;;  %v2677_v41 = vld [vmem:[#allocation8 + $0x78] sm:$0xff] }
 0x76c   :  { %4855 = vmatpush1.bf16.msra.mxu0 %v4854_v25  ;;  %4887 = vmatpush1.bf16.msra.mxu1 %v4886_v53  ;;  %v2357_v25 = vld [vmem:[#allocation6 + $0x158] sm:$0xff] }
 0x76d   :  { %4857 = vmatprep.subr.bf16.mxu0 %v4856_v5  ;;  %4889 = vmatprep.subr.bf16.mxu1 %v4888_v24  ;;  %v2361_v53 = vld [vmem:[#allocation6 + $0x178] sm:$0xff]  ;;  %v2354_v5 = vld [vmem:[#allocation6 + $0x140] sm:$0xff] }
 0x76e   :  { %2464 = vmatprep.mubr.f32.mxu0 %v5919_v0  ;;  %2577 = vmatprep.mubr.f32.mxu1 %v5919_v0  ;;  %v2358_v24 = vld [vmem:[#allocation6 + $0x160] sm:$0xff]  ;;  %v4904_v37 = vpack.c.bf16 %v2361_v53, %v2357_v25 }
 0x76f   :  { %v4874_v50 = vpack.c.bf16 %v2358_v24, %v2354_v5  ;;  %v2670_v25 = vld [vmem:[#allocation8 + $0x40] sm:$0xff]  ;;  %v2672_v5 = vld [vmem:[#allocation8 + $0x50] sm:$0xff] }
 0x770   :  { %4859 = vmatpush1.bf16.msra.mxu0 %v4858_v45  ;;  %4891 = vmatpush1.bf16.msra.mxu1 %v4890_v47  ;;  %v2365_v45 = vld [vmem:[#allocation6 + $0x198] sm:$0xff]  ;;  %v2674_v53 = vld [vmem:[#allocation8 + $0x60] sm:$0xff]  ;;  %v2676_v24 = vld [vmem:[#allocation8 + $0x70] sm:$0xff] }
 0x771   :  { %4861 = vmatprep.subr.bf16.mxu0 %v4860_v11  ;;  %4893 = vmatprep.subr.bf16.mxu1 %v4892_v28  ;;  %v2369_v47 = vld [vmem:[#allocation6 + $0x1b8] sm:$0xff]  ;;  %v2362_v11 = vld [vmem:[#allocation6 + $0x180] sm:$0xff] }
 0x772   :  { %v2366_v28 = vld [vmem:[#allocation6 + $0x1a0] sm:$0xff]  ;;  %v4908_v46 = vpack.c.bf16 %v2369_v47, %v2365_v45 }
 0x773   :  { %v4878_v58 = vpack.c.bf16 %v2366_v28, %v2362_v11  ;;  %v2678_v45 = vld [vmem:[#allocation8 + $0x80] sm:$0xff]  ;;  %v2680_v11 = vld [vmem:[#allocation8 + $0x90] sm:$0xff] }
 0x774   :  { %4863 = vmatpush1.bf16.msra.mxu0 %v4862_v44  ;;  %4895 = vmatpush1.bf16.msra.mxu1 %v4894_v51  ;;  %v2373_v44 = vld [vmem:[#allocation6 + $0x1d8] sm:$0xff]  ;;  %v2682_v47 = vld [vmem:[#allocation8 + $0xa0] sm:$0xff]  ;;  %v2684_v28 = vld [vmem:[#allocation8 + $0xb0] sm:$0xff] }
 0x775   :  { %4865 = vmatprep.subr.bf16.mxu0 %v4864_v19  ;;  %4897 = vmatprep.subr.bf16.mxu1 %v4896_v52  ;;  %v2377_v51 = vld [vmem:[#allocation6 + $0x1f8] sm:$0xff]  ;;  %v2370_v19 = vld [vmem:[#allocation6 + $0x1c0] sm:$0xff]  ;;  %v4880_v52 = vpack.c.bf16 %v2375_v23, %v2371_v12 }
 0x776   :  { %v4912_v57 = vpack.c.bf16 %v2377_v51, %v2373_v44  ;;  %v4882_v49 = vpack.c.bf16 %v2374_v59, %v2370_v19  ;;  %v2693_v23 = vld [vmem:[#allocation8 + $0xf8] sm:$0xff]  ;;  %v2686_v44 = vld [vmem:[#allocation8 + $0xc0] sm:$0xff]  ;;  %v2688_v19 = vld [vmem:[#allocation8 + $0xd0] sm:$0xff] }
 0x777   :  { %v2690_v51 = vld [vmem:[#allocation8 + $0xe0] sm:$0xff] }
 0x778   :  { %4867 = vmatpush1.bf16.msra.mxu0 %v4866_v43  ;;  %4899 = vmatpush1.bf16.msra.mxu1 %v4898_v56  ;;  %v2662_v43 = vld [vmem:[#allocation8] sm:$0xff] }
 0x779   :  { %4869 = vmatprep.subr.bf16.mxu0 %v4868_v22  ;;  %4901 = vmatprep.subr.bf16.mxu1 %v4900_v7  ;;  %v2668_v22 = vld [vmem:[#allocation8 + $0x30] sm:$0xff]  ;;  %v2671_v7 = vld [vmem:[#allocation8 + $0x48] sm:$0xff] }
 0x77a   :  { %v6648_v27 = vpack.c.bf16 %v2675_v35, %v2671_v7 }
 0x77c   :  { %4871 = vmatpush1.bf16.msra.mxu0 %v4870_v4  ;;  %4903 = vmatpush1.bf16.msra.mxu1 %v4902_v2  ;;  %v6650_v4 = vpack.c.bf16 %v2677_v41, %v2673_v29  ;;  %v6652_v2 = vpack.c.bf16 %v2674_v53, %v2670_v25  ;;  %v2705_v29 = vld [vmem:[#allocation8 + $0x158] sm:$0xff]  ;;  %v2702_v25 = vld [vmem:[#allocation8 + $0x140] sm:$0xff] }
 0x77d   :  { %4873 = vmatprep.subr.bf16.mxu0 %v4872_v38  ;;  %4905 = vmatprep.subr.bf16.mxu1 %v4904_v37  ;;  %v6655_v38 = vpack.c.bf16 %v2676_v24, %v2672_v5  ;;  %v2679_v37 = vld [vmem:[#allocation8 + $0x88] sm:$0xff]  ;;  %v2709_v41 = vld [vmem:[#allocation8 + $0x178] sm:$0xff]  ;;  %v2706_v5 = vld [vmem:[#allocation8 + $0x160] sm:$0xff] }
 0x77e   :  { %v6660_v20 = vpack.c.bf16 %v2683_v21, %v2679_v37  ;;  %v6696_v53 = vpack.c.bf16 %v2709_v41, %v2705_v29  ;;  %v2704_v24 = vld [vmem:[#allocation8 + $0x150] sm:$0xff]  ;;  %v6699_v21 = vpack.c.bf16 %v2706_v5, %v2702_v25 }
 0x77f   :  { %v2708_v37 = vld [vmem:[#allocation8 + $0x170] sm:$0xff] }
 0x780   :  { %4875 = vmatpush1.bf16.msra.mxu0 %v4874_v50  ;;  %4907 = vmatpush1.bf16.msra.mxu1 %v4906_v61  ;;  %v6662_v50 = vpack.c.bf16 %v2685_v30, %v2681_v34  ;;  %v6664_v61 = vpack.c.bf16 %v2682_v47, %v2678_v45  ;;  %v2711_v34 = vld [vmem:[#allocation8 + $0x188] sm:$0xff]  ;;  %v2713_v45 = vld [vmem:[#allocation8 + $0x198] sm:$0xff]  ;;  %v6703_v47 = vpack.c.bf16 %v2708_v37, %v2704_v24 }
 0x781   :  { %4877 = vmatprep.subr.bf16.mxu0 %v4876_v33  ;;  %4909 = vmatprep.subr.bf16.mxu1 %v4908_v46  ;;  %v6667_v33 = vpack.c.bf16 %v2684_v28, %v2680_v11  ;;  %v2687_v46 = vld [vmem:[#allocation8 + $0xc8] sm:$0xff]  ;;  %v2717_v28 = vld [vmem:[#allocation8 + $0x1b8] sm:$0xff] }
 0x782   :  { %v6672_v12 = vpack.c.bf16 %v2691_v1, %v2687_v46  ;;  %v2715_v30 = vld [vmem:[#allocation8 + $0x1a8] sm:$0xff]  ;;  %v2710_v46 = vld [vmem:[#allocation8 + $0x180] sm:$0xff] }
 0x783   :  { %v6705_v11 = vpack.c.bf16 %v2715_v30, %v2711_v34  ;;  %v2714_v1 = vld [vmem:[#allocation8 + $0x1a0] sm:$0xff] }
 0x784   :  { %4879 = vmatpush1.bf16.msra.mxu0 %v4878_v58  ;;  %4911 = vmatpush1.bf16.msra.mxu1 %v4910_v15  ;;  %v6674_v58 = vpack.c.bf16 %v2693_v23, %v2689_v63  ;;  %v6676_v15 = vpack.c.bf16 %v2690_v51, %v2686_v44  ;;  %v6708_v63 = vpack.c.bf16 %v2717_v28, %v2713_v45  ;;  %v2712_v23 = vld [vmem:[#allocation8 + $0x190] sm:$0xff] }
 0x785   :  { %4881 = vmatprep.subr.bf16.mxu0 %v4880_v52  ;;  %4913 = vmatprep.subr.bf16.mxu1 %v4912_v57  ;;  %v2692_v52 = vld [vmem:[#allocation8 + $0xf0] sm:$0xff]  ;;  %v2695_v57 = vld [vmem:[#allocation8 + $0x108] sm:$0xff]  ;;  %v6711_v51 = vpack.c.bf16 %v2714_v1, %v2710_v46 }
 0x786   :  { %v6679_v59 = vpack.c.bf16 %v2692_v52, %v2688_v19  ;;  %v2716_v44 = vld [vmem:[#allocation8 + $0x1b0] sm:$0xff]  ;;  %v2719_v52 = vld [vmem:[#allocation8 + $0x1c8] sm:$0xff] }
 0x787   :  { %v6715_v19 = vpack.c.bf16 %v2716_v44, %v2712_v23 }
 0x788   :  { %4883 = vmatpush1.bf16.msra.mxu0 %v4882_v49  ;;  %4915 = vmatpush1.bf16.msra.mxu1 %v4914_v55  ;;  %v2701_v49 = vld [vmem:[#allocation8 + $0x138] sm:$0xff]  ;;  %v6683_v55 = vpack.c.bf16 %v2699_v48, %v2695_v57  ;;  %v2723_v57 = vld [vmem:[#allocation8 + $0x1e8] sm:$0xff] }
 0x789   :  { %v2721_v48 = vld [vmem:[#allocation8 + $0x1d8] sm:$0xff] }
 0x78b   :  { %2465 = vmatmul.mubr.f32.vlgmr.msra.gmra.mrb[16].mxu0 %v6272_v18  ;;  %2578 = vmatmul.mubr.f32.vlgmr.msra.gmra.mrb[16].mxu1 %v6272_v18  ;;  %v2663_v18 = vld [vmem:[#allocation8 + $0x8] sm:$0xff] }
 0x78c   :  { %2470 = vmatprep.mubr.f32.mxu0 %v5919_v0  ;;  %2583 = vmatprep.mubr.f32.mxu1 %v5919_v0 }
 0x78f   :  { %2471 = vmatmul.mubr.f32.gmra.mrb[18].mxu0 %v6316_v3  ;;  %2584 = vmatmul.mubr.f32.gmra.mrb[18].mxu1 %v6316_v3  ;;  %v2667_v3 = vld [vmem:[#allocation8 + $0x28] sm:$0xff] }
 0x790   :  { %2476 = vmatprep.mubr.f32.mxu0 %v5919_v0  ;;  %2589 = vmatprep.mubr.f32.mxu1 %v5919_v0 }
 0x793   :  { %2477 = vmatmul.mubr.f32.gmra.mrb[20].mxu0 %v6380_v62  ;;  %2590 = vmatmul.mubr.f32.gmra.mrb[20].mxu1 %v6380_v62  ;;  %v2665_v62 = vld [vmem:[#allocation8 + $0x18] sm:$0xff] }
 0x794   :  { %2482 = vmatprep.mubr.f32.mxu0 %v5919_v0  ;;  %2595 = vmatprep.mubr.f32.mxu1 %v5919_v0 }
 0x797   :  { %2483 = vmatmul.mubr.f32.gmra.mrb[22].mxu0 %v6474_v42  ;;  %2596 = vmatmul.mubr.f32.gmra.mrb[22].mxu1 %v6474_v42  ;;  %v6636_v42 = vpack.c.bf16 %v2667_v3, %v2663_v18  ;;  %v6685_v18 = vpack.c.bf16 %v2701_v49, %v2697_v8  ;;  %v2694_v3 = vld [vmem:[#allocation8 + $0x100] sm:$0xff]  ;;  %v6720_v8 = vpack.c.bf16 %v2723_v57, %v2719_v52  ;;  %v2725_v49 = vld [vmem:[#allocation8 + $0x1f8] sm:$0xff] }
 0x798   :  { %2488 = vmatprep.mubr.f32.mxu0 %v5919_v0  ;;  %2601 = vmatprep.mubr.f32.mxu1 %v5919_v0 }
 0x799   :  { %4917 = vmatprep.subr.bf16.mxu0 %v6636_v42 }
 0x79b   :  { %2489 = vmatmul.mubr.f32.gmra.mrb[24].mxu0 %v6520_v39  ;;  %2602 = vmatmul.mubr.f32.gmra.mrb[24].mxu1 %v6520_v39  ;;  %v2669_v39 = vld [vmem:[#allocation8 + $0x38] sm:$0xff] }
 0x79c   :  { %2494 = vmatprep.mubr.f32.mxu0 %v5919_v0  ;;  %2607 = vmatprep.mubr.f32.mxu1 %v5919_v0  ;;  %v6638_v56 = vpack.c.bf16 %v2669_v39, %v2665_v62  ;;  %v2698_v62 = vld [vmem:[#allocation8 + $0x120] sm:$0xff]  ;;  %v2696_v39 = vld [vmem:[#allocation8 + $0x110] sm:$0xff] }
 0x79e   :  { %4949 = vmatprep.subr.bf16.mxu1 %v6638_v56 }
 0x79f   :  { %2495 = vmatmul.mubr.f32.gmra.mrb[26].mxu0 %v6564_v26  ;;  %2608 = vmatmul.mubr.f32.gmra.mrb[26].mxu1 %v6564_v26  ;;  %v2666_v26 = vld [vmem:[#allocation8 + $0x20] sm:$0xff] }
 0x7a0   :  { %2500 = vmatprep.mubr.f32.mxu0 %v5919_v0  ;;  %2613 = vmatprep.mubr.f32.mxu1 %v5919_v0  ;;  %v6640_v60 = vpack.c.bf16 %v2666_v26, %v2662_v43  ;;  %v6688_v43 = vpack.c.bf16 %v2698_v62, %v2694_v3  ;;  %v2700_v26 = vld [vmem:[#allocation8 + $0x130] sm:$0xff]  ;;  %v2718_v3 = vld [vmem:[#allocation8 + $0x1c0] sm:$0xff] }
 0x7a1   :  { %v6692_v7 = vpack.c.bf16 %v2700_v26, %v2696_v39  ;;  %v2722_v62 = vld [vmem:[#allocation8 + $0x1e0] sm:$0xff]  ;;  %v6722_v39 = vpack.c.bf16 %v2725_v49, %v2721_v48 }
 0x7a2   :  { %4919 = vmatpush1.bf16.msra.mxu0 %v6640_v60  ;;  %v6724_v26 = vpack.c.bf16 %v2722_v62, %v2718_v3 }
 0x7a3   :  { %2501 = vmatmul.mubr.f32.gmra.mrb[28].mxu0 %v6602_v54  ;;  %2614 = vmatmul.mubr.f32.gmra.mrb[28].mxu1 %v6602_v54  ;;  %v6643_v54 = vpack.c.bf16 %v2668_v22, %v2664_v6  ;;  %v2703_v6 = vld [vmem:[#allocation8 + $0x148] sm:$0xff] }
 0x7a4   :  { %2506 = vmatprep.mubr.f32.mxu0 %v5919_v0  ;;  %2619 = vmatprep.mubr.f32.mxu1 %v5919_v0  ;;  %v2707_v22 = vld [vmem:[#allocation8 + $0x168] sm:$0xff] }
 0x7a5   :  { %4951 = vmatpush1.bf16.msra.mxu1 %v6643_v54  ;;  %4921 = vmatprep.subr.bf16.mxu0 %v6648_v27  ;;  %v6694_v35 = vpack.c.bf16 %v2707_v22, %v2703_v6  ;;  %v2720_v6 = vld [vmem:[#allocation8 + $0x1d0] sm:$0xff] }
 0x7a6   :  { %4953 = vmatprep.subr.bf16.mxu1 %v6650_v4  ;;  %4923 = vmatpush1.bf16.msra.mxu0 %v6652_v2  ;;  %v2724_v22 = vld [vmem:[#allocation8 + $0x1f0] sm:$0xff] }
 0x7a7   :  { %4925 = vmatprep.subr.bf16.mxu0 %v6660_v20  ;;  %v6727_v29 = vpack.c.bf16 %v2724_v22, %v2720_v6 }
 0x7a9   :  { %4955 = vmatpush1.bf16.msra.mxu1 %v6655_v38 }
 0x7aa   :  { %4957 = vmatprep.subr.bf16.mxu1 %v6662_v50  ;;  %4927 = vmatpush1.bf16.msra.mxu0 %v6664_v61 }
 0x7ab   :  { %4929 = vmatprep.subr.bf16.mxu0 %v6672_v12 }
 0x7ad   :  { %4959 = vmatpush1.bf16.msra.mxu1 %v6667_v33 }
 0x7ae   :  { %4961 = vmatprep.subr.bf16.mxu1 %v6674_v58  ;;  %4931 = vmatpush1.bf16.msra.mxu0 %v6676_v15 }
 0x7af   :  { %4933 = vmatprep.subr.bf16.mxu0 %v6683_v55 }
 0x7b1   :  { %4963 = vmatpush1.bf16.msra.mxu1 %v6679_v59 }
 0x7b2   :  { %4965 = vmatprep.subr.bf16.mxu1 %v6685_v18  ;;  %4935 = vmatpush1.bf16.msra.mxu0 %v6688_v43 }
 0x7b3   :  { %4937 = vmatprep.subr.bf16.mxu0 %v6694_v35 }
 0x7b5   :  { %4967 = vmatpush1.bf16.msra.mxu1 %v6692_v7 }
 0x7b6   :  { %4969 = vmatprep.subr.bf16.mxu1 %v6696_v53  ;;  %4939 = vmatpush1.bf16.msra.mxu0 %v6699_v21 }
 0x7b7   :  { %4941 = vmatprep.subr.bf16.mxu0 %v6705_v11 }
 0x7b9   :  { %4971 = vmatpush1.bf16.msra.mxu1 %v6703_v47 }
 0x7ba   :  { %4973 = vmatprep.subr.bf16.mxu1 %v6708_v63  ;;  %4943 = vmatpush1.bf16.msra.mxu0 %v6711_v51 }
 0x7bb   :  { %4945 = vmatprep.subr.bf16.mxu0 %v6720_v8 }
 0x7bd   :  { %4975 = vmatpush1.bf16.msra.mxu1 %v6715_v19 }
 0x7be   :  { %4977 = vmatprep.subr.bf16.mxu1 %v6722_v39  ;;  %4947 = vmatpush1.bf16.msra.mxu0 %v6724_v26 }
 0x7bf   :  { %4981 = vmatprep.subr.bf16.mxu0 %v6636_v42 }
 0x7c1   :  { %4979 = vmatpush1.bf16.msra.mxu1 %v6727_v29 }
 0x7c2   :  { %5013 = vmatprep.subr.bf16.mxu1 %v6638_v56 }
 0x83e   :  { %v2201_v41 = vpop.f32.mrb[14].mxu0  ;;  %v2272_v25 = vpop.f32.mrb[14].mxu1 }
 0x83f   :  { %v5466_v5 = vadd.f32 %v2201_v41, %v6249_v14  ;;  %v2203_v24 = vpop.f32.mrb[15].mxu0  ;;  %v2274_v37 = vpop.f32.mrb[15].mxu1  ;;  %v5482_v1 = vadd.f32 %v2272_v25, %v6266_v40 }
 0x840   :  { %v5467_v34 = vadd.f32 %v2203_v24, %v6253_v17  ;;  %v5483_v28 = vadd.f32 %v2274_v37, %v6260_v32 }
 0x841   :  { %v4252_v30 = vmul.f32 -1.442695, %v5466_v5 }
 0x842   :  { %v4253_v45 = vmul.f32 -1.442695, %v5467_v34  ;;  %v4254_v46 = vmul.f32 -1.442695, %v5483_v28 }
 0x843   :  { %5700 = vpow2.f32 %v4252_v30 }
 0x844   :  { %5702 = vpow2.f32 %v4253_v45 }
 0x845   :  { %5704 = vpow2.f32 %v4254_v46 }
 0x846   :  { %5706 = vtanh.f32 %v5482_v1 }
 0x84d   :  { %v5701_v23 = vpop.eup %5700 }
 0x84e   :  { %v5703_v44 = vpop.eup %5702  ;;  %v2284_v52 = vadd.f32 1.0, %v5701_v23 }
 0x84f   :  { %v2290_v57 = vadd.f32 1.0, %v5703_v44  ;;  %v5705_v14 = vpop.eup %5704 }
 0x850   :  { %5708 = vrcp.f32 %v2284_v52  ;;  %v5707_v48 = vpop.eup %5706  ;;  %v2297_v62 = vadd.f32 1.0, %v5705_v14 }
 0x851   :  { %5710 = vrcp.f32 %v2290_v57 }
 0x852   :  { %5712 = vrcp.f32 %v2297_v62 }
 0x85a   :  { %v5709_v17 = vpop.eup %5708 }
 0x85b   :  { %v5711_v49 = vpop.eup %5710  ;;  %v2301_v3 = vmul.f32 %v5709_v17, %v5707_v48 }
 0x85c   :  { %v2300_v6 = vmul.f32 %v5711_v49, %v6599_v31  ;;  %v5713_v40 = vpop.eup %5712  ;;  %v2378_v31 = vld [vmem:[%s7119_s6] sm:$0xf] }
 0x85d   :  { %v6782_v25 = vrot.slane %v2378_v31, %v93_v10  ;;  %v6786_v5 = vrot.slane %v2378_v31, %v97_v13  ;;  %v6792_v23 = vrot.slane %v2378_v31, %v105_v16  ;;  %v6797_v13 = vrot.slane %v2378_v31, %v101_v36 }
 0x85e   :  { %v2302_v32 = vadd.f32 %v2301_v3, %v2300_v6 }
 0x860   :  { %5714 = vtanh.f32 %v2302_v32 }
 0x86a   :  { %v5715_v22 = vpop.eup %5714 }
 0x86b   :  { %v2304_v41 = vmul.f32 %v5715_v22, %v5713_v40 }
 0x86d   :  { %2507 = vmatmul.mubr.f32.gmra.mrb[30].mxu0 %v2304_v41  ;;  %2620 = vmatmul.mubr.f32.gmra.mrb[30].mxu1 %v2304_v41 }
 0x86e   :  { %2790 = vmatprep.mubr.f32.mxu0 %v5919_v0  ;;  %2861 = vmatprep.mubr.f32.mxu1 %v5919_v0 }
 0x871   :  { %2791 = vmatmul.mubr.f32.vlgmr.msra.gmra.mrb[16].mxu0 %v5919_v0  ;;  %2862 = vmatmul.mubr.f32.vlgmr.msra.gmra.mrb[16].mxu1 %v5919_v0 }
 0x872   :  { %4983 = vmatpush1.bf16.msra.mxu0 %v6640_v60  ;;  %5015 = vmatpush1.bf16.msra.mxu1 %v6643_v54 }
 0x873   :  { %4985 = vmatprep.subr.bf16.mxu0 %v6648_v27  ;;  %5017 = vmatprep.subr.bf16.mxu1 %v6650_v4 }
 0x874   :  { %2964 = vmatprep.mubr.f32.mxu0 %v5919_v0  ;;  %3035 = vmatprep.mubr.f32.mxu1 %v5919_v0 }
 0x876   :  { %4987 = vmatpush1.bf16.msra.mxu0 %v6652_v2  ;;  %5019 = vmatpush1.bf16.msra.mxu1 %v6655_v38 }
 0x877   :  { %4989 = vmatprep.subr.bf16.mxu0 %v6660_v20  ;;  %5021 = vmatprep.subr.bf16.mxu1 %v6662_v50 }
 0x87a   :  { %4991 = vmatpush1.bf16.msra.mxu0 %v6664_v61  ;;  %5023 = vmatpush1.bf16.msra.mxu1 %v6667_v33 }
 0x87b   :  { %4993 = vmatprep.subr.bf16.mxu0 %v6672_v12  ;;  %5025 = vmatprep.subr.bf16.mxu1 %v6674_v58 }
 0x87e   :  { %4995 = vmatpush1.bf16.msra.mxu0 %v6676_v15  ;;  %5027 = vmatpush1.bf16.msra.mxu1 %v6679_v59 }
 0x87f   :  { %4997 = vmatprep.subr.bf16.mxu0 %v6683_v55  ;;  %5029 = vmatprep.subr.bf16.mxu1 %v6685_v18 }
 0x882   :  { %4999 = vmatpush1.bf16.msra.mxu0 %v6688_v43  ;;  %5031 = vmatpush1.bf16.msra.mxu1 %v6692_v7 }
 0x883   :  { %5001 = vmatprep.subr.bf16.mxu0 %v6694_v35  ;;  %5033 = vmatprep.subr.bf16.mxu1 %v6696_v53 }
 0x886   :  { %5003 = vmatpush1.bf16.msra.mxu0 %v6699_v21  ;;  %5035 = vmatpush1.bf16.msra.mxu1 %v6703_v47 }
 0x887   :  { %5005 = vmatprep.subr.bf16.mxu0 %v6705_v11  ;;  %5037 = vmatprep.subr.bf16.mxu1 %v6708_v63 }
 0x88a   :  { %5007 = vmatpush1.bf16.msra.mxu0 %v6711_v51  ;;  %5039 = vmatpush1.bf16.msra.mxu1 %v6715_v19 }
 0x88b   :  { %5009 = vmatprep.subr.bf16.mxu0 %v6720_v8  ;;  %5041 = vmatprep.subr.bf16.mxu1 %v6722_v39 }
 0x88e   :  { %5011 = vmatpush1.bf16.msra.mxu0 %v6724_v26  ;;  %5043 = vmatpush1.bf16.msra.mxu1 %v6727_v29 }
 0x88f   :  { %5045 = vmatprep.subr.bf16.mxu0 %v6636_v42  ;;  %5077 = vmatprep.subr.bf16.mxu1 %v6638_v56 }
 0x944   :  { %v2792_v24 = vpop.f32.mrb[16].mxu0  ;;  %v2863_v37 = vpop.f32.mrb[16].mxu1 }
 0x945   :  { %v5484_v34 = vadd.f32 %v2792_v24, %v6782_v25  ;;  %v2794_v30 = vpop.f32.mrb[17].mxu0  ;;  %v2865_v45 = vpop.f32.mrb[17].mxu1  ;;  %v5500_v52 = vadd.f32 %v2863_v37, %v6797_v13 }
 0x946   :  { %v5485_v28 = vadd.f32 %v2794_v30, %v6786_v5  ;;  %v5501_v10 = vadd.f32 %v2865_v45, %v6792_v23 }
 0x947   :  { %v4255_v46 = vmul.f32 -1.442695, %v5484_v34 }
 0x948   :  { %v4256_v1 = vmul.f32 -1.442695, %v5485_v28  ;;  %v4257_v44 = vmul.f32 -1.442695, %v5501_v10 }
 0x949   :  { %5716 = vpow2.f32 %v4255_v46 }
 0x94a   :  { %5718 = vpow2.f32 %v4256_v1 }
 0x94b   :  { %5720 = vpow2.f32 %v4257_v44 }
 0x94c   :  { %5722 = vtanh.f32 %v5500_v52 }
 0x953   :  { %v5717_v57 = vpop.eup %5716 }
 0x954   :  { %v5719_v14 = vpop.eup %5718  ;;  %v2875_v48 = vadd.f32 1.0, %v5717_v57 }
 0x955   :  { %v2881_v17 = vadd.f32 1.0, %v5719_v14  ;;  %v5721_v16 = vpop.eup %5720 }
 0x956   :  { %5724 = vrcp.f32 %v2875_v48  ;;  %v5723_v49 = vpop.eup %5722  ;;  %v2888_v32 = vadd.f32 1.0, %v5721_v16 }
 0x957   :  { %5726 = vrcp.f32 %v2881_v17 }
 0x958   :  { %5728 = vrcp.f32 %v2888_v32 }
 0x960   :  { %v5725_v3 = vpop.eup %5724 }
 0x961   :  { %v5727_v62 = vpop.eup %5726  ;;  %v2892_v6 = vmul.f32 %v5725_v3, %v5723_v49 }
 0x962   :  { %v2891_v9 = vmul.f32 0.0, %v5727_v62  ;;  %v5729_v40 = vpop.eup %5728 }
 0x964   :  { %v6800_v36 = vadd.f32 %v2892_v6, %v2891_v9 }
 0x966   :  { %5730 = vtanh.f32 %v6800_v36 }
 0x970   :  { %v5731_v22 = vpop.eup %5730 }
 0x971   :  { %v2895_v41 = vmul.f32 %v5731_v22, %v5729_v40 }
 0x973   :  { %2965 = vmatmul.mubr.f32.vlgmr.msra.gmra.mrb[18].mxu0 %v2895_v41  ;;  %3036 = vmatmul.mubr.f32.vlgmr.msra.gmra.mrb[18].mxu1 %v2895_v41 }
 0x974   :  { %5047 = vmatpush1.bf16.msra.mxu0 %v6640_v60  ;;  %5079 = vmatpush1.bf16.msra.mxu1 %v6643_v54 }
 0x975   :  { %5049 = vmatprep.subr.bf16.mxu0 %v6648_v27  ;;  %5081 = vmatprep.subr.bf16.mxu1 %v6650_v4 }
 0x976   :  { %3138 = vmatprep.mubr.f32.mxu0 %v5919_v0  ;;  %3209 = vmatprep.mubr.f32.mxu1 %v5919_v0 }
 0x978   :  { %5051 = vmatpush1.bf16.msra.mxu0 %v6652_v2  ;;  %5083 = vmatpush1.bf16.msra.mxu1 %v6655_v38 }
 0x979   :  { %5053 = vmatprep.subr.bf16.mxu0 %v6660_v20  ;;  %5085 = vmatprep.subr.bf16.mxu1 %v6662_v50 }
 0x97c   :  { %5055 = vmatpush1.bf16.msra.mxu0 %v6664_v61  ;;  %5087 = vmatpush1.bf16.msra.mxu1 %v6667_v33 }
 0x97d   :  { %5057 = vmatprep.subr.bf16.mxu0 %v6672_v12  ;;  %5089 = vmatprep.subr.bf16.mxu1 %v6674_v58 }
 0x980   :  { %5059 = vmatpush1.bf16.msra.mxu0 %v6676_v15  ;;  %5091 = vmatpush1.bf16.msra.mxu1 %v6679_v59 }
 0x981   :  { %5061 = vmatprep.subr.bf16.mxu0 %v6683_v55  ;;  %5093 = vmatprep.subr.bf16.mxu1 %v6685_v18 }
 0x984   :  { %5063 = vmatpush1.bf16.msra.mxu0 %v6688_v43  ;;  %5095 = vmatpush1.bf16.msra.mxu1 %v6692_v7 }
 0x985   :  { %5065 = vmatprep.subr.bf16.mxu0 %v6694_v35  ;;  %5097 = vmatprep.subr.bf16.mxu1 %v6696_v53 }
 0x988   :  { %5067 = vmatpush1.bf16.msra.mxu0 %v6699_v21  ;;  %5099 = vmatpush1.bf16.msra.mxu1 %v6703_v47 }
 0x989   :  { %5069 = vmatprep.subr.bf16.mxu0 %v6705_v11  ;;  %5101 = vmatprep.subr.bf16.mxu1 %v6708_v63 }
 0x98c   :  { %5071 = vmatpush1.bf16.msra.mxu0 %v6711_v51  ;;  %5103 = vmatpush1.bf16.msra.mxu1 %v6715_v19 }
 0x98d   :  { %5073 = vmatprep.subr.bf16.mxu0 %v6720_v8  ;;  %5105 = vmatprep.subr.bf16.mxu1 %v6722_v39 }
 0x990   :  { %5075 = vmatpush1.bf16.msra.mxu0 %v6724_v26  ;;  %5107 = vmatpush1.bf16.msra.mxu1 %v6727_v29 }
 0x991   :  { %5109 = vmatprep.subr.bf16.mxu0 %v6636_v42  ;;  %5141 = vmatprep.subr.bf16.mxu1 %v6638_v56 }
 0xa46   :  { %v2966_v31 = vpop.f32.mrb[18].mxu0  ;;  %v3037_v24 = vpop.f32.mrb[18].mxu1 }
 0xa47   :  { %v5486_v37 = vadd.f32 %v2966_v31, %v6782_v25  ;;  %v2968_v34 = vpop.f32.mrb[19].mxu0  ;;  %v3039_v30 = vpop.f32.mrb[19].mxu1  ;;  %v5502_v44 = vadd.f32 %v3037_v24, %v6797_v13 }
 0xa48   :  { %v5487_v45 = vadd.f32 %v2968_v34, %v6786_v5  ;;  %v5503_v1 = vadd.f32 %v3039_v30, %v6792_v23 }
 0xa49   :  { %v4258_v28 = vmul.f32 -1.442695, %v5486_v37 }
 0xa4a   :  { %v4259_v46 = vmul.f32 -1.442695, %v5487_v45  ;;  %v4260_v10 = vmul.f32 -1.442695, %v5503_v1 }
 0xa4b   :  { %5732 = vpow2.f32 %v4258_v28 }
 0xa4c   :  { %5734 = vpow2.f32 %v4259_v46 }
 0xa4d   :  { %5736 = vpow2.f32 %v4260_v10 }
 0xa4e   :  { %5738 = vtanh.f32 %v5502_v44 }
 0xa55   :  { %v5733_v52 = vpop.eup %5732 }
 0xa56   :  { %v5735_v57 = vpop.eup %5734  ;;  %v3049_v14 = vadd.f32 1.0, %v5733_v52 }
 0xa57   :  { %v3055_v48 = vadd.f32 1.0, %v5735_v57  ;;  %v5737_v17 = vpop.eup %5736 }
 0xa58   :  { %5740 = vrcp.f32 %v3049_v14  ;;  %v5739_v16 = vpop.eup %5738  ;;  %v3062_v6 = vadd.f32 1.0, %v5737_v17 }
 0xa59   :  { %5742 = vrcp.f32 %v3055_v48 }
 0xa5a   :  { %5744 = vrcp.f32 %v3062_v6 }
 0xa62   :  { %v5741_v49 = vpop.eup %5740 }
 0xa63   :  { %v5743_v3 = vpop.eup %5742  ;;  %v3066_v62 = vmul.f32 %v5741_v49, %v5739_v16 }
 0xa64   :  { %v3065_v32 = vmul.f32 %v5743_v3, %v6800_v36  ;;  %v5745_v40 = vpop.eup %5744 }
 0xa66   :  { %v6842_v9 = vadd.f32 %v3066_v62, %v3065_v32 }
 0xa68   :  { %5746 = vtanh.f32 %v6842_v9 }
 0xa72   :  { %v5747_v22 = vpop.eup %5746 }
 0xa73   :  { %v3069_v41 = vmul.f32 %v5747_v22, %v5745_v40 }
 0xa75   :  { %3139 = vmatmul.mubr.f32.vlgmr.msra.gmra.mrb[20].mxu0 %v3069_v41  ;;  %3210 = vmatmul.mubr.f32.vlgmr.msra.gmra.mrb[20].mxu1 %v3069_v41 }
 0xa76   :  { %5111 = vmatpush1.bf16.msra.mxu0 %v6640_v60  ;;  %5143 = vmatpush1.bf16.msra.mxu1 %v6643_v54 }
 0xa77   :  { %5113 = vmatprep.subr.bf16.mxu0 %v6648_v27  ;;  %5145 = vmatprep.subr.bf16.mxu1 %v6650_v4 }
 0xa78   :  { %3312 = vmatprep.mubr.f32.mxu0 %v5919_v0  ;;  %3383 = vmatprep.mubr.f32.mxu1 %v5919_v0 }
 0xa7a   :  { %5115 = vmatpush1.bf16.msra.mxu0 %v6652_v2  ;;  %5147 = vmatpush1.bf16.msra.mxu1 %v6655_v38 }
 0xa7b   :  { %5117 = vmatprep.subr.bf16.mxu0 %v6660_v20  ;;  %5149 = vmatprep.subr.bf16.mxu1 %v6662_v50 }
 0xa7e   :  { %5119 = vmatpush1.bf16.msra.mxu0 %v6664_v61  ;;  %5151 = vmatpush1.bf16.msra.mxu1 %v6667_v33 }
 0xa7f   :  { %5121 = vmatprep.subr.bf16.mxu0 %v6672_v12  ;;  %5153 = vmatprep.subr.bf16.mxu1 %v6674_v58 }
 0xa82   :  { %5123 = vmatpush1.bf16.msra.mxu0 %v6676_v15  ;;  %5155 = vmatpush1.bf16.msra.mxu1 %v6679_v59 }
 0xa83   :  { %5125 = vmatprep.subr.bf16.mxu0 %v6683_v55  ;;  %5157 = vmatprep.subr.bf16.mxu1 %v6685_v18 }
 0xa86   :  { %5127 = vmatpush1.bf16.msra.mxu0 %v6688_v43  ;;  %5159 = vmatpush1.bf16.msra.mxu1 %v6692_v7 }
 0xa87   :  { %5129 = vmatprep.subr.bf16.mxu0 %v6694_v35  ;;  %5161 = vmatprep.subr.bf16.mxu1 %v6696_v53 }
 0xa8a   :  { %5131 = vmatpush1.bf16.msra.mxu0 %v6699_v21  ;;  %5163 = vmatpush1.bf16.msra.mxu1 %v6703_v47 }
 0xa8b   :  { %5133 = vmatprep.subr.bf16.mxu0 %v6705_v11  ;;  %5165 = vmatprep.subr.bf16.mxu1 %v6708_v63 }
 0xa8e   :  { %5135 = vmatpush1.bf16.msra.mxu0 %v6711_v51  ;;  %5167 = vmatpush1.bf16.msra.mxu1 %v6715_v19 }
 0xa8f   :  { %5137 = vmatprep.subr.bf16.mxu0 %v6720_v8  ;;  %5169 = vmatprep.subr.bf16.mxu1 %v6722_v39 }
 0xa92   :  { %5139 = vmatpush1.bf16.msra.mxu0 %v6724_v26  ;;  %5171 = vmatpush1.bf16.msra.mxu1 %v6727_v29 }
 0xa93   :  { %5173 = vmatprep.subr.bf16.mxu0 %v6636_v42  ;;  %5205 = vmatprep.subr.bf16.mxu1 %v6638_v56 }
 0xb48   :  { %v3140_v36 = vpop.f32.mrb[20].mxu0  ;;  %v3211_v31 = vpop.f32.mrb[20].mxu1 }
 0xb49   :  { %v5488_v24 = vadd.f32 %v3140_v36, %v6782_v25  ;;  %v3142_v37 = vpop.f32.mrb[21].mxu0  ;;  %v3213_v34 = vpop.f32.mrb[21].mxu1  ;;  %v5504_v10 = vadd.f32 %v3211_v31, %v6797_v13 }
 0xb4a   :  { %v5489_v30 = vadd.f32 %v3142_v37, %v6786_v5  ;;  %v5505_v46 = vadd.f32 %v3213_v34, %v6792_v23 }
 0xb4b   :  { %v4261_v45 = vmul.f32 -1.442695, %v5488_v24 }
 0xb4c   :  { %v4262_v28 = vmul.f32 -1.442695, %v5489_v30  ;;  %v4263_v1 = vmul.f32 -1.442695, %v5505_v46 }
 0xb4d   :  { %5748 = vpow2.f32 %v4261_v45 }
 0xb4e   :  { %5750 = vpow2.f32 %v4262_v28 }
 0xb4f   :  { %5752 = vpow2.f32 %v4263_v1 }
 0xb50   :  { %5754 = vtanh.f32 %v5504_v10 }
 0xb57   :  { %v5749_v44 = vpop.eup %5748 }
 0xb58   :  { %v5751_v52 = vpop.eup %5750  ;;  %v3223_v57 = vadd.f32 1.0, %v5749_v44 }
 0xb59   :  { %v3229_v14 = vadd.f32 1.0, %v5751_v52  ;;  %v5753_v48 = vpop.eup %5752 }
 0xb5a   :  { %5756 = vrcp.f32 %v3223_v57  ;;  %v5755_v17 = vpop.eup %5754  ;;  %v3236_v62 = vadd.f32 1.0, %v5753_v48 }
 0xb5b   :  { %5758 = vrcp.f32 %v3229_v14 }
 0xb5c   :  { %5760 = vrcp.f32 %v3236_v62 }
 0xb64   :  { %v5757_v16 = vpop.eup %5756 }
 0xb65   :  { %v5759_v49 = vpop.eup %5758  ;;  %v3240_v3 = vmul.f32 %v5757_v16, %v5755_v17 }
 0xb66   :  { %v3239_v6 = vmul.f32 %v5759_v49, %v6842_v9  ;;  %v5761_v40 = vpop.eup %5760 }
 0xb68   :  { %v6884_v32 = vadd.f32 %v3240_v3, %v3239_v6 }
 0xb6a   :  { %5762 = vtanh.f32 %v6884_v32 }
 0xb74   :  { %v5763_v22 = vpop.eup %5762 }
 0xb75   :  { %v3243_v41 = vmul.f32 %v5763_v22, %v5761_v40 }
 0xb77   :  { %3313 = vmatmul.mubr.f32.vlgmr.msra.gmra.mrb[22].mxu0 %v3243_v41  ;;  %3384 = vmatmul.mubr.f32.vlgmr.msra.gmra.mrb[22].mxu1 %v3243_v41 }
 0xb78   :  { %5175 = vmatpush1.bf16.msra.mxu0 %v6640_v60  ;;  %5207 = vmatpush1.bf16.msra.mxu1 %v6643_v54 }
 0xb79   :  { %5177 = vmatprep.subr.bf16.mxu0 %v6648_v27  ;;  %5209 = vmatprep.subr.bf16.mxu1 %v6650_v4 }
 0xb7a   :  { %3486 = vmatprep.mubr.f32.mxu0 %v5919_v0  ;;  %3557 = vmatprep.mubr.f32.mxu1 %v5919_v0 }
 0xb7c   :  { %5179 = vmatpush1.bf16.msra.mxu0 %v6652_v2  ;;  %5211 = vmatpush1.bf16.msra.mxu1 %v6655_v38 }
 0xb7d   :  { %5181 = vmatprep.subr.bf16.mxu0 %v6660_v20  ;;  %5213 = vmatprep.subr.bf16.mxu1 %v6662_v50 }
 0xb80   :  { %5183 = vmatpush1.bf16.msra.mxu0 %v6664_v61  ;;  %5215 = vmatpush1.bf16.msra.mxu1 %v6667_v33 }
 0xb81   :  { %5185 = vmatprep.subr.bf16.mxu0 %v6672_v12  ;;  %5217 = vmatprep.subr.bf16.mxu1 %v6674_v58 }
 0xb84   :  { %5187 = vmatpush1.bf16.msra.mxu0 %v6676_v15  ;;  %5219 = vmatpush1.bf16.msra.mxu1 %v6679_v59 }
 0xb85   :  { %5189 = vmatprep.subr.bf16.mxu0 %v6683_v55  ;;  %5221 = vmatprep.subr.bf16.mxu1 %v6685_v18 }
 0xb88   :  { %5191 = vmatpush1.bf16.msra.mxu0 %v6688_v43  ;;  %5223 = vmatpush1.bf16.msra.mxu1 %v6692_v7 }
 0xb89   :  { %5193 = vmatprep.subr.bf16.mxu0 %v6694_v35  ;;  %5225 = vmatprep.subr.bf16.mxu1 %v6696_v53 }
 0xb8c   :  { %5195 = vmatpush1.bf16.msra.mxu0 %v6699_v21  ;;  %5227 = vmatpush1.bf16.msra.mxu1 %v6703_v47 }
 0xb8d   :  { %5197 = vmatprep.subr.bf16.mxu0 %v6705_v11  ;;  %5229 = vmatprep.subr.bf16.mxu1 %v6708_v63 }
 0xb90   :  { %5199 = vmatpush1.bf16.msra.mxu0 %v6711_v51  ;;  %5231 = vmatpush1.bf16.msra.mxu1 %v6715_v19 }
 0xb91   :  { %5201 = vmatprep.subr.bf16.mxu0 %v6720_v8  ;;  %5233 = vmatprep.subr.bf16.mxu1 %v6722_v39 }
 0xb94   :  { %5203 = vmatpush1.bf16.msra.mxu0 %v6724_v26  ;;  %5235 = vmatpush1.bf16.msra.mxu1 %v6727_v29 }
 0xb95   :  { %5237 = vmatprep.subr.bf16.mxu0 %v6636_v42  ;;  %5269 = vmatprep.subr.bf16.mxu1 %v6638_v56 }
 0xc4a   :  { %v3314_v9 = vpop.f32.mrb[22].mxu0  ;;  %v3385_v36 = vpop.f32.mrb[22].mxu1 }
 0xc4b   :  { %v5490_v31 = vadd.f32 %v3314_v9, %v6782_v25  ;;  %v3316_v24 = vpop.f32.mrb[23].mxu0  ;;  %v3387_v37 = vpop.f32.mrb[23].mxu1  ;;  %v5506_v1 = vadd.f32 %v3385_v36, %v6797_v13 }
 0xc4c   :  { %v5491_v34 = vadd.f32 %v3316_v24, %v6786_v5  ;;  %v5507_v28 = vadd.f32 %v3387_v37, %v6792_v23 }
 0xc4d   :  { %v4264_v30 = vmul.f32 -1.442695, %v5490_v31 }
 0xc4e   :  { %v4265_v45 = vmul.f32 -1.442695, %v5491_v34  ;;  %v4266_v46 = vmul.f32 -1.442695, %v5507_v28 }
 0xc4f   :  { %5764 = vpow2.f32 %v4264_v30 }
 0xc50   :  { %5766 = vpow2.f32 %v4265_v45 }
 0xc51   :  { %5768 = vpow2.f32 %v4266_v46 }
 0xc52   :  { %5770 = vtanh.f32 %v5506_v1 }
 0xc59   :  { %v5765_v10 = vpop.eup %5764 }
 0xc5a   :  { %v5767_v44 = vpop.eup %5766  ;;  %v3397_v52 = vadd.f32 1.0, %v5765_v10 }
 0xc5b   :  { %v3403_v57 = vadd.f32 1.0, %v5767_v44  ;;  %v5769_v14 = vpop.eup %5768 }
 0xc5c   :  { %5772 = vrcp.f32 %v3397_v52  ;;  %v5771_v48 = vpop.eup %5770  ;;  %v3410_v3 = vadd.f32 1.0, %v5769_v14 }
 0xc5d   :  { %5774 = vrcp.f32 %v3403_v57 }
 0xc5e   :  { %5776 = vrcp.f32 %v3410_v3 }
 0xc66   :  { %v5773_v17 = vpop.eup %5772 }
 0xc67   :  { %v5775_v16 = vpop.eup %5774  ;;  %v3414_v49 = vmul.f32 %v5773_v17, %v5771_v48 }
 0xc68   :  { %v3413_v62 = vmul.f32 %v5775_v16, %v6884_v32  ;;  %v5777_v40 = vpop.eup %5776 }
 0xc6a   :  { %v6926_v6 = vadd.f32 %v3414_v49, %v3413_v62 }
 0xc6c   :  { %5778 = vtanh.f32 %v6926_v6 }
 0xc76   :  { %v5779_v22 = vpop.eup %5778 }
 0xc77   :  { %v3417_v41 = vmul.f32 %v5779_v22, %v5777_v40 }
 0xc79   :  { %3487 = vmatmul.mubr.f32.vlgmr.msra.gmra.mrb[24].mxu0 %v3417_v41  ;;  %3558 = vmatmul.mubr.f32.vlgmr.msra.gmra.mrb[24].mxu1 %v3417_v41 }
 0xc7a   :  { %5239 = vmatpush1.bf16.msra.mxu0 %v6640_v60  ;;  %5271 = vmatpush1.bf16.msra.mxu1 %v6643_v54 }
 0xc7b   :  { %5241 = vmatprep.subr.bf16.mxu0 %v6648_v27  ;;  %5273 = vmatprep.subr.bf16.mxu1 %v6650_v4 }
 0xc7c   :  { %3660 = vmatprep.mubr.f32.mxu0 %v5919_v0  ;;  %3731 = vmatprep.mubr.f32.mxu1 %v5919_v0 }
 0xc7e   :  { %5243 = vmatpush1.bf16.msra.mxu0 %v6652_v2  ;;  %5275 = vmatpush1.bf16.msra.mxu1 %v6655_v38 }
 0xc7f   :  { %5245 = vmatprep.subr.bf16.mxu0 %v6660_v20  ;;  %5277 = vmatprep.subr.bf16.mxu1 %v6662_v50 }
 0xc82   :  { %5247 = vmatpush1.bf16.msra.mxu0 %v6664_v61  ;;  %5279 = vmatpush1.bf16.msra.mxu1 %v6667_v33 }
 0xc83   :  { %5249 = vmatprep.subr.bf16.mxu0 %v6672_v12  ;;  %5281 = vmatprep.subr.bf16.mxu1 %v6674_v58 }
 0xc86   :  { %5251 = vmatpush1.bf16.msra.mxu0 %v6676_v15  ;;  %5283 = vmatpush1.bf16.msra.mxu1 %v6679_v59 }
 0xc87   :  { %5253 = vmatprep.subr.bf16.mxu0 %v6683_v55  ;;  %5285 = vmatprep.subr.bf16.mxu1 %v6685_v18 }
 0xc8a   :  { %5255 = vmatpush1.bf16.msra.mxu0 %v6688_v43  ;;  %5287 = vmatpush1.bf16.msra.mxu1 %v6692_v7 }
 0xc8b   :  { %5257 = vmatprep.subr.bf16.mxu0 %v6694_v35  ;;  %5289 = vmatprep.subr.bf16.mxu1 %v6696_v53 }
 0xc8e   :  { %5259 = vmatpush1.bf16.msra.mxu0 %v6699_v21  ;;  %5291 = vmatpush1.bf16.msra.mxu1 %v6703_v47 }
 0xc8f   :  { %5261 = vmatprep.subr.bf16.mxu0 %v6705_v11  ;;  %5293 = vmatprep.subr.bf16.mxu1 %v6708_v63 }
 0xc92   :  { %5263 = vmatpush1.bf16.msra.mxu0 %v6711_v51  ;;  %5295 = vmatpush1.bf16.msra.mxu1 %v6715_v19 }
 0xc93   :  { %5265 = vmatprep.subr.bf16.mxu0 %v6720_v8  ;;  %5297 = vmatprep.subr.bf16.mxu1 %v6722_v39 }
 0xc96   :  { %5267 = vmatpush1.bf16.msra.mxu0 %v6724_v26  ;;  %5299 = vmatpush1.bf16.msra.mxu1 %v6727_v29 }
 0xc97   :  { %5301 = vmatprep.subr.bf16.mxu0 %v6636_v42  ;;  %5333 = vmatprep.subr.bf16.mxu1 %v6638_v56 }
 0xd4c   :  { %v3488_v32 = vpop.f32.mrb[24].mxu0  ;;  %v3559_v9 = vpop.f32.mrb[24].mxu1 }
 0xd4d   :  { %v5492_v36 = vadd.f32 %v3488_v32, %v6782_v25  ;;  %v3490_v31 = vpop.f32.mrb[25].mxu0  ;;  %v3561_v24 = vpop.f32.mrb[25].mxu1  ;;  %v5508_v46 = vadd.f32 %v3559_v9, %v6797_v13 }
 0xd4e   :  { %v5493_v37 = vadd.f32 %v3490_v31, %v6786_v5  ;;  %v5509_v45 = vadd.f32 %v3561_v24, %v6792_v23 }
 0xd4f   :  { %v4267_v34 = vmul.f32 -1.442695, %v5492_v36 }
 0xd50   :  { %v4268_v30 = vmul.f32 -1.442695, %v5493_v37  ;;  %v4269_v28 = vmul.f32 -1.442695, %v5509_v45 }
 0xd51   :  { %5780 = vpow2.f32 %v4267_v34 }
 0xd52   :  { %5782 = vpow2.f32 %v4268_v30 }
 0xd53   :  { %5784 = vpow2.f32 %v4269_v28 }
 0xd54   :  { %5786 = vtanh.f32 %v5508_v46 }
 0xd5b   :  { %v5781_v1 = vpop.eup %5780 }
 0xd5c   :  { %v5783_v10 = vpop.eup %5782  ;;  %v3571_v44 = vadd.f32 1.0, %v5781_v1 }
 0xd5d   :  { %v3577_v52 = vadd.f32 1.0, %v5783_v10  ;;  %v5785_v57 = vpop.eup %5784 }
 0xd5e   :  { %5788 = vrcp.f32 %v3571_v44  ;;  %v5787_v14 = vpop.eup %5786  ;;  %v3584_v49 = vadd.f32 1.0, %v5785_v57 }
 0xd5f   :  { %5790 = vrcp.f32 %v3577_v52 }
 0xd60   :  { %5792 = vrcp.f32 %v3584_v49 }
 0xd68   :  { %v5789_v48 = vpop.eup %5788 }
 0xd69   :  { %v5791_v17 = vpop.eup %5790  ;;  %v3588_v16 = vmul.f32 %v5789_v48, %v5787_v14 }
 0xd6a   :  { %v3587_v3 = vmul.f32 %v5791_v17, %v6926_v6  ;;  %v5793_v40 = vpop.eup %5792 }
 0xd6c   :  { %v6968_v62 = vadd.f32 %v3588_v16, %v3587_v3 }
 0xd6e   :  { %5794 = vtanh.f32 %v6968_v62 }
 0xd78   :  { %v5795_v22 = vpop.eup %5794 }
 0xd79   :  { %v3591_v41 = vmul.f32 %v5795_v22, %v5793_v40  ;;  %v4117_v22 = vld [vmem:[%s7120_s7 + $0x18] sm:$0xff] }
 0xd7b   :  { %3661 = vmatmul.mubr.f32.vlgmr.msra.gmra.mrb[26].mxu0 %v3591_v41  ;;  %3732 = vmatmul.mubr.f32.vlgmr.msra.gmra.mrb[26].mxu1 %v3591_v41 }
 0xd7c   :  { %5303 = vmatpush1.bf16.msra.mxu0 %v6640_v60  ;;  %5335 = vmatpush1.bf16.msra.mxu1 %v6643_v54 }
 0xd7d   :  { %5305 = vmatprep.subr.bf16.mxu0 %v6648_v27  ;;  %5337 = vmatprep.subr.bf16.mxu1 %v6650_v4 }
 0xd7e   :  { %3834 = vmatprep.mubr.f32.mxu0 %v5919_v0  ;;  %3905 = vmatprep.mubr.f32.mxu1 %v5919_v0 }
 0xd80   :  { %5307 = vmatpush1.bf16.msra.mxu0 %v6652_v2  ;;  %5339 = vmatpush1.bf16.msra.mxu1 %v6655_v38 }
 0xd81   :  { %5309 = vmatprep.subr.bf16.mxu0 %v6660_v20  ;;  %5341 = vmatprep.subr.bf16.mxu1 %v6662_v50 }
 0xd84   :  { %5311 = vmatpush1.bf16.msra.mxu0 %v6664_v61  ;;  %5343 = vmatpush1.bf16.msra.mxu1 %v6667_v33 }
 0xd85   :  { %5313 = vmatprep.subr.bf16.mxu0 %v6672_v12  ;;  %5345 = vmatprep.subr.bf16.mxu1 %v6674_v58 }
 0xd88   :  { %5315 = vmatpush1.bf16.msra.mxu0 %v6676_v15  ;;  %5347 = vmatpush1.bf16.msra.mxu1 %v6679_v59 }
 0xd89   :  { %5317 = vmatprep.subr.bf16.mxu0 %v6683_v55  ;;  %5349 = vmatprep.subr.bf16.mxu1 %v6685_v18 }
 0xd8c   :  { %5319 = vmatpush1.bf16.msra.mxu0 %v6688_v43  ;;  %5351 = vmatpush1.bf16.msra.mxu1 %v6692_v7 }
 0xd8d   :  { %5321 = vmatprep.subr.bf16.mxu0 %v6694_v35  ;;  %5353 = vmatprep.subr.bf16.mxu1 %v6696_v53 }
 0xd90   :  { %5323 = vmatpush1.bf16.msra.mxu0 %v6699_v21  ;;  %5355 = vmatpush1.bf16.msra.mxu1 %v6703_v47 }
 0xd91   :  { %5325 = vmatprep.subr.bf16.mxu0 %v6705_v11  ;;  %5357 = vmatprep.subr.bf16.mxu1 %v6708_v63 }
 0xd94   :  { %5327 = vmatpush1.bf16.msra.mxu0 %v6711_v51  ;;  %5359 = vmatpush1.bf16.msra.mxu1 %v6715_v19 }
 0xd95   :  { %5329 = vmatprep.subr.bf16.mxu0 %v6720_v8  ;;  %5361 = vmatprep.subr.bf16.mxu1 %v6722_v39 }
 0xd98   :  { %5331 = vmatpush1.bf16.msra.mxu0 %v6724_v26  ;;  %5363 = vmatpush1.bf16.msra.mxu1 %v6727_v29 }
 0xd99   :  { %5365 = vmatprep.subr.bf16.mxu0 %v6636_v42  ;;  %5397 = vmatprep.subr.bf16.mxu1 %v6638_v56 }
 0xe4e   :  { %v3662_v6 = vpop.f32.mrb[26].mxu0  ;;  %v3733_v32 = vpop.f32.mrb[26].mxu1 }
 0xe4f   :  { %v5494_v9 = vadd.f32 %v3662_v6, %v6782_v25  ;;  %v3664_v36 = vpop.f32.mrb[27].mxu0  ;;  %v3735_v31 = vpop.f32.mrb[27].mxu1  ;;  %v5510_v28 = vadd.f32 %v3733_v32, %v6797_v13  ;;  %v4118_v6 = vld [vmem:[%s7120_s7 + $0x20] sm:$0xff]  ;;  %v4119_v32 = vld [vmem:[%s7120_s7 + $0x28] sm:$0xff] }
 0xe50   :  { %v5495_v24 = vadd.f32 %v3664_v36, %v6786_v5  ;;  %v5511_v30 = vadd.f32 %v3735_v31, %v6792_v23  ;;  %v4120_v36 = vld [vmem:[%s7120_s7 + $0x30] sm:$0xff]  ;;  %v4121_v31 = vld [vmem:[%s7120_s7 + $0x38] sm:$0xff] }
 0xe51   :  { %v4270_v37 = vmul.f32 -1.442695, %v5494_v9  ;;  %v5435_v9 = vpack.c.bf16 %v4119_v32, %v4118_v6 }
 0xe52   :  { %v4271_v34 = vmul.f32 -1.442695, %v5495_v24  ;;  %v4272_v45 = vmul.f32 -1.442695, %v5511_v30  ;;  %v5438_v24 = vpack.c.bf16 %v4121_v31, %v4120_v36 }
 0xe53   :  { %5796 = vpow2.f32 %v4270_v37  ;;  %v4122_v37 = vld [vmem:[%s7120_s7 + $0x40] sm:$0xff] }
 0xe54   :  { %5798 = vpow2.f32 %v4271_v34  ;;  %v4123_v34 = vld [vmem:[%s7120_s7 + $0x48] sm:$0xff] }
 0xe55   :  { %5800 = vpow2.f32 %v4272_v45  ;;  %v5441_v30 = vpack.c.bf16 %v4123_v34, %v4122_v37  ;;  %v4124_v45 = vld [vmem:[%s7120_s7 + $0x50] sm:$0xff] }
 0xe56   :  { %5802 = vtanh.f32 %v5510_v28  ;;  %v4125_v28 = vld [vmem:[%s7120_s7 + $0x58] sm:$0xff] }
 0xe5d   :  { %v5797_v42 = vpop.eup %5796 }
 0xe5e   :  { %v5799_v46 = vpop.eup %5798  ;;  %v3745_v56 = vadd.f32 1.0, %v5797_v42  ;;  %v4126_v42 = vld [vmem:[%s7120_s7 + $0x60] sm:$0xff] }
 0xe5f   :  { %v3751_v1 = vadd.f32 1.0, %v5799_v46  ;;  %v5801_v10 = vpop.eup %5800  ;;  %v5444_v46 = vpack.c.bf16 %v4125_v28, %v4124_v45 }
 0xe60   :  { %5804 = vrcp.f32 %v3745_v56  ;;  %v5803_v44 = vpop.eup %5802  ;;  %v3758_v48 = vadd.f32 1.0, %v5801_v10  ;;  %v4127_v56 = vld [vmem:[%s7120_s7 + $0x68] sm:$0xff]  ;;  %v4128_v10 = vld [vmem:[%s7120_s7 + $0x70] sm:$0xff] }
 0xe61   :  { %5806 = vrcp.f32 %v3751_v1  ;;  %v5447_v1 = vpack.c.bf16 %v4127_v56, %v4126_v42 }
 0xe62   :  { %5808 = vrcp.f32 %v3758_v48 }
 0xe6a   :  { %v5805_v52 = vpop.eup %5804 }
 0xe6b   :  { %v5807_v57 = vpop.eup %5806  ;;  %v3762_v14 = vmul.f32 %v5805_v52, %v5803_v44  ;;  %v4129_v44 = vld [vmem:[%s7120_s7 + $0x78] sm:$0xff] }
 0xe6c   :  { %v3761_v17 = vmul.f32 %v5807_v57, %v6968_v62  ;;  %v5809_v49 = vpop.eup %5808  ;;  %v4116_v62 = vld [vmem:[%s7120_s7 + $0x10] sm:$0xff]  ;;  %v5450_v52 = vpack.c.bf16 %v4129_v44, %v4128_v10 }
 0xe6d   :  { %v5432_v41 = vpack.c.bf16 %v4117_v22, %v4116_v62 }
 0xe6e   :  { %v7010_v16 = vadd.f32 %v3762_v14, %v3761_v17 }
 0xe70   :  { %5810 = vtanh.f32 %v7010_v16 }
 0xe7a   :  { %v5811_v3 = vpop.eup %5810 }
 0xe7b   :  { %v3765_v40 = vmul.f32 %v5811_v3, %v5809_v49 }
 0xe7d   :  { %3835 = vmatmul.mubr.f32.vlgmr.msra.gmra.mrb[28].mxu0 %v3765_v40  ;;  %3906 = vmatmul.mubr.f32.vlgmr.msra.gmra.mrb[28].mxu1 %v3765_v40 }
 0xe7e   :  { %5367 = vmatpush1.bf16.msra.mxu0 %v6640_v60  ;;  %5399 = vmatpush1.bf16.msra.mxu1 %v6643_v54 }
 0xe7f   :  { %5369 = vmatprep.subr.bf16.mxu0 %v6648_v27  ;;  %5401 = vmatprep.subr.bf16.mxu1 %v6650_v4 }
 0xe80   :  { %4008 = vmatprep.mubr.f32.mxu0 %v5919_v0  ;;  %4079 = vmatprep.mubr.f32.mxu1 %v5919_v0 }
 0xe82   :  { %5371 = vmatpush1.bf16.msra.mxu0 %v6652_v2  ;;  %5403 = vmatpush1.bf16.msra.mxu1 %v6655_v38 }
 0xe83   :  { %5373 = vmatprep.subr.bf16.mxu0 %v6660_v20  ;;  %5405 = vmatprep.subr.bf16.mxu1 %v6662_v50 }
 0xe86   :  { %5375 = vmatpush1.bf16.msra.mxu0 %v6664_v61  ;;  %5407 = vmatpush1.bf16.msra.mxu1 %v6667_v33 }
 0xe87   :  { %5377 = vmatprep.subr.bf16.mxu0 %v6672_v12  ;;  %5409 = vmatprep.subr.bf16.mxu1 %v6674_v58 }
 0xe8a   :  { %5379 = vmatpush1.bf16.msra.mxu0 %v6676_v15  ;;  %5411 = vmatpush1.bf16.msra.mxu1 %v6679_v59 }
 0xe8b   :  { %5381 = vmatprep.subr.bf16.mxu0 %v6683_v55  ;;  %5413 = vmatprep.subr.bf16.mxu1 %v6685_v18 }
 0xe8e   :  { %5383 = vmatpush1.bf16.msra.mxu0 %v6688_v43  ;;  %5415 = vmatpush1.bf16.msra.mxu1 %v6692_v7 }
 0xe8f   :  { %5385 = vmatprep.subr.bf16.mxu0 %v6694_v35  ;;  %5417 = vmatprep.subr.bf16.mxu1 %v6696_v53 }
 0xe92   :  { %5387 = vmatpush1.bf16.msra.mxu0 %v6699_v21  ;;  %5419 = vmatpush1.bf16.msra.mxu1 %v6703_v47 }
 0xe93   :  { %5389 = vmatprep.subr.bf16.mxu0 %v6705_v11  ;;  %5421 = vmatprep.subr.bf16.mxu1 %v6708_v63 }
 0xe96   :  { %5391 = vmatpush1.bf16.msra.mxu0 %v6711_v51  ;;  %5423 = vmatpush1.bf16.msra.mxu1 %v6715_v19 }
 0xe97   :  { %5393 = vmatprep.subr.bf16.mxu0 %v6720_v8  ;;  %5425 = vmatprep.subr.bf16.mxu1 %v6722_v39  ;;  %v4114_v8 = vld [vmem:[%s7120_s7] sm:$0xff]  ;;  %v4115_v39 = vld [vmem:[%s7120_s7 + $0x8] sm:$0xff] }
 0xe9a   :  { %5395 = vmatpush1.bf16.msra.mxu0 %v6724_v26  ;;  %5427 = vmatpush1.bf16.msra.mxu1 %v6727_v29  ;;  %v5429_v26 = vpack.c.bf16 %v4115_v39, %v4114_v8  ;;  %v5920_v29 = vmov 0.0|0.0  }
 0xe9b   :  { %5428 = vmatprep.subr.bf16.mxu0 %v5920_v29 }
 0xf50   :  { %v3836_v60 = vpop.f32.mrb[28].mxu0  ;;  %v3907_v54 = vpop.f32.mrb[28].mxu1 }
 0xf51   :  { %v5496_v27 = vadd.f32 %v3836_v60, %v6782_v25  ;;  %v3838_v4 = vpop.f32.mrb[29].mxu0  ;;  %v3909_v2 = vpop.f32.mrb[29].mxu1  ;;  %v5512_v12 = vadd.f32 %v3907_v54, %v6797_v13 }
 0xf52   :  { %v5497_v38 = vadd.f32 %v3838_v4, %v6786_v5  ;;  %v5513_v61 = vadd.f32 %v3909_v2, %v6792_v23 }
 0xf53   :  { %v4273_v20 = vmul.f32 -1.442695, %v5496_v27 }
 0xf54   :  { %v4274_v50 = vmul.f32 -1.442695, %v5497_v38  ;;  %v4275_v33 = vmul.f32 -1.442695, %v5513_v61 }
 0xf55   :  { %5812 = vpow2.f32 %v4273_v20 }
 0xf56   :  { %5814 = vpow2.f32 %v4274_v50 }
 0xf57   :  { %5816 = vpow2.f32 %v4275_v33 }
 0xf58   :  { %5818 = vtanh.f32 %v5512_v12 }
 0xf5f   :  { %v5813_v58 = vpop.eup %5812 }
 0xf60   :  { %v5815_v15 = vpop.eup %5814  ;;  %v3919_v59 = vadd.f32 1.0, %v5813_v58 }
 0xf61   :  { %v3925_v55 = vadd.f32 1.0, %v5815_v15  ;;  %v5817_v18 = vpop.eup %5816 }
 0xf62   :  { %5820 = vrcp.f32 %v3919_v59  ;;  %v5819_v43 = vpop.eup %5818  ;;  %v3932_v21 = vadd.f32 1.0, %v5817_v18  ;;  %v4279_v59 = vld [vmem:[%s7121_s8] ss:$0 sm:$0xff] }
 0xf63   :  { %5822 = vrcp.f32 %v3925_v55 }
 0xf64   :  { %5824 = vrcp.f32 %v3932_v21 }
 0xf6c   :  { %v5821_v7 = vpop.eup %5820 }
 0xf6d   :  { %v5823_v35 = vpop.eup %5822  ;;  %v3936_v53 = vmul.f32 %v5821_v7, %v5819_v43 }
 0xf6e   :  { %v3935_v47 = vmul.f32 %v5823_v35, %v7010_v16  ;;  %v5825_v63 = vpop.eup %5824 }
 0xf70   :  { %v7050_v11 = vadd.f32 %v3936_v53, %v3935_v47 }
 0xf72   :  { %5826 = vtanh.f32 %v7050_v11 }
 0xf7c   :  { %v5827_v51 = vpop.eup %5826 }
 0xf7d   :  { %v3939_v19 = vmul.f32 %v5827_v51, %v5825_v63 }
 0xf7f   :  { %4009 = vmatmul.mubr.f32.vlgmr.msra.gmra.mrb[30].mxu0 %v3939_v19  ;;  %4080 = vmatmul.mubr.f32.vlgmr.msra.gmra.mrb[30].mxu1 %v3939_v19 }
 0xf80   :  { %5430 = vmatpush3.bf16.msra.mxu0 %v5429_v26  ;;  %4329 = vmatprep.mubr.msk.f32.mxu0 %vm5921_vm1, %v5919_v0 }
 0xf81   :  { %5431 = vmatprep.subr.bf16.mxu0 %v5920_v29 }
 0xf84   :  { %5433 = vmatpush3.bf16.msra.mxu0 %v5432_v41 }
 0xf85   :  { %5434 = vmatprep.subr.bf16.mxu0 %v5920_v29 }
 0xf88   :  { %5436 = vmatpush3.bf16.msra.mxu0 %v5435_v9 }
 0xf89   :  { %5437 = vmatprep.subr.bf16.mxu0 %v5920_v29 }
 0xf8c   :  { %5439 = vmatpush3.bf16.msra.mxu0 %v5438_v24 }
 0xf8d   :  { %5440 = vmatprep.subr.bf16.mxu0 %v5920_v29 }
 0xf90   :  { %5442 = vmatpush3.bf16.msra.mxu0 %v5441_v30 }
 0xf91   :  { %5443 = vmatprep.subr.bf16.mxu0 %v5920_v29 }
 0xf94   :  { %5445 = vmatpush3.bf16.msra.mxu0 %v5444_v46 }
 0xf95   :  { %5446 = vmatprep.subr.bf16.mxu0 %v5920_v29 }
 0xf98   :  { %5448 = vmatpush3.bf16.msra.mxu0 %v5447_v1 }
 0xf99   :  { %5449 = vmatprep.subr.bf16.mxu0 %v5920_v29 }
 0xf9c   :  { %5451 = vmatpush3.bf16.msra.mxu0 %v5450_v52 }
0x1052   :  { %v4010_v57 = vpop.f32.mrb[30].mxu0  ;;  %v4081_v14 = vpop.f32.mrb[30].mxu1 }
0x1053   :  { %v5498_v48 = vadd.f32 %v4010_v57, %v6782_v25  ;;  %v4012_v0 = vpop.f32.mrb[31].mxu0  ;;  %v4083_v17 = vpop.f32.mrb[31].mxu1  ;;  %v5514_v54 = vadd.f32 %v4081_v14, %v6797_v13 }
0x1054   :  { %v5499_v16 = vadd.f32 %v4012_v0, %v6786_v5  ;;  %v5515_v40 = vadd.f32 %v4083_v17, %v6792_v23 }
0x1055   :  { %v4276_v49 = vmul.f32 -1.442695, %v5498_v48 }
0x1056   :  { %v4277_v3 = vmul.f32 -1.442695, %v5499_v16  ;;  %v4278_v60 = vmul.f32 -1.442695, %v5515_v40 }
0x1057   :  { %5828 = vpow2.f32 %v4276_v49 }
0x1058   :  { %5830 = vpow2.f32 %v4277_v3 }
0x1059   :  { %5832 = vpow2.f32 %v4278_v60 }
0x105a   :  { %5834 = vtanh.f32 %v5514_v54 }
0x1061   :  { %v5829_v27 = vpop.eup %5828 }
0x1062   :  { %v5831_v4 = vpop.eup %5830  ;;  %v4093_v2 = vadd.f32 1.0, %v5829_v27 }
0x1063   :  { %v4099_v38 = vadd.f32 1.0, %v5831_v4  ;;  %v5833_v25 = vpop.eup %5832 }
0x1064   :  { %5836 = vrcp.f32 %v4093_v2  ;;  %v5835_v20 = vpop.eup %5834  ;;  %v4106_v33 = vadd.f32 1.0, %v5833_v25 }
0x1065   :  { %5838 = vrcp.f32 %v4099_v38 }
0x1066   :  { %5840 = vrcp.f32 %v4106_v33 }
0x106e   :  { %v5837_v5 = vpop.eup %5836 }
0x106f   :  { %v5839_v50 = vpop.eup %5838  ;;  %v4110_v61 = vmul.f32 %v5837_v5, %v5835_v20 }
0x1070   :  { %v4109_v12 = vmul.f32 %v5839_v50, %v7050_v11  ;;  %v5841_v13 = vpop.eup %5840 }
0x1072   :  { %v4111_v23 = vadd.f32 %v4110_v61, %v4109_v12 }
0x1074   :  { %5842 = vtanh.f32 %v4111_v23 }
0x107e   :  { %v5843_v58 = vpop.eup %5842 }
0x107f   :  { %v4113_v15 = vmul.f32 %v5843_v58, %v5841_v13 }
0x1081   :  { %4330 = vmatmul.mubr.f32.vlgmr.msra.gmra.mrb[32].mxu0 %v4113_v15 }
0x1154   :  { %v4203_v55 = vpop.f32.mrb[32].mxu0 }
0x1155   :  { %v4204_v18 = vadd.f32 %v4279_v59, %v4203_v55  ;;  %v4331_v43 = vpop.f32.mrb[33].mxu0 }
0x1157   :  { %4208 = vst.msk [vmem:[%s7122_s9] sm:$0xff] %vm4207_vm2, %v4204_v18 }
0x1158   :  { %4213 = vsyncpa [#allocation5], 1 }
0x1159   :  { %4214 = vsyncpa [#allocation7], 1 }

</bundles_post_ra>
